<compile_context>
chip_gen: v5e
topology: v5e:2x2
jax: 0.10.0
libtpu: 0.0.40
codegen_flags: <defaults>
</compile_context>

<pallas_src>
import functools

import jax
import jax.numpy as jnp
from jax import lax
from jax.experimental import pallas as pl
from jax.experimental.pallas import tpu as pltpu

C_CHANNEL = 2          # fixed by the module
NUM_HEADS = 2          # h = 2 in mid_block (head_dim = 1)
SCALE = 1.0 / 8.0      # literal 1/8 scale used by the module
_LANE = 128


def _attn_kernel(w1_ref, w2_ref, w3_ref, x_ref, o_ref, *, s_valid, s_pad, tq, kb):
    """One (batch, query-tile) step of the fused linear + 2-head attention.

    w*_ref : (C, C) f32 in SMEM (PyTorch Linear weight, y = x @ W.T)
    x_ref  : (1, C, S_pad) channel-major full (padded) sequence; also the source
             of the current query tile (sliced in-kernel -> single DMA for x).
    o_ref  : (1, C, TQ) channel-major, lane-dense output tile.
    """
    nk = s_pad // kb
    n_pad = s_pad - s_valid

    # Query tile sliced out of the already-resident keys block (no extra input).
    q_off = pl.multiple_of(pl.program_id(1) * tq, _LANE)
    xq = x_ref[0, :, pl.ds(q_off, tq)]                                  # (C, TQ)

    # Per-channel |x| max over the (padded) sequence -> analytic softmax shift.
    xa0 = jnp.max(jnp.abs(x_ref[0, 0:1, :]), axis=1, keepdims=True)     # (1, 1)
    xa1 = jnp.max(jnp.abs(x_ref[0, 1:2, :]), axis=1, keepdims=True)     # (1, 1)

    q_rows, shifts = [], []
    for hd in range(NUM_HEADS):                  # head hd <-> channel hd (head_dim == 1)
        # Fold the 1/8 score scale into the scalar query weights (scalar ALU, free).
        wq0 = w1_ref[hd, 0] * SCALE
        wq1 = w1_ref[hd, 1] * SCALE
        q_row = xq[0:1, :] * wq0 + xq[1:2, :] * wq1                     # (1, TQ)
        # m >= |q| * max|k| >= every score, and >= 0 (padded keys score exactly 0).
        # Softmax is shift-exact, so any upper bound keeps exp stable and leaves
        # the result unchanged -- this removes the full (S, TQ) max-reduce pass.
        k_bound = jnp.abs(w2_ref[hd, 0]) * xa0 + jnp.abs(w2_ref[hd, 1]) * xa1
        m = jnp.abs(q_row) * k_bound                                    # (1, TQ)
        q_rows.append(q_row)
        shifts.append(m)

    def accum(off, carry):
        # Keys/values for one key block: one small (C, KB) -> (KB, C) XLU transpose
        # shared by both heads; every (KB, TQ)-sized op stays lane-dense in queries.
        xkt = jnp.transpose(x_ref[0, :, pl.ds(off, kb)])                # (KB, C)
        out = []
        for hd in range(NUM_HEADS):
            num, den = carry[2 * hd], carry[2 * hd + 1]
            kc = xkt[:, 0:1] * w2_ref[hd, 0] + xkt[:, 1:2] * w2_ref[hd, 1]   # (KB, 1)
            vc = xkt[:, 0:1] * w3_ref[hd, 0] + xkt[:, 1:2] * w3_ref[hd, 1]   # (KB, 1)
            e = jnp.exp(kc * q_rows[hd] - shifts[hd])                        # (KB, TQ)
            out.append(num + jnp.sum(e * vc, axis=0, keepdims=True))         # (1, TQ)
            out.append(den + jnp.sum(e, axis=0, keepdims=True))              # (1, TQ)
        return tuple(out)

    zero = jnp.zeros((1, tq), jnp.float32)
    init = (zero,) * (2 * NUM_HEADS)
    if nk == 1:
        acc = accum(0, init)                     # static full-sequence path (small S)
    else:
        acc = lax.fori_loop(
            0, nk, lambda i, c: accum(pl.multiple_of(i * kb, _LANE), c), init)

    for hd in range(NUM_HEADS):
        num, den = acc[2 * hd], acc[2 * hd + 1]
        if n_pad:
            # Zero-padded key rows (x == 0 -> k == v == 0) contribute exactly
            # exp(-m) to den and nothing to num: correct den with a (1, TQ) op
            # instead of masking the full (S_pad, TQ) score matrix.
            den = den - jnp.float32(n_pad) * jnp.exp(-shifts[hd])
        # Lane-dense per-head store; no concat / sublane shuffle before the store.
        o_ref[0, hd:hd + 1, :] = (num * pl.reciprocal(den)).astype(o_ref.dtype)


def _tpu_params():
    """(vmem_limit_bytes to request, is_v7x) with safe fallbacks."""
    kind = ""
    try:
        kind = jax.devices()[0].device_kind.lower()
    except Exception:
        pass
    is_v7x = "v7" in kind
    try:
        cap = int(pltpu.get_tpu_info().vmem_capacity_bytes)
    except Exception:
        cap = 64 * 1024 * 1024 if is_v7x else 128 * 1024 * 1024
    # Request half of physical VMEM, capped at 64 MiB (v5e/v6e: 64 MiB, v7x: 32 MiB).
    vmem_limit = min(cap // 2, 64 * 1024 * 1024)
    return vmem_limit, is_v7x


def _largest_div_tile(s_pad, cap):
    """Largest multiple of 128 that divides s_pad and is <= cap (floor 128)."""
    t = max(_LANE, min(s_pad, (cap // _LANE) * _LANE))
    while s_pad % t:          # s_pad and t are multiples of 128 -> terminates at 128
        t -= _LANE
    return t


def _pick_tiles(batch, s_pad, vmem_limit, is_v7x):
    """Pick (query tile TQ, key block KB), both 128-multiples dividing s_pad."""
    # Key block for the online-softmax loop: scratch scales with KB*TQ, not S.
    kb = _largest_div_tile(s_pad, 1024)
    # ~8 live (KB, TQ) f32 temporaries (2 unrolled heads x ~4 passes each), plus the
    # double-buffered x block; keep inside the requested scoped VMEM limit w/ 25% headroom.
    budget = (vmem_limit * 3) // 4 - 16 * s_pad
    tq_cap = max(_LANE, budget // (32 * kb))
    tq = _largest_div_tile(s_pad, tq_cap)
    if is_v7x and batch == 1 and s_pad >= 2 * _LANE:
        # Keep >=2 parallel programs so both v7x TensorCores get work.
        tq = min(tq, _largest_div_tile(s_pad, s_pad // 2))
    return tq, kb


def _mid_block_attention(x_cs, w1, w2, w3, s_valid):
    """x_cs: (B, C, S_pad) channel-major -> (B, C, S_pad) attention output."""
    B, C, S_pad = x_cs.shape
    vmem_limit, is_v7x = _tpu_params()
    TQ, KB = _pick_tiles(B, S_pad, vmem_limit, is_v7x)
    kernel = functools.partial(_attn_kernel, s_valid=s_valid, s_pad=S_pad, tq=TQ, kb=KB)

    return pl.pallas_call(
        kernel,
        out_shape=jax.ShapeDtypeStruct((B, C, S_pad), x_cs.dtype),
        grid=(B, S_pad // TQ),
        in_specs=[
            pl.BlockSpec(memory_space=pltpu.MemorySpace.SMEM),       # w1
            pl.BlockSpec(memory_space=pltpu.MemorySpace.SMEM),       # w2
            pl.BlockSpec(memory_space=pltpu.MemorySpace.SMEM),       # w3
            # Single x input: full sequence per batch (keys/values AND queries);
            # block index is constant across qi, so it is fetched once per batch.
            pl.BlockSpec((1, C, S_pad), lambda b, qi: (b, 0, 0)),
        ],
        out_specs=pl.BlockSpec((1, C, TQ), lambda b, qi: (b, 0, qi)),  # lane-dense output
        compiler_params=pltpu.CompilerParams(
            dimension_semantics=("parallel", "parallel"),
            vmem_limit_bytes=int(vmem_limit)),
    )(w1, w2, w3, x_cs)


def my_model_forward(x, w1, w2, w3):
    """Forward pass of MyModel.  x: NCHW (b, 2, h, w) f32 -> NCHW (b, 2, h, w)."""
    b, c, h, w = x.shape
    assert c == C_CHANNEL
    S = h * w
    x_cs = x.reshape(b, c, S)                     # NCHW is already channel-major: free reshape
    S_pad = max(_LANE, pl.cdiv(S, _LANE) * _LANE)
    if S_pad != S:
        x_cs = jnp.pad(x_cs, ((0, 0), (0, 0), (0, S_pad - S)))
    out_cs = _mid_block_attention(x_cs, w1, w2, w3, s_valid=S)   # (b, c, S_pad)
    if S_pad != S:
        out_cs = out_cs[:, :, :S]
    return out_cs.reshape(b, c, h, w)             # free reshape back to NCHW (no transpose)


def _ref_forward(x, w1, w2, w3):
    """Pure-JAX reference mirroring the PyTorch module exactly."""
    b, c, h, w = x.shape
    S = h * w
    xs = jnp.transpose(x.reshape(b, c, S), (0, 2, 1))          # (b, S, c)
    q, k, v = xs @ w1.T, xs @ w2.T, xs @ w3.T
    H, D = NUM_HEADS, c // NUM_HEADS

    def split(t):
        return jnp.transpose(t.reshape(b, S, H, D), (0, 2, 1, 3)).reshape(b * H, S, D)

    qh, kh, vh = split(q), split(k), split(v)
    s = (qh @ jnp.transpose(kh, (0, 2, 1))) * SCALE
    p = jax.nn.softmax(s, axis=-1)
    o = p @ vh
    o = jnp.transpose(o.reshape(b, H, S, D), (0, 2, 1, 3)).reshape(b, S, H * D)
    return jnp.transpose(o.reshape(b, h, w, c), (0, 3, 1, 2))


if __name__ == "__main__":
    forward = jax.jit(my_model_forward)

    def run_case(batch, himg, wimg, key):
        kx, k1, k2, k3 = jax.random.split(key, 4)
        x = jax.random.normal(kx, (batch, C_CHANNEL, himg, wimg), jnp.float32)
        bound = 1.0 / (C_CHANNEL ** 0.5)   # torch-style Linear(2,2,bias=False) init bound
        w1 = jax.random.uniform(k1, (C_CHANNEL, C_CHANNEL), jnp.float32, -bound, bound)
        w2 = jax.random.uniform(k2, (C_CHANNEL, C_CHANNEL), jnp.float32, -bound, bound)
        w3 = jax.random.uniform(k3, (C_CHANNEL, C_CHANNEL), jnp.float32, -bound, bound)

        out = jax.block_until_ready(forward(x, w1, w2, w3))
        ref = _ref_forward(x, w1, w2, w3)

        assert out.shape == (batch, C_CHANNEL, himg, wimg), out.shape
        assert out.dtype == jnp.float32
        if not bool(jnp.allclose(out, ref, atol=1e-5, rtol=1e-5)):
            raise AssertionError(
                f"Pallas kernel output does not match JAX reference for shape {x.shape}")

    key = jax.random.PRNGKey(0)
    k_a, k_b, k_c = jax.random.split(key, 3)
    run_case(2, 16, 16, k_a)   # S = 256: lane-aligned, batch-parallel grid, nk == 1
    run_case(1, 12, 12, k_b)   # S = 144: pad + denominator-correction path, nk == 1
    run_case(1, 48, 48, k_c)   # S = 2304: key-blocked fori_loop path (nk > 1)

    print("KERNEL_OK")
</pallas_src>

<mosaic_0001>
module attributes {stable_mosaic.version = 11 : i64} {
  func.func @_attn_kernel(%arg0: i32, %arg1: i32, %arg2: memref<2x2xf32, #tpu.memory_space<smem>>, %arg3: memref<2x2xf32, #tpu.memory_space<smem>>, %arg4: memref<2x2xf32, #tpu.memory_space<smem>>, %arg5: memref<1x2x256xf32, #tpu.memory_space<vmem>>, %arg6: memref<1x2x256xf32, #tpu.memory_space<vmem>>) attributes {dimension_semantics = [#tpu.dimension_semantics<parallel>, #tpu.dimension_semantics<parallel>], iteration_bounds = array<i64: 2, 1>, scalar_prefetch = 0 : i64, scratch_operands = 0 : i64, tpu.core_type = #tpu.core_type<tc>, window_params = [{transform_indices = @transform_0, window_bounds = array<i64: 2, 2>}, {transform_indices = @transform_1, window_bounds = array<i64: 2, 2>}, {transform_indices = @transform_2, window_bounds = array<i64: 2, 2>}, {transform_indices = @transform_3, window_bounds = array<i64: 1, 2, 256>}, {transform_indices = @transform_4, window_bounds = array<i64: 1, 2, 256>}]} {
    %c256_i32 = arith.constant 256 : i32
    %0 = arith.muli %arg1, %c256_i32 : i32
    %1 = tpu.assume_multiple %0, 128 : i32
    %c0 = arith.constant 0 : index
    %c0_0 = arith.constant 0 : index
    %2 = arith.index_cast %1 : i32 to index
    %3 = vector.load %arg5[%c0, %c0_0, %2] : memref<1x2x256xf32, #tpu.memory_space<vmem>>, vector<1x2x256xf32>
    %4 = vector.shape_cast %3 : vector<1x2x256xf32> to vector<2x256xf32>
    %c0_1 = arith.constant 0 : index
    %c0_2 = arith.constant 0 : index
    %c0_3 = arith.constant 0 : index
    %5 = vector.load %arg5[%c0_1, %c0_2, %c0_3] : memref<1x2x256xf32, #tpu.memory_space<vmem>>, vector<1x1x256xf32>
    %6 = vector.shape_cast %5 : vector<1x1x256xf32> to vector<1x256xf32>
    %7 = math.absf %6 : vector<1x256xf32>
    %cst = arith.constant dense<0xFF800000> : vector<1xf32>
    %8 = vector.multi_reduction <maximumf>, %7, %cst [1] : vector<1x256xf32> to vector<1xf32>
    %9 = vector.shape_cast %8 : vector<1xf32> to vector<1x1xf32>
    %c0_4 = arith.constant 0 : index
    %c1 = arith.constant 1 : index
    %c0_5 = arith.constant 0 : index
    %10 = vector.load %arg5[%c0_4, %c1, %c0_5] : memref<1x2x256xf32, #tpu.memory_space<vmem>>, vector<1x1x256xf32>
    %11 = vector.shape_cast %10 : vector<1x1x256xf32> to vector<1x256xf32>
    %12 = math.absf %11 : vector<1x256xf32>
    %cst_6 = arith.constant dense<0xFF800000> : vector<1xf32>
    %13 = vector.multi_reduction <maximumf>, %12, %cst_6 [1] : vector<1x256xf32> to vector<1xf32>
    %14 = vector.shape_cast %13 : vector<1xf32> to vector<1x1xf32>
    %c0_7 = arith.constant 0 : index
    %c0_8 = arith.constant 0 : index
    %15 = memref.load %arg2[%c0_7, %c0_8] : memref<2x2xf32, #tpu.memory_space<smem>>
    %cst_9 = arith.constant 1.250000e-01 : f32
    %16 = arith.mulf %15, %cst_9 : f32
    %c0_10 = arith.constant 0 : index
    %c1_11 = arith.constant 1 : index
    %17 = memref.load %arg2[%c0_10, %c1_11] : memref<2x2xf32, #tpu.memory_space<smem>>
    %cst_12 = arith.constant 1.250000e-01 : f32
    %18 = arith.mulf %17, %cst_12 : f32
    %19 = vector.extract_strided_slice %4 {offsets = [0, 0], sizes = [1, 256], strides = [1, 1]} : vector<2x256xf32> to vector<1x256xf32>
    %20 = vector.broadcast %16 : f32 to vector<1x256xf32>
    %21 = arith.mulf %19, %20 : vector<1x256xf32>
    %22 = vector.extract_strided_slice %4 {offsets = [1, 0], sizes = [1, 256], strides = [1, 1]} : vector<2x256xf32> to vector<1x256xf32>
    %23 = vector.broadcast %18 : f32 to vector<1x256xf32>
    %24 = arith.mulf %22, %23 : vector<1x256xf32>
    %25 = arith.addf %21, %24 : vector<1x256xf32>
    %c0_13 = arith.constant 0 : index
    %c0_14 = arith.constant 0 : index
    %26 = memref.load %arg3[%c0_13, %c0_14] : memref<2x2xf32, #tpu.memory_space<smem>>
    %27 = math.absf %26 : f32
    %28 = vector.broadcast %27 : f32 to vector<1x1xf32>
    %29 = arith.mulf %28, %9 : vector<1x1xf32>
    %c0_15 = arith.constant 0 : index
    %c1_16 = arith.constant 1 : index
    %30 = memref.load %arg3[%c0_15, %c1_16] : memref<2x2xf32, #tpu.memory_space<smem>>
    %31 = math.absf %30 : f32
    %32 = vector.broadcast %31 : f32 to vector<1x1xf32>
    %33 = arith.mulf %32, %14 : vector<1x1xf32>
    %34 = arith.addf %29, %33 : vector<1x1xf32>
    %35 = math.absf %25 : vector<1x256xf32>
    %36 = vector.broadcast %34 : vector<1x1xf32> to vector<1x256xf32>
    %37 = arith.mulf %35, %36 : vector<1x256xf32>
    %c1_17 = arith.constant 1 : index
    %c0_18 = arith.constant 0 : index
    %38 = memref.load %arg2[%c1_17, %c0_18] : memref<2x2xf32, #tpu.memory_space<smem>>
    %cst_19 = arith.constant 1.250000e-01 : f32
    %39 = arith.mulf %38, %cst_19 : f32
    %c1_20 = arith.constant 1 : index
    %c1_21 = arith.constant 1 : index
    %40 = memref.load %arg2[%c1_20, %c1_21] : memref<2x2xf32, #tpu.memory_space<smem>>
    %cst_22 = arith.constant 1.250000e-01 : f32
    %41 = arith.mulf %40, %cst_22 : f32
    %42 = vector.extract_strided_slice %4 {offsets = [0, 0], sizes = [1, 256], strides = [1, 1]} : vector<2x256xf32> to vector<1x256xf32>
    %43 = vector.broadcast %39 : f32 to vector<1x256xf32>
    %44 = arith.mulf %42, %43 : vector<1x256xf32>
    %45 = vector.extract_strided_slice %4 {offsets = [1, 0], sizes = [1, 256], strides = [1, 1]} : vector<2x256xf32> to vector<1x256xf32>
    %46 = vector.broadcast %41 : f32 to vector<1x256xf32>
    %47 = arith.mulf %45, %46 : vector<1x256xf32>
    %48 = arith.addf %44, %47 : vector<1x256xf32>
    %c1_23 = arith.constant 1 : index
    %c0_24 = arith.constant 0 : index
    %49 = memref.load %arg3[%c1_23, %c0_24] : memref<2x2xf32, #tpu.memory_space<smem>>
    %50 = math.absf %49 : f32
    %51 = vector.broadcast %50 : f32 to vector<1x1xf32>
    %52 = arith.mulf %51, %9 : vector<1x1xf32>
    %c1_25 = arith.constant 1 : index
    %c1_26 = arith.constant 1 : index
    %53 = memref.load %arg3[%c1_25, %c1_26] : memref<2x2xf32, #tpu.memory_space<smem>>
    %54 = math.absf %53 : f32
    %55 = vector.broadcast %54 : f32 to vector<1x1xf32>
    %56 = arith.mulf %55, %14 : vector<1x1xf32>
    %57 = arith.addf %52, %56 : vector<1x1xf32>
    %58 = math.absf %48 : vector<1x256xf32>
    %59 = vector.broadcast %57 : vector<1x1xf32> to vector<1x256xf32>
    %60 = arith.mulf %58, %59 : vector<1x256xf32>
    %cst_27 = arith.constant 0.000000e+00 : f32
    %61 = vector.broadcast %cst_27 : f32 to vector<1x256xf32>
    %c0_28 = arith.constant 0 : index
    %c0_29 = arith.constant 0 : index
    %c0_30 = arith.constant 0 : index
    %62 = vector.load %arg5[%c0_28, %c0_29, %c0_30] : memref<1x2x256xf32, #tpu.memory_space<vmem>>, vector<1x2x256xf32>
    %63 = vector.shape_cast %62 : vector<1x2x256xf32> to vector<2x256xf32>
    %64 = tpu.transpose %63, [1, 0] : vector<2x256xf32> -> vector<256x2xf32>
    %65 = vector.extract_strided_slice %64 {offsets = [0, 0], sizes = [256, 1], strides = [1, 1]} : vector<256x2xf32> to vector<256x1xf32>
    %c0_31 = arith.constant 0 : index
    %c0_32 = arith.constant 0 : index
    %66 = memref.load %arg3[%c0_31, %c0_32] : memref<2x2xf32, #tpu.memory_space<smem>>
    %67 = vector.broadcast %66 : f32 to vector<256x1xf32>
    %68 = arith.mulf %65, %67 : vector<256x1xf32>
    %69 = vector.extract_strided_slice %64 {offsets = [0, 1], sizes = [256, 1], strides = [1, 1]} : vector<256x2xf32> to vector<256x1xf32>
    %c0_33 = arith.constant 0 : index
    %c1_34 = arith.constant 1 : index
    %70 = memref.load %arg3[%c0_33, %c1_34] : memref<2x2xf32, #tpu.memory_space<smem>>
    %71 = vector.broadcast %70 : f32 to vector<256x1xf32>
    %72 = arith.mulf %69, %71 : vector<256x1xf32>
    %73 = arith.addf %68, %72 : vector<256x1xf32>
    %74 = vector.extract_strided_slice %64 {offsets = [0, 0], sizes = [256, 1], strides = [1, 1]} : vector<256x2xf32> to vector<256x1xf32>
    %c0_35 = arith.constant 0 : index
    %c0_36 = arith.constant 0 : index
    %75 = memref.load %arg4[%c0_35, %c0_36] : memref<2x2xf32, #tpu.memory_space<smem>>
    %76 = vector.broadcast %75 : f32 to vector<256x1xf32>
    %77 = arith.mulf %74, %76 : vector<256x1xf32>
    %78 = vector.extract_strided_slice %64 {offsets = [0, 1], sizes = [256, 1], strides = [1, 1]} : vector<256x2xf32> to vector<256x1xf32>
    %c0_37 = arith.constant 0 : index
    %c1_38 = arith.constant 1 : index
    %79 = memref.load %arg4[%c0_37, %c1_38] : memref<2x2xf32, #tpu.memory_space<smem>>
    %80 = vector.broadcast %79 : f32 to vector<256x1xf32>
    %81 = arith.mulf %78, %80 : vector<256x1xf32>
    %82 = arith.addf %77, %81 : vector<256x1xf32>
    %83 = vector.broadcast %73 : vector<256x1xf32> to vector<256x256xf32>
    %84 = vector.broadcast %25 : vector<1x256xf32> to vector<256x256xf32>
    %85 = arith.mulf %83, %84 : vector<256x256xf32>
    %86 = vector.broadcast %37 : vector<1x256xf32> to vector<256x256xf32>
    %87 = arith.subf %85, %86 : vector<256x256xf32>
    %88 = math.exp %87 : vector<256x256xf32>
    %89 = vector.broadcast %82 : vector<256x1xf32> to vector<256x256xf32>
    %90 = arith.mulf %88, %89 : vector<256x256xf32>
    %cst_39 = arith.constant dense<0.000000e+00> : vector<256xf32>
    %91 = vector.multi_reduction <add>, %90, %cst_39 [0] : vector<256x256xf32> to vector<256xf32>
    %92 = vector.shape_cast %91 : vector<256xf32> to vector<1x256xf32>
    %93 = arith.addf %61, %92 : vector<1x256xf32>
    %cst_40 = arith.constant dense<0.000000e+00> : vector<256xf32>
    %94 = vector.multi_reduction <add>, %88, %cst_40 [0] : vector<256x256xf32> to vector<256xf32>
    %95 = vector.shape_cast %94 : vector<256xf32> to vector<1x256xf32>
    %96 = arith.addf %61, %95 : vector<1x256xf32>
    %97 = vector.extract_strided_slice %64 {offsets = [0, 0], sizes = [256, 1], strides = [1, 1]} : vector<256x2xf32> to vector<256x1xf32>
    %c1_41 = arith.constant 1 : index
    %c0_42 = arith.constant 0 : index
    %98 = memref.load %arg3[%c1_41, %c0_42] : memref<2x2xf32, #tpu.memory_space<smem>>
    %99 = vector.broadcast %98 : f32 to vector<256x1xf32>
    %100 = arith.mulf %97, %99 : vector<256x1xf32>
    %101 = vector.extract_strided_slice %64 {offsets = [0, 1], sizes = [256, 1], strides = [1, 1]} : vector<256x2xf32> to vector<256x1xf32>
    %c1_43 = arith.constant 1 : index
    %c1_44 = arith.constant 1 : index
    %102 = memref.load %arg3[%c1_43, %c1_44] : memref<2x2xf32, #tpu.memory_space<smem>>
    %103 = vector.broadcast %102 : f32 to vector<256x1xf32>
    %104 = arith.mulf %101, %103 : vector<256x1xf32>
    %105 = arith.addf %100, %104 : vector<256x1xf32>
    %106 = vector.extract_strided_slice %64 {offsets = [0, 0], sizes = [256, 1], strides = [1, 1]} : vector<256x2xf32> to vector<256x1xf32>
    %c1_45 = arith.constant 1 : index
    %c0_46 = arith.constant 0 : index
    %107 = memref.load %arg4[%c1_45, %c0_46] : memref<2x2xf32, #tpu.memory_space<smem>>
    %108 = vector.broadcast %107 : f32 to vector<256x1xf32>
    %109 = arith.mulf %106, %108 : vector<256x1xf32>
    %110 = vector.extract_strided_slice %64 {offsets = [0, 1], sizes = [256, 1], strides = [1, 1]} : vector<256x2xf32> to vector<256x1xf32>
    %c1_47 = arith.constant 1 : index
    %c1_48 = arith.constant 1 : index
    %111 = memref.load %arg4[%c1_47, %c1_48] : memref<2x2xf32, #tpu.memory_space<smem>>
    %112 = vector.broadcast %111 : f32 to vector<256x1xf32>
    %113 = arith.mulf %110, %112 : vector<256x1xf32>
    %114 = arith.addf %109, %113 : vector<256x1xf32>
    %115 = vector.broadcast %105 : vector<256x1xf32> to vector<256x256xf32>
    %116 = vector.broadcast %48 : vector<1x256xf32> to vector<256x256xf32>
    %117 = arith.mulf %115, %116 : vector<256x256xf32>
    %118 = vector.broadcast %60 : vector<1x256xf32> to vector<256x256xf32>
    %119 = arith.subf %117, %118 : vector<256x256xf32>
    %120 = math.exp %119 : vector<256x256xf32>
    %121 = vector.broadcast %114 : vector<256x1xf32> to vector<256x256xf32>
    %122 = arith.mulf %120, %121 : vector<256x256xf32>
    %cst_49 = arith.constant dense<0.000000e+00> : vector<256xf32>
    %123 = vector.multi_reduction <add>, %122, %cst_49 [0] : vector<256x256xf32> to vector<256xf32>
    %124 = vector.shape_cast %123 : vector<256xf32> to vector<1x256xf32>
    %125 = arith.addf %61, %124 : vector<1x256xf32>
    %cst_50 = arith.constant dense<0.000000e+00> : vector<256xf32>
    %126 = vector.multi_reduction <add>, %120, %cst_50 [0] : vector<256x256xf32> to vector<256xf32>
    %127 = vector.shape_cast %126 : vector<256xf32> to vector<1x256xf32>
    %128 = arith.addf %61, %127 : vector<1x256xf32>
    %129 = tpu.reciprocal %96 : vector<1x256xf32> -> vector<1x256xf32>
    %130 = arith.mulf %93, %129 : vector<1x256xf32>
    %c0_51 = arith.constant 0 : index
    %c0_52 = arith.constant 0 : index
    %c0_53 = arith.constant 0 : index
    %131 = vector.load %arg6[%c0_51, %c0_52, %c0_53] : memref<1x2x256xf32, #tpu.memory_space<vmem>>, vector<1x1x256xf32>
    %132 = vector.shape_cast %131 : vector<1x1x256xf32> to vector<1x256xf32>
    %133 = vector.shape_cast %130 : vector<1x256xf32> to vector<1x1x256xf32>
    tpu.vector_store %arg6[%c0_51, %c0_52, %c0_53], %133 {strides = array<i32>} : memref<1x2x256xf32, #tpu.memory_space<vmem>>, vector<1x1x256xf32>,
    %134 = tpu.reciprocal %128 : vector<1x256xf32> -> vector<1x256xf32>
    %135 = arith.mulf %125, %134 : vector<1x256xf32>
    %c0_54 = arith.constant 0 : index
    %c1_55 = arith.constant 1 : index
    %c0_56 = arith.constant 0 : index
    %136 = vector.load %arg6[%c0_54, %c1_55, %c0_56] : memref<1x2x256xf32, #tpu.memory_space<vmem>>, vector<1x1x256xf32>
    %137 = vector.shape_cast %136 : vector<1x1x256xf32> to vector<1x256xf32>
    %138 = vector.shape_cast %135 : vector<1x256xf32> to vector<1x1x256xf32>
    tpu.vector_store %arg6[%c0_54, %c1_55, %c0_56], %138 {strides = array<i32>} : memref<1x2x256xf32, #tpu.memory_space<vmem>>, vector<1x1x256xf32>,
    return
  }
  func.func @transform_0(%arg0: i32, %arg1: i32) -> (i32, i32) {
    %c0_i32 = arith.constant 0 : i32
    %c0_i32_0 = arith.constant 0 : i32
    %c0_i32_1 = arith.constant 0 : i32
    return %c0_i32, %c0_i32_0 : i32, i32
  }
  func.func @transform_1(%arg0: i32, %arg1: i32) -> (i32, i32) {
    %c0_i32 = arith.constant 0 : i32
    %c0_i32_0 = arith.constant 0 : i32
    %c0_i32_1 = arith.constant 0 : i32
    return %c0_i32, %c0_i32_0 : i32, i32
  }
  func.func @transform_2(%arg0: i32, %arg1: i32) -> (i32, i32) {
    %c0_i32 = arith.constant 0 : i32
    %c0_i32_0 = arith.constant 0 : i32
    %c0_i32_1 = arith.constant 0 : i32
    return %c0_i32, %c0_i32_0 : i32, i32
  }
  func.func @transform_3(%arg0: i32, %arg1: i32) -> (i32, i32, i32) {
    %c0_i32 = arith.constant 0 : i32
    %c0_i32_0 = arith.constant 0 : i32
    %c0_i32_1 = arith.constant 0 : i32
    return %arg0, %c0_i32, %c0_i32_0 : i32, i32, i32
  }
  func.func @transform_4(%arg0: i32, %arg1: i32) -> (i32, i32, i32) {
    %c0_i32 = arith.constant 0 : i32
    %c0_i32_0 = arith.constant 0 : i32
    return %arg0, %c0_i32, %arg1 : i32, i32, i32
  }
}

</mosaic_0001>

<bundles_post_ra>
// kernel: my_model_forward.1
= control target key start
LH: loop header
LB: loop body
LE: loop exit
PB: predicated region body
PF: predicated region fallthrough
CT: control target
= control target key end

     0   :  { %9 = vsyncpa [#allocation3], 0  ;;  %s5928_s0 = inlined_call_operand.vmem [shape: f32[2,2], index: 0, kind: input, shape index: {}]   ;;  %s5929_s1 = inlined_call_operand.vmem [shape: f32[2,2], index: 1, kind: input, shape index: {}]   ;;  %s5930_s2 = inlined_call_operand.vmem [shape: f32[2,2], index: 2, kind: input, shape index: {}]   ;;  %s5931_s3 = inlined_call_operand.vmem [shape: f32[2,2,256], index: 3, kind: input, shape index: {}]   ;;  %s5932_s4 = inlined_call_operand.vmem [shape: f32[2,2,256], index: 4, kind: output, shape index: {}]  }
   0x1   :  { %10 = vsyncpa [#allocation5], 0  ;;  %s3600_s15 = smov 0   ;;  %s3602_s16 = smov 0  }
   0x2   :  { %s3604_s17 = smov 0  }
   0x3 LB: > { %s172_s20 = sshll.u32 %s5929_s1, 4  ;;  %s3134_s21 = sadd.s32 4294967295, %s3567_s17   ;;  %s3567_s17 = sphi %s3604_s17, %s16_s17   ;;  %s3563_s16 = sphi %s3602_s16, %s6291_s16   ;;  %s3559_s15 = sphi %s3600_s15, %s6290_s15   ;;  %s173_s20 = int_to_ptr.vmem [resolvable:$true] %s172_s20 }
   0x4   : > { %p3136_p0 = scmp.ge.s32.totalorder %s3567_s17, 1  ;;  %p150_p1 = scmp.lt.s32.totalorder %s3567_s17, 3 }
   0x5   : > { %p3621_p2 = scmp.eq.s32.totalorder %s3134_s21, 0  ;;  %s28_s24 = sadd.s32 1, %s3563_s16 }
   0x6   : > { %p3625_p3 = pnand %p3136_p0, %p150_p1  ;;  %s162_s27 = sshll.u32 %s5928_s0, 4  ;;  %s163_s27 = int_to_ptr.vmem [resolvable:$true] %s162_s27 }
   0x7   : > { %p30_p6 = scmp.ge.s32.totalorder %s28_s24, 2  ;;  %s182_s30 = sshll.u32 %s5930_s2, 4  ;;  %s183_s30 = int_to_ptr.vmem [resolvable:$true] %s182_s30 }
   0x8   : > { %p3178_p4 = pneg %p3625_p3  ;;  %s3569_s5 = smov [#allocation4]  }
   0x9   : > { %s6293_s24 = smov (%p30_p6, %s28_s24), 0  ;;  %s3570_s6 = smov [#allocation2]  }
   0xa   : > { %p3179_p5 = pnand %p3621_p2, %p3178_p4  ;;  %s3571_s7 = smov [#allocation6]  }
   0xb   : > { %203 = sbr.rel (%p3625_p3) target bundleno = 1240 (0x4d8), region = 36 }
   0xc   : > { %3184 = dma.vmem_to_smem (!%p3179_p5), %s173_s20, 32, %s3569_s5, [#allocation5]  }
   0xd   : > { %3181 = dma.vmem_to_smem (!%p3179_p5), %s163_s27, 32, %s3570_s6, [#allocation3]  }
   0xe   : > { %3187 = dma.vmem_to_smem (!%p3179_p5), %s183_s30, 32, %s3571_s7, [#allocation5]  }
  0x10   : > { %3550 = dma.done.wait (%p3621_p2), [#allocation3], 32  }
  0x11   : > { %3552 = vsyncadd (%p3621_p2), [#allocation3], 4294967264 }
  0x12   : > { %3554 = dma.done.wait (%p3621_p2), [#allocation5], 64  }
  0x13   : > { %3556 = vsyncadd (%p3621_p2), [#allocation5], 4294967232 }
  0x14   : > { %220 = sfence }
  0x15   : > { %p245_p7 = scmp.lt.s32.totalorder %s3559_s15, 1  ;;  %s3665_s12 = sld [smem:[#allocation4 + $0x1]]  ;;  %vm273_vm0 = vcmask 1040384  }
  0x16   : > { %s3572_s13 = smov 127   ;;  %s3764_s14 = sld [smem:[#allocation4 + $0x80]] }
  0x17   : > { %s6295_s15 = smov (!%p245_p7, %s3559_s15), 1  ;;  %s3153_s18 = sld [smem:[#allocation2 + $0x80]] }
  0x18   : > { %s3164_s8 = sshll.u32 %s6295_s15, 2  ;;  %s3154_s19 = sld [smem:[#allocation2 + $0x81]] }
  0x19   : > { %s3662_s11 = scalar_lea.vmem %s5931_s3, %s3164_s8  ;;  %s3772_s20 = sld [smem:[#allocation4 + $0x81]] }
  0x1a   : > { %v352_v0 = vld [vmem:[%s3662_s11] sm:$0xf]  ;;  %s3158_s26 = sld [smem:[#allocation6 + $0x1]] }
  0x1b   : > { %354 = vst [vmem:[#allocation1] ss:$4 sm:$0xff] %v352_v0  ;;  %v3668_v3 = vstv %s3665_s12  ;;  %v266_v14 = vld [vmem:[%s3662_s11] ss:$2 sm:$0x3]  ;;  %s3896_s27 = sld [smem:[#allocation4]] }
  0x1c   : > { %v267_v16 = vand.u32 2147483647, %v266_v14  ;;  %v3149_v22 = vld [vmem:[%s3662_s11 + $0x1] ss:$2 sm:$0x3]  ;;  %s649_s28 = sld [smem:[#allocation6]] }
  0x1d   : > { %v281_v24 = vand.u32 2147483647, %v3149_v22  ;;  %s336_s21 = sand.u32 2147483647, %s3764_s14  ;;  %s323_s22 = smul.f32 0.125, %s3153_s18 }
  0x1e   : > { %v269_v17 = vperm.slane %v267_v16, 0  ;;  %v270_v18 = vperm.slane %v267_v16, 1  ;;  %v337_v59 = vstv %s336_s21  ;;  %s325_s23 = smul.f32 0.125, %s3154_s19  ;;  %v3786_v63 = vld [vmem:[%s3662_s11] sm:$0xf]  ;;  %s3150_s29 = sld [smem:[#allocation2 + $0x1]] }
  0x1f   : > { %v283_v25 = vperm.slane %v281_v24, 0  ;;  %v284_v26 = vperm.slane %v281_v24, 1  ;;  %s340_s25 = sand.u32 2147483647, %s3772_s20  ;;  %6088 = vst [vmem:[#allocation34_spill] sm:$0xff] %v3786_v63  ;;  %s292_s30 = sld [smem:[#allocation2]] }
  0x20   : > { %v274_v19 = vsel %vm273_vm0, %v269_v17, -inf  ;;  %v275_v20 = vsel %vm273_vm0, %v270_v18, -inf  ;;  %v341_v14 = vstv %s340_s25  ;;  %s310_s9 = sand.u32 2147483647, %s3665_s12  ;;  %s4445_s10 = sld [smem:[#allocation6 + $0x81]] }
  0x21   : > { %v276_v21 = vmax.f32 %v274_v19, %v275_v20  ;;  %v287_v27 = vsel %vm273_vm0, %v283_v25, -inf  ;;  %v288_v28 = vsel %vm273_vm0, %v284_v26, -inf  ;;  %s306_s7 = sand.u32 2147483647, %s3896_s27  ;;  %s3159_s15 = sld [smem:[#allocation6 + $0x80]] }
  0x22   : > { %v355_v1 = vld.sshfl [vmem:[#allocation1] sm:$0xff pattern:$0x73625140]  ;;  %v356_v2 = vld.sshfl [vmem:[#allocation1 + $0x8] sm:$0xff pattern:$0x73625140]  ;;  %v289_v29 = vmax.f32 %v287_v27, %v288_v28 }
  0x23   : > { %359 = vxpose.xlu1.b32.start.end [1/1] (short) %v355_v1, 128  ;;  %277 = vmax.xlane.f32.xlu0 %v276_v21  ;;  %v3573_v1 = vmov 269488144  }
  0x24   : > { %s295_s5 = smul.f32 0.125, %s3150_s29 }
  0x25   : > { %s293_s6 = smul.f32 0.125, %s292_s30 }
  0x2b   : > { %290 = vmax.xlane.f32.xlu0 %v289_v29 }
  0x96   : > { %v3775_v58 = vpop.xlane.xlu0 %277 }
  0x97   : > { %6086 = vst [vmem:[#allocation32_spill] sm:$0xff] %v3775_v58  ;;  %v338_v62 = vmul.f32 %v337_v59, %v3775_v58 }
  0x9e   : > { %v3792_v16 = vpop.xlane.xlu0 %290 }
  0x9f   : > { %6090 = vst [vmem:[#allocation36_spill] sm:$0xff] %v3792_v16  ;;  %v342_v20 = vmul.f32 %v341_v14, %v3792_v16  ;;  %v3574_v14 = vmov 0  }
  0xa0   : > { %3226 = vset.pattern.permute.xlu0 %v3574_v14  ;;  %3225 = vset.pattern.permute.xlu2 %v3574_v14 }
  0xa1   : > { %v343_v22 = vadd.f32 %v342_v20, %v338_v62 }
  0xa3   : > { %391 = vxpose.xlu1.b32.start.end [1/1] (short) %v356_v2, 128  ;;  %v3790_v2 = vunpack.c.l.s4 %v3573_v1 }
  0xa5   : > { %6089 = vst [vmem:[#allocation35_spill] sm:$0xff] %v3790_v2  ;;  %v5933_v17 = vunpack.c.0.s8 %v3790_v2 }
  0xa7   : > { %v349_v25 = vperm.slane %v343_v22, %v5933_v17 }
  0xc7   : > { %v3670_v4 = vpop.trf.xlu1 }
  0xc8   : > { %6063 = vst [vmem:[#allocation9_spill] sm:$0xff] %v3670_v4  ;;  %v457_v5 = vmul.f32 %v3668_v3, %v3670_v4 }
  0xca   : > { %521 = vrot.lane.b32.xlu2 %v457_v5, %s3572_s13  ;;  %v326_v5 = vstv %s323_s22 }
  0xcb   : > { %v327_v18 = vmul.f32 %v326_v5, %v3786_v63 }
  0xcf   : > { %v3675_v6 = vpop.trf.xlu1 }
  0xd0   : > { %6064 = vst [vmem:[#allocation10_spill] sm:$0xff] %v3675_v6  ;;  %v458_v7 = vmul.f32 %v3668_v3, %v3675_v6 }
  0xd2   : > { %523 = vrot.lane.b32.xlu2 %v458_v7, %s3572_s13  ;;  %v328_v7 = vstv %s325_s23 }
  0xd3   : > { %v329_v19 = vmul.f32 %v328_v7, %v3786_v63 }
  0xd5   : > { %v3155_v21 = vrot.slane %v329_v19, 9 }
  0xd7   : > { %v3680_v8 = vpop.trf.xlu1  ;;  %v3800_v24 = vadd.f32 %v3155_v21, %v327_v18  ;;  %v3865_v18 = vstv %s3158_s26 }
  0xd8   : > { %6065 = vst [vmem:[#allocation11_spill] sm:$0xff] %v3680_v8  ;;  %v459_v40 = vmul.f32 %v3668_v3, %v3680_v8  ;;  %v686_v22 = vmul.f32 %v3865_v18, %v3675_v6 }
  0xd9   : > { %6091 = vst [vmem:[#allocation37_spill] sm:$0xff] %v3800_v24  ;;  %v344_v29 = vand.u32 2147483647, %v3800_v24 }
  0xdf   : > { %v3682_v9 = vpop.trf.xlu1 }
  0xe0   : > { %6066 = vst [vmem:[#allocation12_spill] sm:$0xff] %v3682_v9  ;;  %v460_v42 = vmul.f32 %v3668_v3, %v3682_v9 }
  0xe7   : > { %v3684_v10 = vpop.trf.xlu1 }
  0xe8   : > { %6067 = vst [vmem:[#allocation13_spill] sm:$0xff] %v3684_v10  ;;  %v461_v47 = vmul.f32 %v3668_v3, %v3684_v10 }
  0xef   : > { %v3686_v11 = vpop.trf.xlu1 }
  0xf0   : > { %6068 = vst [vmem:[#allocation14_spill] sm:$0xff] %v3686_v11  ;;  %v462_v50 = vmul.f32 %v3668_v3, %v3686_v11 }
  0xf6   : > { %3227 = vset.pattern.permute.xlu1 %v3574_v14 }
  0xf7   : > { %v3688_v12 = vpop.trf.xlu1 }
  0xf8   : > { %6069 = vst [vmem:[#allocation15_spill] sm:$0xff] %v3688_v12  ;;  %v463_v51 = vmul.f32 %v3668_v3, %v3688_v12 }
  0xff   : > { %v3690_v13 = vpop.trf.xlu1 }
 0x100   : > { %6070 = vst [vmem:[#allocation16_spill] sm:$0xff] %v3690_v13  ;;  %v464_v56 = vmul.f32 %v3668_v3, %v3690_v13 }
 0x107   : > { %v3693_v15 = vpop.trf.xlu1 }
 0x108   : > { %6071 = vst [vmem:[#allocation17_spill] sm:$0xff] %v3693_v15  ;;  %v465_v57 = vmul.f32 %v3668_v3, %v3693_v15 }
 0x10f   : > { %v3698_v23 = vpop.trf.xlu1 }
 0x110   : > { %6072 = vst [vmem:[#allocation18_spill] sm:$0xff] %v3698_v23  ;;  %v466_v27 = vmul.f32 %v3668_v3, %v3698_v23 }
 0x117   : > { %v3702_v30 = vpop.trf.xlu1 }
 0x118   : > { %6073 = vst [vmem:[#allocation19_spill] sm:$0xff] %v3702_v30  ;;  %v467_v28 = vmul.f32 %v3668_v3, %v3702_v30 }
 0x11f   : > { %v3704_v31 = vpop.trf.xlu1 }
 0x120   : > { %6074 = vst [vmem:[#allocation20_spill] sm:$0xff] %v3704_v31 }
 0x127   : > { %v3706_v32 = vpop.trf.xlu1 }
 0x128   : > { %6075 = vst [vmem:[#allocation21_spill] sm:$0xff] %v3706_v32 }
 0x12f   : > { %v3708_v33 = vpop.trf.xlu1 }
 0x130   : > { %6076 = vst [vmem:[#allocation22_spill] sm:$0xff] %v3708_v33  ;;  %v470_v59 = vmul.f32 %v3668_v3, %v3708_v33 }
 0x137   : > { %v3710_v34 = vpop.trf.xlu1 }
 0x138   : > { %6077 = vst [vmem:[#allocation23_spill] sm:$0xff] %v3710_v34 }
 0x13f   : > { %v3712_v35 = vpop.trf.xlu1 }
 0x140   : > { %6078 = vst [vmem:[#allocation24_spill] sm:$0xff] %v3712_v35  ;;  %v472_v21 = vmul.f32 %v3668_v3, %v3712_v35 }
 0x147   : > { %v3714_v36 = vpop.trf.xlu1 }
 0x148   : > { %6079 = vst [vmem:[#allocation25_spill] sm:$0xff] %v3714_v36  ;;  %v473_v37 = vmul.f32 %v3668_v3, %v3714_v36 }
 0x14a   : > { %553 = vrot.lane.b32.xlu0 %v473_v37, %s3572_s13  ;;  %v3813_v37 = vmul.f32 %v349_v25, %v344_v29  ;;  %v688_v29 = vmul.f32 %v3865_v18, %v3682_v9 }
 0x14c   : > { %6093 = vst [vmem:[#allocation39_spill] sm:$0xff] %v3813_v37 }
 0x14f   : > { %v3719_v38 = vpop.trf.xlu1 }
 0x150   : > { %v474_v39 = vmul.f32 %v3668_v3, %v3719_v38 }
 0x152   : > { %555 = vrot.lane.b32.xlu2 %v474_v39, %s3572_s13  ;;  %525 = vrot.lane.b32.xlu0 %v459_v40, %s3572_s13 }
 0x157   : > { %v3727_v41 = vpop.trf.xlu1 }
 0x158   : > { %6080 = vst [vmem:[#allocation26_spill] sm:$0xff] %v3727_v41  ;;  %v475_v43 = vmul.f32 %v3668_v3, %v3727_v41  ;;  %v703_v16 = vmul.f32 %v3865_v18, %v3727_v41 }
 0x15a   : > { %527 = vrot.lane.b32.xlu2 %v460_v42, %s3572_s13  ;;  %557 = vrot.lane.b32.xlu0 %v475_v43, %s3572_s13  ;;  %v3821_v43 = vpop.permute.xlu2 %521 }
 0x15f   : > { %v3735_v44 = vpop.trf.xlu1 }
 0x160   : > { %6081 = vst [vmem:[#allocation27_spill] sm:$0xff] %v3735_v44  ;;  %v476_v45 = vmul.f32 %v3668_v3, %v3735_v44 }
 0x162   : > { %559 = vrot.lane.b32.xlu2 %v476_v45, %s3572_s13 }
 0x167   : > { %v3740_v46 = vpop.trf.xlu1 }
 0x168   : > { %6082 = vst [vmem:[#allocation28_spill] sm:$0xff] %v3740_v46  ;;  %v477_v48 = vmul.f32 %v3668_v3, %v3740_v46 }
 0x16a   : > { %529 = vrot.lane.b32.xlu2 %v461_v47, %s3572_s13  ;;  %561 = vrot.lane.b32.xlu0 %v477_v48, %s3572_s13  ;;  %v468_v47 = vmul.f32 %v3668_v3, %v3704_v31  ;;  %v469_v48 = vmul.f32 %v3668_v3, %v3706_v32 }
 0x16f   : > { %v3748_v49 = vpop.trf.xlu1 }
 0x170   : > { %6083 = vst [vmem:[#allocation29_spill] sm:$0xff] %v3748_v49  ;;  %v478_v53 = vmul.f32 %v3668_v3, %v3748_v49  ;;  %v706_v58 = vmul.f32 %v3865_v18, %v3748_v49 }
 0x172   : > { %531 = vrot.lane.b32.xlu2 %v462_v50, %s3572_s13  ;;  %533 = vrot.lane.b32.xlu0 %v463_v51, %s3572_s13  ;;  %v3833_v50 = vpop.permute.xlu2 %523 }
 0x177   : > { %v3756_v52 = vpop.trf.xlu1 }
 0x178   : > { %6084 = vst [vmem:[#allocation30_spill] sm:$0xff] %v3756_v52  ;;  %v479_v54 = vmul.f32 %v3668_v3, %v3756_v52 }
 0x17a   : > { %563 = vrot.lane.b32.xlu2 %v478_v53, %s3572_s13  ;;  %565 = vrot.lane.b32.xlu0 %v479_v54, %s3572_s13 }
 0x17f   : > { %v3766_v55 = vpop.trf.xlu1 }
 0x180   : > { %6085 = vst [vmem:[#allocation31_spill] sm:$0xff] %v3766_v55  ;;  %v480_v61 = vmul.f32 %v3668_v3, %v3766_v55 }
 0x182   : > { %535 = vrot.lane.b32.xlu2 %v464_v56, %s3572_s13  ;;  %537 = vrot.lane.b32.xlu0 %v465_v57, %s3572_s13 }
 0x187   : > { %v3780_v60 = vpop.trf.xlu1 }
 0x188   : > { %6087 = vst [vmem:[#allocation33_spill] sm:$0xff] %v3780_v60  ;;  %v481_v0 = vmul.f32 %v3668_v3, %v3780_v60 }
 0x18a   : > { %567 = vrot.lane.b32.xlu2 %v480_v61, %s3572_s13  ;;  %569 = vrot.lane.b32.xlu0 %v481_v0, %s3572_s13  ;;  %v471_v61 = vmul.f32 %v3668_v3, %v3710_v34 }
 0x18f   : > { %v3804_v26 = vpop.trf.xlu1 }
 0x190   : > { %6092 = vst [vmem:[#allocation38_spill] sm:$0xff] %v3804_v26  ;;  %v482_v40 = vmul.f32 %v3668_v3, %v3804_v26 }
 0x192   : > { %539 = vrot.lane.b32.xlu2 %v466_v27, %s3572_s13  ;;  %541 = vrot.lane.b32.xlu0 %v467_v28, %s3572_s13  ;;  %v685_v28 = vmul.f32 %v3865_v18, %v3670_v4 }
 0x197   : > { %v3815_v39 = vpop.trf.xlu1 }
 0x198   : > { %6094 = vst [vmem:[#allocation40_spill] sm:$0xff] %v3815_v39  ;;  %v483_v42 = vmul.f32 %v3668_v3, %v3815_v39 }
 0x19a   : > { %571 = vrot.lane.b32.xlu2 %v482_v40, %s3572_s13  ;;  %573 = vrot.lane.b32.xlu0 %v483_v42, %s3572_s13  ;;  %v687_v42 = vmul.f32 %v3865_v18, %v3680_v8 }
 0x19f   : > { %v3825_v45 = vpop.trf.xlu1 }
 0x1a0   : > { %6095 = vst [vmem:[#allocation41_spill] sm:$0xff] %v3825_v45  ;;  %v484_v53 = vmul.f32 %v3668_v3, %v3825_v45 }
 0x1a2   : > { %543 = vrot.lane.b32.xlu2 %v468_v47, %s3572_s13  ;;  %545 = vrot.lane.b32.xlu0 %v469_v48, %s3572_s13  ;;  %v690_v47 = vmul.f32 %v3865_v18, %v3686_v11 }
 0x1a7   : > { %v3835_v51 = vpop.trf.xlu1 }
 0x1a8   : > { %6096 = vst [vmem:[#allocation42_spill] sm:$0xff] %v3835_v51  ;;  %v485_v54 = vmul.f32 %v3668_v3, %v3835_v51 }
 0x1aa   : > { %575 = vrot.lane.b32.xlu2 %v484_v53, %s3572_s13  ;;  %577 = vrot.lane.b32.xlu0 %v485_v54, %s3572_s13  ;;  %v689_v54 = vmul.f32 %v3865_v18, %v3684_v10 }
 0x1ac   : > { %v3843_v56 = vpop.permute.xlu2 %555 }
 0x1af   : > { %v3845_v57 = vpop.trf.xlu1 }
 0x1b0   : > { %6097 = vst [vmem:[#allocation43_spill] sm:$0xff] %v3845_v57  ;;  %v486_v1 = vmul.f32 %v3668_v3, %v3845_v57 }
 0x1b2   : > { %547 = vrot.lane.b32.xlu2 %v470_v59, %s3572_s13  ;;  %549 = vrot.lane.b32.xlu0 %v471_v61, %s3572_s13  ;;  %v692_v59 = vmul.f32 %v3865_v18, %v3690_v13  ;;  %v3909_v61 = vstv %s3896_s27 }
 0x1b3   : > { %v450_v24 = vmul.f32 %v3909_v61, %v3815_v39 }
 0x1b4   : > { %v3853_v62 = vpop.permute.xlu2 %527 }
 0x1b7   : > { %v3855_v0 = vpop.trf.xlu1 }
 0x1b8   : > { %6098 = vst [vmem:[#allocation44_spill] sm:$0xff] %v3855_v0  ;;  %v487_v5 = vmul.f32 %v3668_v3, %v3855_v0 }
 0x1ba   : > { %579 = vrot.lane.b32.xlu2 %v486_v1, %s3572_s13  ;;  %581 = vrot.lane.b32.xlu0 %v487_v5, %s3572_s13  ;;  %v444_v1 = vmul.f32 %v3909_v61, %v3740_v46 }
 0x1bc   : > { %v3863_v7 = vpop.permute.xlu2 %559  ;;  %v3869_v20 = vpop.permute.xlu0 %553 }
 0x1bf   : > { %v3867_v19 = vpop.trf.xlu1 }
 0x1c0   : > { %6099 = vst [vmem:[#allocation45_spill] sm:$0xff] %v3867_v19  ;;  %v488_v25 = vmul.f32 %v3668_v3, %v3867_v19 }
 0x1c2   : > { %551 = vrot.lane.b32.xlu2 %v472_v21, %s3572_s13  ;;  %751 = vrot.lane.b32.xlu0 %v686_v22, %s3572_s13  ;;  %v691_v22 = vmul.f32 %v3865_v18, %v3688_v12 }
 0x1c3   : > { %583 = vrot.lane.b32.xlu1 %v488_v25, %s3572_s13  ;;  %v694_v25 = vmul.f32 %v3865_v18, %v3698_v23 }
 0x1c4   : > { %v3880_v27 = vpop.permute.xlu2 %529  ;;  %v3886_v40 = vpop.permute.xlu0 %525 }
 0x1ca   : > { %749 = vrot.lane.b32.xlu2 %v685_v28, %s3572_s13  ;;  %755 = vrot.lane.b32.xlu0 %v688_v29, %s3572_s13  ;;  %v447_v28 = vmul.f32 %v3909_v61, %v3766_v55 }
 0x1cc   : > { %v3890_v3 = vpop.permute.xlu2 %531  ;;  %v3900_v48 = vpop.permute.xlu0 %557 }
 0x1d2   : > { %753 = vrot.lane.b32.xlu2 %v687_v42, %s3572_s13  ;;  %759 = vrot.lane.b32.xlu0 %v690_v47, %s3572_s13 }
 0x1d4   : > { %v3902_v53 = vpop.permute.xlu2 %563 }
 0x1da   : > { %757 = vrot.lane.b32.xlu2 %v689_v54, %s3572_s13  ;;  %763 = vrot.lane.b32.xlu0 %v692_v59, %s3572_s13  ;;  %v693_v54 = vmul.f32 %v3865_v18, %v3693_v15  ;;  %v696_v59 = vmul.f32 %v3865_v18, %v3704_v31 }
 0x1dc   : > { %v3915_v5 = vpop.permute.xlu2 %535  ;;  %v562_v14 = vpop.permute.xlu0 %561 }
 0x1dd   : > { %v637_v21 = vadd.f32 %v562_v14, %v444_v1 }
 0x1df   : > { %979 = vperm.xlu1 %3227, %v637_v21   ;;  %v695_v21 = vmul.f32 %v3865_v18, %v3702_v30 }
 0x1e2   : > { %761 = vrot.lane.b32.xlu2 %v691_v22, %s3572_s13  ;;  %767 = vrot.lane.b32.xlu0 %v694_v25, %s3572_s13  ;;  %v698_v22 = vmul.f32 %v3865_v18, %v3708_v33 }
 0x1e4   : > { %v568_v29 = vpop.permute.xlu2 %567  ;;  %v3925_v42 = vpop.permute.xlu0 %533 }
 0x1e5   : > { %v640_v47 = vadd.f32 %v568_v29, %v447_v28  ;;  %v697_v29 = vmul.f32 %v3865_v18, %v3706_v32 }
 0x1e7   : > { %994 = vperm.xlu1 %3227, %v640_v47   ;;  %v700_v47 = vmul.f32 %v3865_v18, %v3712_v35 }
 0x1ea   : > { %765 = vrot.lane.b32.xlu2 %v693_v54, %s3572_s13  ;;  %771 = vrot.lane.b32.xlu0 %v696_v59, %s3572_s13 }
 0x1ec   : > { %v3933_v1 = vpop.permute.xlu2 %539  ;;  %v3935_v14 = vpop.permute.xlu0 %565 }
 0x1f2   : > { %769 = vrot.lane.b32.xlu2 %v695_v21, %s3572_s13  ;;  %775 = vrot.lane.b32.xlu0 %v698_v22, %s3572_s13  ;;  %v699_v21 = vmul.f32 %v3865_v18, %v3710_v34  ;;  %v702_v22 = vmul.f32 %v3865_v18, %v3719_v38 }
 0x1f4   : > { %v3943_v25 = vpop.permute.xlu2 %571  ;;  %v3945_v28 = vpop.permute.xlu0 %537 }
 0x1f5   : > { %6100 = vst [vmem:[#allocation46_spill] sm:$0xff] %v3943_v25 }
 0x1fa   : > { %773 = vrot.lane.b32.xlu2 %v697_v29, %s3572_s13  ;;  %779 = vrot.lane.b32.xlu0 %v700_v47, %s3572_s13  ;;  %v701_v29 = vmul.f32 %v3865_v18, %v3714_v36  ;;  %v704_v47 = vmul.f32 %v3865_v18, %v3735_v44 }
 0x1fc   : > { %v3953_v54 = vpop.permute.xlu2 %543  ;;  %v3955_v59 = vpop.permute.xlu0 %569 }
 0x202   : > { %777 = vrot.lane.b32.xlu2 %v699_v21, %s3572_s13  ;;  %783 = vrot.lane.b32.xlu0 %v702_v22, %s3572_s13 }
 0x204   : > { %v3963_v17 = vpop.permute.xlu2 %575  ;;  %v3965_v37 = vpop.permute.xlu0 %541 }
 0x20a   : > { %781 = vrot.lane.b32.xlu2 %v701_v29, %s3572_s13  ;;  %787 = vrot.lane.b32.xlu0 %v704_v47, %s3572_s13  ;;  %v453_v29 = vmul.f32 %v3909_v61, %v3845_v57 }
 0x20c   : > { %v3975_v21 = vpop.permute.xlu2 %547  ;;  %v574_v22 = vpop.permute.xlu0 %573 }
 0x20d   : > { %v643_v2 = vadd.f32 %v574_v22, %v450_v24  ;;  %v708_v24 = vmul.f32 %v3865_v18, %v3766_v55  ;;  %v707_v22 = vmul.f32 %v3865_v18, %v3756_v52 }
 0x20f   : > { %1009 = vperm.xlu1 %3227, %v643_v2   ;;  %v705_v2 = vmul.f32 %v3865_v18, %v3740_v46  ;;  %v709_v46 = vmul.f32 %v3865_v18, %v3780_v60 }
 0x212   : > { %785 = vrot.lane.b32.xlu2 %v703_v16, %s3572_s13  ;;  %791 = vrot.lane.b32.xlu0 %v706_v58, %s3572_s13 }
 0x214   : > { %v580_v47 = vpop.permute.xlu2 %579  ;;  %v3985_v63 = vpop.permute.xlu0 %545 }
 0x215   : > { %v646_v25 = vadd.f32 %v580_v47, %v453_v29  ;;  %v4001_v29 = vstv %s649_s28 }
 0x216   : > { %v651_v47 = vmul.f32 %v4001_v29, %v3670_v4 }
 0x217   : > { %1024 = vperm.xlu1 %3227, %v646_v25   ;;  %v710_v25 = vmul.f32 %v3865_v18, %v3804_v26  ;;  %v711_v26 = vmul.f32 %v3865_v18, %v3815_v39 }
 0x21a   : > { %789 = vrot.lane.b32.xlu2 %v705_v2, %s3572_s13  ;;  %795 = vrot.lane.b32.xlu0 %v708_v24, %s3572_s13 }
 0x21c   : > { %v3993_v58 = vpop.permute.xlu2 %551  ;;  %v3995_v16 = vpop.permute.xlu0 %577 }
 0x21d   : > { %6101 = vst [vmem:[#allocation47_spill] sm:$0xff] %v3995_v16  ;;  %v712_v16 = vmul.f32 %v3865_v18, %v3825_v45 }
 0x222   : > { %793 = vrot.lane.b32.xlu2 %v707_v22, %s3572_s13  ;;  %799 = vrot.lane.b32.xlu0 %v710_v25, %s3572_s13 }
 0x224   : > { %v750_v2 = vpop.permute.xlu2 %749  ;;  %v4007_v24 = vpop.permute.xlu0 %549 }
 0x225   : > { %v845_v55 = vadd.f32 %v750_v2, %v651_v47 }
 0x227   : > { %1309 = vperm.xlu1 %3227, %v845_v55   ;;  %v714_v55 = vmul.f32 %v3865_v18, %v3845_v57  ;;  %v654_v57 = vmul.f32 %v4001_v29, %v3682_v9 }
 0x22a   : > { %797 = vrot.lane.b32.xlu2 %v709_v46, %s3572_s13  ;;  %803 = vrot.lane.b32.xlu0 %v712_v16, %s3572_s13  ;;  %v716_v46 = vmul.f32 %v3865_v18, %v3867_v19  ;;  %v713_v16 = vmul.f32 %v3865_v18, %v3835_v51  ;;  %v715_v19 = vmul.f32 %v3865_v18, %v3855_v0 }
 0x22c   : > { %v4015_v22 = vpop.permute.xlu2 %753  ;;  %v4017_v25 = vpop.permute.xlu0 %581 }
 0x22d   : > { %6102 = vst [vmem:[#allocation48_spill] sm:$0xff] %v4015_v22  ;;  %v425_v22 = vmul.f32 %v3909_v61, %v3675_v6 }
 0x232   : > { %801 = vrot.lane.b32.xlu2 %v711_v26, %s3572_s13  ;;  %807 = vrot.lane.b32.xlu0 %v714_v55, %s3572_s13 }
 0x234   : > { %v4025_v47 = vpop.permute.xlu2 %757  ;;  %v4027_v2 = vpop.permute.xlu0 %751 }
 0x235   : > { %6103 = vst [vmem:[#allocation49_spill] sm:$0xff] %v4025_v47  ;;  %v618_v47 = vadd.f32 %v3833_v50, %v425_v22  ;;  %v428_v50 = vmul.f32 %v3909_v61, %v3684_v10 }
 0x23a   : > { %805 = vrot.lane.b32.xlu2 %v713_v16, %s3572_s13  ;;  %811 = vrot.lane.b32.xlu0 %v716_v46, %s3572_s13  ;;  %v657_v46 = vmul.f32 %v4001_v29, %v3688_v12 }
 0x23c   : > { %v762_v26 = vpop.permute.xlu2 %761  ;;  %v756_v39 = vpop.permute.xlu0 %755 }
 0x23d   : > { %v848_v55 = vadd.f32 %v756_v39, %v654_v57  ;;  %v851_v39 = vadd.f32 %v762_v26, %v657_v46  ;;  %v424_v57 = vmul.f32 %v3909_v61, %v3670_v4  ;;  %v426_v26 = vmul.f32 %v3909_v61, %v3680_v8 }
 0x23f   : > { %1324 = vperm.xlu1 %3227, %v848_v55   ;;  %v617_v18 = vadd.f32 %v3821_v43, %v424_v57  ;;  %v430_v55 = vmul.f32 %v3909_v61, %v3688_v12  ;;  %v619_v46 = vadd.f32 %v3886_v40, %v426_v26  ;;  %v660_v43 = vmul.f32 %v4001_v29, %v3698_v23 }
 0x242   : > { %809 = vrot.lane.b32.xlu2 %v715_v19, %s3572_s13  ;;  %884 = vperm.xlu0 %3226, %v618_v47   ;;  %v621_v19 = vadd.f32 %v3880_v27, %v428_v50 }
 0x244   : > { %v4045_v16 = vpop.permute.xlu2 %765  ;;  %v4047_v51 = vpop.permute.xlu0 %759 }
 0x247   : > { %1339 = vperm.xlu1 %3227, %v851_v39   ;;  %v623_v39 = vadd.f32 %v3925_v42, %v430_v55  ;;  %v663_v42 = vmul.f32 %v4001_v29, %v3706_v32 }
 0x24a   : > { %879 = vperm.xlu2 %3225, %v617_v18   ;;  %899 = vperm.xlu0 %3226, %v621_v19   ;;  %v427_v18 = vmul.f32 %v3909_v61, %v3682_v9  ;;  %v432_v19 = vmul.f32 %v3909_v61, %v3693_v15 }
 0x24c   : > { %v4055_v22 = vpop.permute.xlu2 %769  ;;  %v4057_v47 = vpop.permute.xlu0 %763  ;;  %v620_v12 = vadd.f32 %v3853_v62, %v427_v18  ;;  %v625_v40 = vadd.f32 %v3945_v28, %v432_v19 }
 0x252   : > { %889 = vperm.xlu2 %3225, %v619_v46   ;;  %909 = vperm.xlu0 %3226, %v623_v39   ;;  %v429_v39 = vmul.f32 %v3909_v61, %v3686_v11 }
 0x254   : > { %v774_v27 = vpop.permute.xlu2 %773  ;;  %v768_v57 = vpop.permute.xlu0 %767  ;;  %v622_v62 = vadd.f32 %v3890_v3, %v429_v39  ;;  %v438_v39 = vmul.f32 %v3909_v61, %v3710_v34 }
 0x255   : > { %v854_v50 = vadd.f32 %v768_v57, %v660_v43  ;;  %v857_v46 = vadd.f32 %v774_v27, %v663_v42  ;;  %v434_v43 = vmul.f32 %v3909_v61, %v3702_v30  ;;  %v431_v27 = vmul.f32 %v3909_v61, %v3690_v13 }
 0x257   : > { %1354 = vperm.xlu1 %3227, %v854_v50   ;;  %v436_v50 = vmul.f32 %v3909_v61, %v3706_v32  ;;  %v624_v18 = vadd.f32 %v3915_v5, %v431_v27  ;;  %v631_v5 = vadd.f32 %v4007_v24, %v438_v39 }
 0x259   : > { %v629_v19 = vadd.f32 %v3985_v63, %v436_v50  ;;  %v669_v63 = vmul.f32 %v4001_v29, %v3727_v41  ;;  %v440_v50 = vmul.f32 %v3909_v61, %v3714_v36 }
 0x25a   : > { %894 = vperm.xlu2 %3225, %v620_v12   ;;  %919 = vperm.xlu0 %3226, %v625_v40   ;;  %v627_v12 = vadd.f32 %v3965_v37, %v434_v43  ;;  %v666_v37 = vmul.f32 %v4001_v29, %v3712_v35 }
 0x25c   : > { %v4075_v26 = vpop.permute.xlu2 %777  ;;  %v4077_v55 = vpop.permute.xlu0 %771 }
 0x25f   : > { %1369 = vperm.xlu1 %3227, %v857_v46   ;;  %v433_v46 = vmul.f32 %v3909_v61, %v3698_v23 }
 0x261   : > { %v626_v43 = vadd.f32 %v3933_v1, %v433_v46  ;;  %v633_v1 = vadd.f32 %v3869_v20, %v440_v50  ;;  %v672_v20 = vmul.f32 %v4001_v29, %v3748_v49 }
 0x262   : > { %904 = vperm.xlu2 %3225, %v622_v62   ;;  %929 = vperm.xlu0 %3226, %v627_v12  }
 0x264   : > { %v4085_v28 = vpop.permute.xlu2 %781  ;;  %v4087_v57 = vpop.permute.xlu0 %775 }
 0x26a   : > { %914 = vperm.xlu2 %3225, %v624_v18   ;;  %939 = vperm.xlu0 %3226, %v629_v19   ;;  %v435_v18 = vmul.f32 %v3909_v61, %v3704_v31 }
 0x26c   : > { %v786_v3 = vpop.permute.xlu2 %785  ;;  %v780_v40 = vpop.permute.xlu0 %779  ;;  %v628_v24 = vadd.f32 %v3953_v54, %v435_v18 }
 0x26d   : > { %v860_v42 = vadd.f32 %v780_v40, %v666_v37  ;;  %v863_v27 = vadd.f32 %v786_v3, %v669_v63  ;;  %v442_v3 = vmul.f32 %v3909_v61, %v3727_v41  ;;  %v437_v40 = vmul.f32 %v3909_v61, %v3708_v33 }
 0x26e   : > { %v439_v63 = vmul.f32 %v3909_v61, %v3712_v35  ;;  %v6113_v35 = vld [vmem:[#allocation36_spill] sm:$0xff] }
 0x26f   : > { %1384 = vperm.xlu1 %3227, %v860_v42   ;;  %v635_v42 = vadd.f32 %v3900_v48, %v442_v3  ;;  %v630_v46 = vadd.f32 %v3975_v21, %v437_v40  ;;  %v675_v21 = vmul.f32 %v4001_v29, %v3780_v60  ;;  %v448_v3 = vmul.f32 %v3909_v61, %v3780_v60  ;;  %v6112_v60 = vld [vmem:[#allocation32_spill] sm:$0xff] }
 0x270   : > { %v632_v48 = vadd.f32 %v3993_v58, %v439_v63 }
 0x271   : > { %v641_v58 = vadd.f32 %v3955_v59, %v448_v3 }
 0x272   : > { %924 = vperm.xlu2 %3225, %v626_v43   ;;  %949 = vperm.xlu0 %3226, %v631_v5   ;;  %v445_v5 = vmul.f32 %v3909_v61, %v3748_v49 }
 0x274   : > { %v4105_v62 = vpop.permute.xlu2 %789  ;;  %v4107_v12 = vpop.permute.xlu0 %783 }
 0x277   : > { %1399 = vperm.xlu1 %3227, %v863_v27   ;;  %v638_v27 = vadd.f32 %v3902_v53, %v445_v5 }
 0x27a   : > { %934 = vperm.xlu2 %3225, %v628_v24   ;;  %959 = vperm.xlu0 %3226, %v633_v1   ;;  %v441_v24 = vmul.f32 %v3909_v61, %v3719_v38 }
 0x27c   : > { %v4115_v19 = vpop.permute.xlu2 %793  ;;  %v4117_v37 = vpop.permute.xlu0 %787  ;;  %v634_v53 = vadd.f32 %v3843_v56, %v441_v24  ;;  %v678_v56 = vmul.f32 %v4001_v29, %v3825_v45 }
 0x282   : > { %944 = vperm.xlu2 %3225, %v630_v46   ;;  %969 = vperm.xlu0 %3226, %v635_v42   ;;  %v584_v46 = vpop.permute.xlu1 %583 }
 0x284   : > { %v798_v54 = vpop.permute.xlu2 %797  ;;  %v792_v39 = vpop.permute.xlu0 %791 }
 0x285   : > { %v866_v43 = vadd.f32 %v792_v39, %v672_v20  ;;  %v869_v1 = vadd.f32 %v798_v54, %v675_v21  ;;  %v443_v20 = vmul.f32 %v3909_v61, %v3735_v44  ;;  %v451_v54 = vmul.f32 %v3909_v61, %v3825_v45 }
 0x286   : > { %v454_v21 = vmul.f32 %v3909_v61, %v3855_v0 }
 0x287   : > { %1414 = vperm.xlu1 %3227, %v866_v43   ;;  %v636_v39 = vadd.f32 %v3863_v7, %v443_v20  ;;  %v644_v43 = vadd.f32 %v3963_v17, %v451_v54  ;;  %v652_v54 = vmul.f32 %v4001_v29, %v3675_v6 }
 0x288   : > { %v647_v17 = vadd.f32 %v4017_v25, %v454_v21  ;;  %v6105_v25 = vld [vmem:[#allocation46_spill] sm:$0xff] }
 0x28a   : > { %954 = vperm.xlu2 %3225, %v632_v48   ;;  %984 = vperm.xlu0 %3226, %v638_v27   ;;  %v4157_v63 = vpop.permute.xlu1 %979  ;;  %v446_v48 = vmul.f32 %v3909_v61, %v3756_v52 }
 0x28c   : > { %v4135_v50 = vpop.permute.xlu2 %801  ;;  %v4137_v18 = vpop.permute.xlu0 %795  ;;  %v639_v7 = vadd.f32 %v3935_v14, %v446_v48  ;;  %v6106_v48 = vld [vmem:[#allocation42_spill] sm:$0xff] }
 0x28d   : > { %v452_v21 = vmul.f32 %v3909_v61, %v6106_v48 }
 0x28f   : > { %1429 = vperm.xlu1 %3227, %v869_v1   ;;  %v681_v1 = vmul.f32 %v4001_v29, %v3855_v0 }
 0x292   : > { %964 = vperm.xlu2 %3225, %v634_v53   ;;  %999 = vperm.xlu0 %3226, %v641_v58   ;;  %v6104_v58 = vld [vmem:[#allocation38_spill] sm:$0xff]  ;;  %v4175_v14 = vpop.permute.xlu1 %994 }
 0x293   : > { %v449_v20 = vmul.f32 %v3909_v61, %v6104_v58 }
 0x294   : > { %v4145_v40 = vpop.permute.xlu2 %805  ;;  %v4147_v42 = vpop.permute.xlu0 %799 }
 0x29a   : > { %974 = vperm.xlu2 %3225, %v636_v39   ;;  %1014 = vperm.xlu0 %3226, %v644_v43   ;;  %v642_v39 = vadd.f32 %v6105_v25, %v449_v20  ;;  %v846_v43 = vadd.f32 %v4027_v2, %v652_v54  ;;  %v655_v2 = vmul.f32 %v4001_v29, %v3684_v10  ;;  %v298_v54 = vstv %s295_s5  ;;  %v6110_v25 = vld [vmem:[#allocation45_spill] sm:$0xff] }
 0x29c   : > { %v810_v59 = vpop.permute.xlu2 %809  ;;  %v804_v5 = vpop.permute.xlu0 %803 }
 0x29d   : > { %v872_v27 = vadd.f32 %v804_v5, %v678_v56  ;;  %v875_v53 = vadd.f32 %v810_v59, %v681_v1  ;;  %v4180_v56 = vstv %s3772_s20 }
 0x29e   : > { %v1721_v0 = vmul.f32 %v4180_v56, %v3684_v10 }
 0x29f   : > { %1444 = vperm.xlu1 %3227, %v872_v27   ;;  %v1718_v27 = vmul.f32 %v4180_v56, %v3675_v6 }
 0x2a2   : > { %989 = vperm.xlu2 %3225, %v639_v7   ;;  %1029 = vperm.xlu0 %3226, %v647_v17   ;;  %v4192_v7 = vpop.permute.xlu1 %1009  ;;  %v6108_v17 = vld [vmem:[#allocation47_spill] sm:$0xff] }
 0x2a3   : > { %6107 = vst [vmem:[#allocation46_spill] sm:$0xff] %v4192_v7  ;;  %v645_v1 = vadd.f32 %v6108_v17, %v452_v21  ;;  %v658_v21 = vmul.f32 %v4001_v29, %v3690_v13  ;;  %v296_v17 = vstv %s293_s6 }
 0x2a4   : > { %v4167_v24 = vpop.permute.xlu2 %879  ;;  %v4169_v3 = vpop.permute.xlu0 %807 }
 0x2a7   : > { %1459 = vperm.xlu1 %3227, %v875_v53   ;;  %v6109_v53 = vld [vmem:[#allocation49_spill] sm:$0xff] }
 0x2a8   : > { %v849_v20 = vadd.f32 %v6109_v53, %v655_v2  ;;  %v307_v2 = vstv %s306_s7 }
 0x2a9   : > { %v308_v49 = vmul.f32 %v307_v2, %v6112_v60  ;;  %v661_v60 = vmul.f32 %v4001_v29, %v3702_v30 }
 0x2aa   : > { %1004 = vperm.xlu2 %3225, %v642_v39   ;;  %1314 = vperm.xlu0 %3226, %v846_v43   ;;  %v455_v39 = vmul.f32 %v3909_v61, %v6110_v25  ;;  %v4210_v61 = vpop.permute.xlu1 %1024 }
 0x2ac   : > { %v4182_v59 = vpop.permute.xlu2 %889  ;;  %v4184_v5 = vpop.permute.xlu0 %811  ;;  %v648_v53 = vadd.f32 %v584_v46, %v455_v39  ;;  %v653_v39 = vmul.f32 %v4001_v29, %v3680_v8 }
 0x2af   : > { %1783 = vrot.lane.b32.xlu1 %v1718_v27, %s3572_s13  ;;  %v6111_v27 = vld [vmem:[#allocation34_spill] sm:$0xff] }
 0x2b0   : > { %v299_v45 = vmul.f32 %v298_v54, %v6111_v27  ;;  %v297_v41 = vmul.f32 %v296_v17, %v6111_v27  ;;  %v855_v27 = vadd.f32 %v4055_v22, %v661_v60  ;;  %v6115_v17 = vld [vmem:[#allocation35_spill] sm:$0xff]  ;;  %v656_v22 = vmul.f32 %v4001_v29, %v3686_v11 }
 0x2b2   : > { %1019 = vperm.xlu2 %3225, %v645_v1   ;;  %1329 = vperm.xlu0 %3226, %v849_v20   ;;  %v311_v1 = vstv %s310_s9  ;;  %v852_v20 = vadd.f32 %v4057_v47, %v658_v21  ;;  %v3151_v10 = vrot.slane %v299_v45, 9  ;;  %v4228_v21 = vpop.permute.xlu1 %1309 }
 0x2b3   : > { %v312_v54 = vmul.f32 %v311_v1, %v6113_v35  ;;  %v6114_v35 = vld [vmem:[#allocation48_spill] sm:$0xff]  ;;  %v6116_v1 = vunpack.c.0.s8 %v6115_v17 }
 0x2b4   : > { %v4201_v43 = vpop.permute.xlu2 %894  ;;  %v885_v6 = vpop.permute.xlu0 %884  ;;  %v304_v46 = vadd.f32 %v3151_v10, %v297_v41  ;;  %v847_v45 = vadd.f32 %v6114_v35, %v653_v39  ;;  %v850_v39 = vadd.f32 %v4047_v51, %v656_v22 }
 0x2b5   : > { %v313_v47 = vadd.f32 %v312_v54, %v308_v49  ;;  %v1727_v49 = vmul.f32 %v4180_v56, %v3702_v30 }
 0x2b6   : > { %v314_v2 = vand.u32 2147483647, %v304_v46  ;;  %v1039_v54 = vperm.slane %v304_v46, 2 }
 0x2b7   : > { %1789 = vrot.lane.b32.xlu1 %v1721_v0, %s3572_s13  ;;  %v1724_v0 = vmul.f32 %v4180_v56, %v3690_v13 }
 0x2ba   : > { %1034 = vperm.xlu2 %3225, %v648_v53   ;;  %1344 = vperm.xlu0 %3226, %v852_v20   ;;  %v319_v53 = vperm.slane %v313_v47, %v6116_v1  ;;  %v1038_v47 = vperm.slane %v304_v46, 0  ;;  %v4245_v35 = vpop.permute.xlu1 %1324 }
 0x2bb   : > { %6117 = vst [vmem:[#allocation47_spill] sm:$0xff] %v4245_v35 }
 0x2bc   : > { %v4215_v32 = vpop.permute.xlu2 %904  ;;  %v4217_v7 = vpop.permute.xlu0 %899  ;;  %v321_v20 = vmul.f32 %v319_v53, %v314_v2  ;;  %v4249_v17 = vperm.slane %v1038_v47, 0 }
 0x2be   : > { %v1109_v2 = vperm.slane %v321_v20, 0  ;;  %v1046_v22 = vmul.f32 %v4249_v17, %v885_v6 }
 0x2bf   : > { %1795 = vrot.lane.b32.xlu1 %v1724_v0, %s3572_s13  ;;  %v664_v0 = vmul.f32 %v4001_v29, %v3708_v33 }
 0x2c1   : > { %v858_v60 = vadd.f32 %v4087_v57, %v664_v0  ;;  %v1730_v57 = vmul.f32 %v4180_v56, %v3708_v33  ;;  %v4267_v0 = vperm.slane %v1109_v2, 0 }
 0x2c2   : > { %1319 = vperm.xlu2 %3225, %v847_v45   ;;  %1359 = vperm.xlu0 %3226, %v855_v27   ;;  %v4247_v45 = vperm.slane %v1039_v54, 0  ;;  %v1110_v27 = vperm.slane %v321_v20, 2  ;;  %v659_v54 = vmul.f32 %v4001_v29, %v3693_v15  ;;  %v667_v20 = vmul.f32 %v4001_v29, %v3714_v36  ;;  %v4279_v2 = vpop.permute.xlu1 %1339 }
 0x2c3   : > { %6118 = vst [vmem:[#allocation49_spill] sm:$0xff] %v4279_v2  ;;  %v1050_v2 = vmul.f32 %v4249_v17, %v4201_v43 }
 0x2c4   : > { %v4232_v10 = vpop.permute.xlu2 %914  ;;  %v4234_v41 = vpop.permute.xlu0 %909  ;;  %v1047_v1 = vmul.f32 %v4247_v45, %v885_v6  ;;  %v1045_v51 = vmul.f32 %v4247_v45, %v4167_v24  ;;  %v4260_v46 = vperm.slane %v1110_v27, 0  ;;  %v853_v47 = vadd.f32 %v4045_v16, %v659_v54 }
 0x2c5   : > { %v1049_v30 = vmul.f32 %v4247_v45, %v4182_v59  ;;  %v1117_v6 = vsub.f32 %v1046_v22, %v4267_v0  ;;  %v662_v16 = vmul.f32 %v4001_v29, %v3704_v31  ;;  %v670_v54 = vmul.f32 %v4001_v29, %v3735_v44 }
 0x2c6   : > { %v1118_v27 = vsub.f32 %v1047_v1, %v4260_v46  ;;  %v1116_v33 = vsub.f32 %v1045_v51, %v4260_v46  ;;  %v1051_v22 = vmul.f32 %v4247_v45, %v4201_v43  ;;  %v1055_v43 = vmul.f32 %v4247_v45, %v4215_v32 }
 0x2c7   : > { %1801 = vrot.lane.b32.xlu1 %v1727_v49, %s3572_s13  ;;  %v864_v13 = vadd.f32 %v4117_v37, %v670_v54  ;;  %v1121_v37 = vsub.f32 %v1050_v2, %v4267_v0 }
 0x2c8   : > { %v1185_v1 = vmul.f32 1.442695, %v1118_v27  ;;  %v856_v27 = vadd.f32 %v4077_v55, %v662_v16 }
 0x2ca   : > { %1334 = vperm.xlu2 %3225, %v850_v39   ;;  %1374 = vperm.xlu0 %3226, %v858_v60   ;;  %v861_v39 = vadd.f32 %v4085_v28, %v667_v20  ;;  %v1044_v60 = vmul.f32 %v4249_v17, %v4167_v24  ;;  %v1048_v24 = vmul.f32 %v4249_v17, %v4182_v59  ;;  %v1181_v20 = vmul.f32 1.442695, %v1116_v33  ;;  %v4312_v16 = vpop.permute.xlu1 %1354 }
 0x2cb   : > { %v1053_v59 = vmul.f32 %v4247_v45, %v4217_v7  ;;  %3228 = vpow2.f32 %v1185_v1  ;;  %6119 = vst [vmem:[#allocation34_spill] sm:$0xff] %v4312_v16 }
 0x2cc   : > { %v4252_v53 = vpop.permute.xlu2 %924  ;;  %v4254_v49 = vpop.permute.xlu0 %919  ;;  %v1115_v28 = vsub.f32 %v1044_v60, %v4267_v0  ;;  %v1183_v60 = vmul.f32 1.442695, %v1117_v6  ;;  %v1119_v35 = vsub.f32 %v1048_v24, %v4267_v0  ;;  %3230 = vpow2.f32 %v1181_v20 }
 0x2cd   : > { %v1122_v6 = vsub.f32 %v1051_v22, %v4260_v46  ;;  %v1124_v55 = vsub.f32 %v1053_v59, %v4260_v46  ;;  %v1057_v24 = vmul.f32 %v4247_v45, %v4234_v41  ;;  %v1054_v20 = vmul.f32 %v4249_v17, %v4215_v32 }
 0x2ce   : > { %v1179_v33 = vmul.f32 1.442695, %v1115_v28  ;;  %3232 = vpow2.f32 %v1183_v60  ;;  %v1187_v28 = vmul.f32 1.442695, %v1119_v35  ;;  %v1736_v22 = vmul.f32 %v4180_v56, %v3735_v44 }
 0x2cf   : > { %1807 = vrot.lane.b32.xlu1 %v1730_v57, %s3572_s13  ;;  %v1193_v2 = vmul.f32 1.442695, %v1122_v6  ;;  %v1056_v60 = vmul.f32 %v4249_v17, %v4234_v41  ;;  %v1126_v32 = vsub.f32 %v1055_v43, %v4260_v46 }
 0x2d0   : > { %3234 = vpow2.f32 %v1179_v33  ;;  %v1191_v33 = vmul.f32 1.442695, %v1121_v37 }
 0x2d1   : > { %v4327_v35 = vpop.eup %3228  ;;  %v1127_v43 = vsub.f32 %v1056_v60, %v4267_v0 }
 0x2d2   : > { %1349 = vperm.xlu2 %3225, %v853_v47   ;;  %1389 = vperm.xlu0 %3226, %v861_v39   ;;  %v1733_v47 = vmul.f32 %v4180_v56, %v3714_v36  ;;  %v1120_v39 = vsub.f32 %v1049_v30, %v4260_v46  ;;  %v1052_v30 = vmul.f32 %v4249_v17, %v4217_v7  ;;  %v4333_v59 = vpop.eup %3230 }
 0x2d3   : > { %6120 = vst [vmem:[#allocation32_spill] sm:$0xff] %v4327_v35  ;;  %v1644_v41 = vadd.f32 %v4333_v59, %v4327_v35 }
 0x2d4   : > { %v4286_v57 = vpop.permute.xlu2 %934  ;;  %v4288_v51 = vpop.permute.xlu0 %929  ;;  %v1189_v36 = vmul.f32 1.442695, %v1120_v39  ;;  %v1123_v7 = vsub.f32 %v1052_v30, %v4267_v0  ;;  %v1197_v39 = vmul.f32 1.442695, %v1124_v55  ;;  %v1125_v55 = vsub.f32 %v1054_v20, %v4267_v0 }
 0x2d5   : > { %v4338_v30 = vpop.eup %3232 }
 0x2d6   : > { %3236 = vpow2.f32 %v1189_v36  ;;  %v1195_v44 = vmul.f32 1.442695, %v1123_v7  ;;  %v1128_v36 = vsub.f32 %v1057_v24, %v4260_v46  ;;  %v4347_v37 = vpop.eup %3234  ;;  %v1201_v7 = vmul.f32 1.442695, %v1126_v32 }
 0x2d7   : > { %1813 = vrot.lane.b32.xlu1 %v1733_v47, %s3572_s13  ;;  %v673_v47 = vmul.f32 %v4001_v29, %v3756_v52  ;;  %3238 = vpow2.f32 %v1187_v28  ;;  %v1607_v28 = vadd.f32 %v4347_v37, %v4338_v30  ;;  %v1058_v24 = vmul.f32 %v4249_v17, %v4232_v10 }
 0x2d8   : > { %3240 = vpow2.f32 %v1193_v2  ;;  %v668_v2 = vmul.f32 %v4001_v29, %v3719_v38  ;;  %v1205_v20 = vmul.f32 1.442695, %v1128_v36  ;;  %v1739_v32 = vmul.f32 %v4180_v56, %v3756_v52 }
 0x2d9   : > { %v867_v6 = vadd.f32 %v4115_v19, %v673_v47  ;;  %3242 = vpow2.f32 %v1197_v39  ;;  %v1061_v19 = vmul.f32 %v4247_v45, %v4254_v49  ;;  %v1203_v36 = vmul.f32 1.442695, %v1127_v43 }
 0x2da   : > { %1364 = vperm.xlu2 %3225, %v856_v27   ;;  %1404 = vperm.xlu0 %3226, %v864_v13   ;;  %v665_v13 = vmul.f32 %v4001_v29, %v3710_v34  ;;  %3244 = vpow2.f32 %v1191_v33 }
 0x2db   : > { %3246 = vpow2.f32 %v1195_v44  ;;  %v862_v44 = vadd.f32 %v4107_v12, %v668_v2  ;;  %v1132_v16 = vsub.f32 %v1061_v19, %v4260_v46  ;;  %v1065_v19 = vmul.f32 %v4247_v45, %v4288_v51 }
 0x2dc   : > { %v4317_v1 = vpop.permute.xlu2 %944  ;;  %v4319_v54 = vpop.permute.xlu0 %939  ;;  %v859_v27 = vadd.f32 %v4075_v26, %v665_v13  ;;  %v1059_v26 = vmul.f32 %v4247_v45, %v4232_v10  ;;  %3248 = vpow2.f32 %v1201_v7 }
 0x2dd   : > { %v4356_v13 = vpop.eup %3236  ;;  %v4368_v10 = vpop.permute.xlu1 %1369  ;;  %3250 = vpow2.f32 %v1205_v20  ;;  %v1213_v20 = vmul.f32 1.442695, %v1132_v16 }
 0x2de   : > { %v1645_v60 = vadd.f32 %v4356_v13, %v1644_v41  ;;  %v1130_v33 = vsub.f32 %v1059_v26, %v4260_v46  ;;  %6121 = vst [vmem:[#allocation36_spill] sm:$0xff] %v4368_v10  ;;  %v1063_v26 = vmul.f32 %v4247_v45, %v4252_v53  ;;  %v6125_v10 = vld [vmem:[#allocation28_spill] sm:$0xff] }
 0x2df   : > { %1819 = vrot.lane.b32.xlu1 %v1736_v22, %s3572_s13  ;;  %v1060_v22 = vmul.f32 %v4249_v17, %v4254_v49  ;;  %v676_v49 = vmul.f32 %v4001_v29, %v6104_v58 }
 0x2e0   : > { %v1209_v7 = vmul.f32 1.442695, %v1130_v33 }
 0x2e1   : > { %v870_v12 = vadd.f32 %v4147_v42, %v676_v49  ;;  %v1131_v43 = vsub.f32 %v1060_v22, %v4267_v0  ;;  %v671_v42 = vmul.f32 %v4001_v29, %v6125_v10  ;;  %v1064_v22 = vmul.f32 %v4249_v17, %v4288_v51 }
 0x2e2   : > { %1379 = vperm.xlu2 %3225, %v859_v27   ;;  %1419 = vperm.xlu0 %3226, %v867_v6   ;;  %v1199_v27 = vmul.f32 1.442695, %v1125_v55  ;;  %v4372_v6 = vpop.eup %3238  ;;  %v1129_v55 = vsub.f32 %v1058_v24, %v4267_v0  ;;  %v1062_v24 = vmul.f32 %v4249_v17, %v4252_v53  ;;  %v1134_v49 = vsub.f32 %v1063_v26, %v4260_v46 }
 0x2e3   : > { %v4378_v35 = vpop.eup %3240  ;;  %v1608_v41 = vadd.f32 %v4372_v6, %v1607_v28  ;;  %v679_v53 = vmul.f32 %v4001_v29, %v6106_v48  ;;  %v1136_v10 = vsub.f32 %v1065_v19, %v4260_v46  ;;  %v1742_v51 = vmul.f32 %v4180_v56, %v6104_v58 }
 0x2e4   : > { %v4362_v47 = vpop.permute.xlu2 %954  ;;  %v4364_v39 = vpop.permute.xlu0 %949  ;;  %6122 = vst [vmem:[#allocation48_spill] sm:$0xff] %v4378_v35  ;;  %3252 = vpow2.f32 %v1199_v27  ;;  %v1646_v28 = vadd.f32 %v4378_v35, %v1645_v60  ;;  %v1207_v33 = vmul.f32 1.442695, %v1129_v55  ;;  %v1211_v35 = vmul.f32 1.442695, %v1131_v43 }
 0x2e5   : > { %v4385_v52 = vpop.eup %3242  ;;  %3254 = vpow2.f32 %v1203_v36  ;;  %v1133_v55 = vsub.f32 %v1062_v24, %v4267_v0  ;;  %v1067_v26 = vmul.f32 %v4247_v45, %v4286_v57  ;;  %v865_v19 = vadd.f32 %v4105_v62, %v671_v42 }
 0x2e6   : > { %6123 = vst [vmem:[#allocation35_spill] sm:$0xff] %v4385_v52  ;;  %v4391_v2 = vpop.eup %3244  ;;  %v1647_v60 = vadd.f32 %v4385_v52, %v1646_v28  ;;  %3256 = vpow2.f32 %v1209_v7  ;;  %v1135_v28 = vsub.f32 %v1064_v22, %v4267_v0  ;;  %v1069_v58 = vmul.f32 %v4247_v45, %v4319_v54 }
 0x2e7   : > { %1825 = vrot.lane.b32.xlu1 %v1739_v32, %s3572_s13  ;;  %v4396_v32 = vpop.eup %3246  ;;  %v1609_v27 = vadd.f32 %v4391_v2, %v1608_v41  ;;  %3258 = vpow2.f32 %v1213_v20  ;;  %v1217_v24 = vmul.f32 1.442695, %v1134_v49  ;;  %v873_v62 = vadd.f32 %v4145_v40, %v679_v53 }
 0x2e8   : > { %6124 = vst [vmem:[#allocation50_spill] sm:$0xff] %v4396_v32  ;;  %3260 = vpow2.f32 %v1207_v33  ;;  %v1221_v42 = vmul.f32 1.442695, %v1136_v10  ;;  %v1068_v20 = vmul.f32 %v4249_v17, %v4319_v54  ;;  %v1138_v49 = vsub.f32 %v1067_v26, %v4260_v46 }
 0x2e9   : > { %v1610_v41 = vadd.f32 %v4396_v32, %v1609_v27  ;;  %v1066_v27 = vmul.f32 %v4249_v17, %v4286_v57  ;;  %3262 = vpow2.f32 %v1211_v35  ;;  %v1140_v32 = vsub.f32 %v1069_v58, %v4260_v46 }
 0x2ea   : > { %1394 = vperm.xlu2 %3225, %v862_v44   ;;  %1434 = vperm.xlu0 %3226, %v870_v12   ;;  %v4414_v44 = vpop.eup %3248  ;;  %v4420_v12 = vpop.permute.xlu1 %1384  ;;  %3264 = vpow2.f32 %v1217_v24  ;;  %v1071_v10 = vmul.f32 %v4247_v45, %v4317_v1  ;;  %v1073_v58 = vmul.f32 %v4247_v45, %v4364_v39  ;;  %v1225_v24 = vmul.f32 1.442695, %v1138_v49 }
 0x2eb   : > { %6126 = vst [vmem:[#allocation51_spill] sm:$0xff] %v4414_v44  ;;  %v4422_v43 = vpop.eup %3250  ;;  %v1648_v7 = vadd.f32 %v4414_v44, %v1647_v60  ;;  %v1215_v60 = vmul.f32 1.442695, %v1133_v55  ;;  %v6128_v44 = vld [vmem:[#allocation31_spill] sm:$0xff]  ;;  %v1137_v35 = vsub.f32 %v1066_v27, %v4267_v0  ;;  %3266 = vpow2.f32 %v1221_v42 }
 0x2ec   : > { %v4408_v36 = vpop.permute.xlu2 %964  ;;  %v4410_v16 = vpop.permute.xlu0 %959  ;;  %6127 = vst [vmem:[#allocation52_spill] sm:$0xff] %v4420_v12  ;;  %v674_v57 = vmul.f32 %v4001_v29, %v6128_v44  ;;  %v1070_v27 = vmul.f32 %v4249_v17, %v4317_v1  ;;  %v682_v42 = vmul.f32 %v4001_v29, %v6110_v25 }
 0x2ed   : > { %v4428_v52 = vpop.eup %3252  ;;  %v1649_v33 = vadd.f32 %v4422_v43, %v1648_v7  ;;  %3268 = vpow2.f32 %v1215_v60  ;;  %v1223_v44 = vmul.f32 1.442695, %v1137_v35 }
 0x2ee   : > { %v4434_v12 = vpop.eup %3254  ;;  %v1611_v22 = vadd.f32 %v4428_v52, %v1610_v41  ;;  %v1139_v41 = vsub.f32 %v1068_v20, %v4267_v0  ;;  %v1229_v20 = vmul.f32 1.442695, %v1140_v32  ;;  %v868_v1 = vadd.f32 %v4137_v18, %v674_v57 }
 0x2ef   : > { %1831 = vrot.lane.b32.xlu1 %v1742_v51, %s3572_s13  ;;  %v1219_v51 = vmul.f32 1.442695, %v1135_v28  ;;  %v4447_v40 = vpop.eup %3256  ;;  %v1141_v35 = vsub.f32 %v1070_v27, %v4267_v0  ;;  %v4496_v57 = vstv %s4445_s10 }
 0x2f0   : > { %6129 = vst [vmem:[#allocation53_spill] sm:$0xff] %v4447_v40  ;;  %v1612_v54 = vadd.f32 %v4434_v12, %v1611_v22  ;;  %v4453_v53 = vpop.eup %3258  ;;  %v1650_v7 = vadd.f32 %v4447_v40, %v1649_v33  ;;  %v1072_v22 = vmul.f32 %v4249_v17, %v4364_v39  ;;  %v1142_v33 = vsub.f32 %v1071_v10, %v4260_v46 }
 0x2f1   : > { %v4464_v28 = vpop.eup %3260  ;;  %3270 = vpow2.f32 %v1219_v51  ;;  %v876_v51 = vadd.f32 %v4184_v5, %v682_v42  ;;  %v1227_v32 = vmul.f32 1.442695, %v1139_v41  ;;  %v1144_v40 = vsub.f32 %v1073_v58, %v4260_v46 }
 0x2f2   : > { %1409 = vperm.xlu2 %3225, %v865_v19   ;;  %1449 = vperm.xlu0 %3226, %v873_v62   ;;  %v1745_v19 = vmul.f32 %v4180_v56, %v6106_v48  ;;  %v4469_v62 = vpop.eup %3262  ;;  %v1613_v48 = vadd.f32 %v4464_v28, %v1612_v54  ;;  %v1651_v60 = vadd.f32 %v4453_v53, %v1650_v7  ;;  %v4478_v49 = vpop.permute.xlu1 %1399  ;;  %3272 = vpow2.f32 %v1225_v24 }
 0x2f3   : > { %6130 = vst [vmem:[#allocation54_spill] sm:$0xff] %v4478_v49  ;;  %v4484_v39 = vpop.eup %3264  ;;  %v1075_v10 = vmul.f32 %v4247_v45, %v4362_v47  ;;  %3274 = vpow2.f32 %v1229_v20  ;;  %v1143_v18 = vsub.f32 %v1072_v22, %v4267_v0  ;;  %v1077_v5 = vmul.f32 %v4247_v45, %v4410_v16 }
 0x2f4   : > { %v4458_v55 = vpop.permute.xlu2 %974  ;;  %v4460_v26 = vpop.permute.xlu0 %969  ;;  %6131 = vst [vmem:[#allocation55_spill] sm:$0xff] %v4484_v39  ;;  %v1614_v54 = vadd.f32 %v4469_v62, %v1613_v48  ;;  %3276 = vpow2.f32 %v1223_v44  ;;  %v1652_v48 = vadd.f32 %v4484_v39, %v1651_v60  ;;  %v1233_v58 = vmul.f32 1.442695, %v1142_v33 }
 0x2f5   : > { %v4490_v7 = vpop.eup %3266  ;;  %3278 = vpow2.f32 %v1227_v32  ;;  %v1237_v27 = vmul.f32 1.442695, %v1144_v40  ;;  %v1076_v42 = vmul.f32 %v4249_v17, %v4410_v16  ;;  %v1748_v44 = vmul.f32 %v4180_v56, %v6110_v25 }
 0x2f6   : > { %6132 = vst [vmem:[#allocation56_spill] sm:$0xff] %v4490_v7  ;;  %v4498_v41 = vpop.eup %3268  ;;  %v1653_v33 = vadd.f32 %v4490_v7, %v1652_v48  ;;  %v1235_v32 = vmul.f32 1.442695, %v1143_v18  ;;  %v1148_v16 = vsub.f32 %v1077_v5, %v4260_v46  ;;  %v1719_v49 = vmul.f32 %v4180_v56, %v3680_v8 }
 0x2f7   : > { %1837 = vrot.lane.b32.xlu1 %v1745_v19, %s3572_s13  ;;  %v1074_v19 = vmul.f32 %v4249_v17, %v4362_v47  ;;  %v4503_v24 = vpop.eup %3270  ;;  %v1615_v60 = vadd.f32 %v4498_v41, %v1614_v54  ;;  %v1146_v47 = vsub.f32 %v1075_v10, %v4260_v46  ;;  %3280 = vpow2.f32 %v1233_v58 }
 0x2f8   : > { %v4521_v39 = vpop.eup %3272  ;;  %3282 = vpow2.f32 %v1237_v27  ;;  %v1147_v48 = vsub.f32 %v1076_v42, %v4267_v0  ;;  %v1245_v7 = vmul.f32 1.442695, %v1148_v16  ;;  %v4548_v27 = vmul.f32 %v4180_v56, %v3670_v4 }
 0x2f9   : > { %6134 = vst [vmem:[#allocation57_spill] sm:$0xff] %v4521_v39  ;;  %v1616_v25 = vadd.f32 %v4503_v24, %v1615_v60  ;;  %v1145_v54 = vsub.f32 %v1074_v19, %v4267_v0  ;;  %v4530_v18 = vpop.eup %3274  ;;  %v1081_v60 = vmul.f32 %v4247_v45, %v4460_v26  ;;  %v1654_v19 = vadd.f32 %v4521_v39, %v1653_v33 }
 0x2fa   : > { %1424 = vperm.xlu2 %3225, %v868_v1   ;;  %1464 = vperm.xlu0 %3226, %v876_v51   ;;  %v1231_v1 = vmul.f32 1.442695, %v1141_v35  ;;  %v6133_v51 = vld [vmem:[#allocation40_spill] sm:$0xff]  ;;  %v1079_v35 = vmul.f32 %v4247_v45, %v4408_v36  ;;  %v4527_v10 = vpop.permute.xlu1 %1414  ;;  %6136 = vst [vmem:[#allocation59_spill] sm:$0xff] %v4530_v18  ;;  %v4536_v58 = vpop.eup %3276  ;;  %v1722_v16 = vmul.f32 %v4180_v56, %v3686_v11 }
 0x2fb   : > { %v677_v40 = vmul.f32 %v4001_v29, %v6133_v51  ;;  %6135 = vst [vmem:[#allocation58_spill] sm:$0xff] %v4527_v10  ;;  %v1241_v51 = vmul.f32 1.442695, %v1146_v47  ;;  %v1078_v10 = vmul.f32 %v4249_v17, %v4408_v36  ;;  %v1617_v42 = vadd.f32 %v4536_v58, %v1616_v25 }
 0x2fc   : > { %v4507_v20 = vpop.permute.xlu2 %989  ;;  %v4509_v22 = vpop.permute.xlu0 %984  ;;  %3284 = vpow2.f32 %v1231_v1  ;;  %v1655_v33 = vadd.f32 %v4530_v18, %v1654_v19  ;;  %v1239_v1 = vmul.f32 1.442695, %v1145_v54  ;;  %v1150_v36 = vsub.f32 %v1079_v35, %v4260_v46 }
 0x2fd   : > { %v871_v5 = vadd.f32 %v4135_v50, %v677_v40  ;;  %3286 = vpow2.f32 %v1235_v32  ;;  %v1080_v50 = vmul.f32 %v4249_v17, %v4460_v26  ;;  %v1243_v47 = vmul.f32 1.442695, %v1147_v48 }
 0x2fe   : > { %v1152_v40 = vsub.f32 %v1081_v60, %v4260_v46  ;;  %v1084_v25 = vmul.f32 %v4249_v17, %v4157_v63  ;;  %3288 = vpow2.f32 %v1241_v51  ;;  %v1149_v35 = vsub.f32 %v1078_v10, %v4267_v0  ;;  %v6139_v60 = vld [vmem:[#allocation43_spill] sm:$0xff] }
 0x2ff   : > { %1843 = vrot.lane.b32.xlu1 %v1748_v44, %s3572_s13  ;;  %v4541_v44 = vpop.eup %3278  ;;  %v680_v19 = vmul.f32 %v4001_v29, %v6139_v60  ;;  %3290 = vpow2.f32 %v1245_v7  ;;  %v1151_v4 = vsub.f32 %v1080_v50, %v4267_v0  ;;  %v1085_v39 = vmul.f32 %v4247_v45, %v4157_v63 }
 0x300   : > { %6137 = vst [vmem:[#allocation60_spill] sm:$0xff] %v4541_v44  ;;  %v1618_v54 = vadd.f32 %v4541_v44, %v1617_v42  ;;  %3292 = vpow2.f32 %v1239_v1  ;;  %v1249_v10 = vmul.f32 1.442695, %v1150_v36  ;;  %v1082_v7 = vmul.f32 %v4249_v17, %v4458_v55 }
 0x301   : > { %v874_v29 = vadd.f32 %v4169_v3, %v680_v19  ;;  %3294 = vpow2.f32 %v1243_v47  ;;  %v1253_v50 = vmul.f32 1.442695, %v1152_v40  ;;  %v1155_v60 = vsub.f32 %v1084_v25, %v4267_v0 }
 0x302   : > { %1439 = vperm.xlu2 %3225, %v871_v5   ;;  %1785 = vrot.lane.b32.xlu0 %v1719_v49, %s3572_s13  ;;  %v1947_v49 = vmul.f32 %v4496_v57, %v3680_v8  ;;  %v4562_v5 = vpop.eup %3280  ;;  %v1083_v8 = vmul.f32 %v4247_v45, %v4458_v55  ;;  %v1247_v1 = vmul.f32 1.442695, %v1149_v35  ;;  %v1087_v3 = vmul.f32 %v4247_v45, %v4509_v22 }
 0x303   : > { %v4568_v48 = vpop.eup %3282  ;;  %v1656_v51 = vadd.f32 %v4562_v5, %v1655_v33  ;;  %v4589_v33 = vpop.permute.xlu1 %1429  ;;  %v4597_v55 = vmul.f32 %v4180_v56, %v3682_v9  ;;  %3296 = vpow2.f32 %v1249_v10  ;;  %v1950_v25 = vmul.f32 %v4496_v57, %v3686_v11 }
 0x304   : > { %v4554_v32 = vpop.permute.xlu2 %1004  ;;  %v4556_v26 = vpop.permute.xlu0 %999  ;;  %6138 = vst [vmem:[#allocation61_spill] sm:$0xff] %v4568_v48  ;;  %v1154_v36 = vsub.f32 %v1083_v8, %v4260_v46  ;;  %v6142_v8 = vld [vmem:[#allocation15_spill] sm:$0xff]  ;;  %3298 = vpow2.f32 %v1253_v50  ;;  %v1086_v35 = vmul.f32 %v4249_v17, %v4509_v22  ;;  %v1259_v11 = vmul.f32 1.442695, %v1155_v60 }
 0x305   : > { %v4575_v18 = vpop.eup %3284  ;;  %v1657_v63 = vadd.f32 %v4568_v48, %v1656_v51  ;;  %6140 = vst [vmem:[#allocation62_spill] sm:$0xff] %v4589_v33  ;;  %3300 = vpow2.f32 %v1247_v1  ;;  %v1090_v22 = vmul.f32 %v4249_v17, %v4175_v14  ;;  %v1158_v33 = vsub.f32 %v1087_v3, %v4260_v46 }
 0x306   : > { %v4581_v42 = vpop.eup %3286  ;;  %v1619_v44 = vadd.f32 %v4575_v18, %v1618_v54  ;;  %v1257_v50 = vmul.f32 1.442695, %v1154_v36  ;;  %v1091_v9 = vmul.f32 %v4247_v45, %v4175_v14  ;;  %v1953_v60 = vmul.f32 %v4496_v57, %v3693_v15 }
 0x307   : > { %2013 = vrot.lane.b32.xlu1 %v1947_v49, %s3572_s13  ;;  %v1251_v49 = vmul.f32 1.442695, %v1151_v4  ;;  %v4599_v47 = vpop.eup %3288  ;;  %v4606_v4 = vmul.f32 %v4180_v56, %v6142_v8  ;;  %v1089_v1 = vmul.f32 %v4247_v45, %v4507_v20  ;;  %v1157_v36 = vsub.f32 %v1086_v35, %v4267_v0 }
 0x308   : > { %6141 = vst [vmem:[#allocation63_spill] sm:$0xff] %v4599_v47  ;;  %v1620_v40 = vadd.f32 %v4581_v42, %v1619_v44  ;;  %v4608_v54 = vpop.eup %3290  ;;  %v1725_v44 = vmul.f32 %v4180_v56, %v3693_v15  ;;  %v1658_v8 = vadd.f32 %v4599_v47, %v1657_v63  ;;  %v1161_v15 = vsub.f32 %v1090_v22, %v4267_v0 }
 0x309   : > { %6143 = vst [vmem:[#allocation64_spill] sm:$0xff] %v4608_v54  ;;  %v4619_v10 = vpop.eup %3292  ;;  %3302 = vpow2.f32 %v1251_v49  ;;  %v4640_v49 = vmul.f32 %v4180_v56, %v3698_v23  ;;  %v1088_v35 = vmul.f32 %v4249_v17, %v4507_v20  ;;  %v1265_v23 = vmul.f32 1.442695, %v1158_v33 }
 0x30a   : > { %1454 = vperm.xlu2 %3225, %v874_v29   ;;  %1791 = vrot.lane.b32.xlu0 %v1722_v16, %s3572_s13  ;;  %v1153_v16 = vsub.f32 %v1082_v7, %v4267_v0  ;;  %6144 = vst [vmem:[#allocation65_spill] sm:$0xff] %v4619_v10  ;;  %v1156_v29 = vsub.f32 %v1085_v39, %v4260_v46  ;;  %v4623_v7 = vpop.eup %3294  ;;  %3304 = vpow2.f32 %v1259_v11 }
 0x30b   : > { %6145 = vst [vmem:[#allocation66_spill] sm:$0xff] %v4623_v7  ;;  %v1621_v48 = vadd.f32 %v4619_v10, %v1620_v40  ;;  %v1659_v39 = vadd.f32 %v4608_v54, %v1658_v8  ;;  %v4642_v14 = vpop.eup %3296  ;;  %v1728_v8 = vmul.f32 %v4180_v56, %v3704_v31  ;;  %3306 = vpow2.f32 %v1257_v50 }
 0x30c   : > { %v4613_v19 = vpop.permute.xlu2 %1019  ;;  %v4615_v51 = vpop.permute.xlu0 %1014  ;;  %v1255_v63 = vmul.f32 1.442695, %v1153_v16  ;;  %6146 = vst [vmem:[#allocation67_spill] sm:$0xff] %v4642_v14  ;;  %v1261_v3 = vmul.f32 1.442695, %v1156_v29  ;;  %v6150_v29 = vld [vmem:[#allocation46_spill] sm:$0xff]  ;;  %v1160_v20 = vsub.f32 %v1089_v1, %v4260_v46 }
 0x30d   : > { %v1622_v40 = vadd.f32 %v4623_v7, %v1621_v48  ;;  %v4649_v16 = vpop.eup %3298  ;;  %v1162_v48 = vsub.f32 %v1091_v9, %v4260_v46  ;;  %v1097_v22 = vmul.f32 %v4247_v45, %v6150_v29  ;;  %v1660_v50 = vadd.f32 %v4642_v14, %v1659_v39  ;;  %v6152_v1 = vld [vmem:[#allocation21_spill] sm:$0xff] }
 0x30e   : > { %6148 = vst [vmem:[#allocation69_spill] sm:$0xff] %v4649_v16  ;;  %v4657_v11 = vpop.eup %3300  ;;  %3308 = vpow2.f32 %v1255_v63  ;;  %v1956_v9 = vmul.f32 %v4496_v57, %v3704_v31  ;;  %v1093_v39 = vmul.f32 %v4247_v45, %v4556_v26  ;;  %v1271_v14 = vmul.f32 1.442695, %v1161_v15 }
 0x30f   : > { %2019 = vrot.lane.b32.xlu1 %v1950_v25, %s3572_s13  ;;  %6149 = vst [vmem:[#allocation70_spill] sm:$0xff] %v4657_v11  ;;  %v4665_v54 = vpop.eup %3302  ;;  %3310 = vpow2.f32 %v1261_v3  ;;  %v1623_v7 = vadd.f32 %v4657_v11, %v1622_v40  ;;  %v1159_v63 = vsub.f32 %v1088_v35, %v4267_v0  ;;  %v1273_v10 = vmul.f32 1.442695, %v1162_v48 }
 0x310   : > { %6151 = vst [vmem:[#allocation46_spill] sm:$0xff] %v4665_v54  ;;  %3312 = vpow2.f32 %v1265_v23  ;;  %v4683_v47 = vpop.eup %3304  ;;  %v1168_v40 = vsub.f32 %v1097_v22, %v4260_v46  ;;  %v1269_v15 = vmul.f32 1.442695, %v1160_v20  ;;  %v1095_v23 = vmul.f32 %v4247_v45, %v4554_v32 }
 0x311   : > { %v4645_v25 = vpop.permute.xlu1 %1444  ;;  %v4689_v31 = vpop.eup %3306  ;;  %v1092_v35 = vmul.f32 %v4249_v17, %v4556_v26  ;;  %v1267_v20 = vmul.f32 1.442695, %v1159_v63  ;;  %v1094_v26 = vmul.f32 %v4249_v17, %v4554_v32 }
 0x312   : > { %6147 = vst [vmem:[#allocation68_spill] sm:$0xff] %v4645_v25  ;;  %1781 = vrot.lane.b32.xlu2 %v4548_v27, %s3572_s13  ;;  %1797 = vrot.lane.b32.xlu0 %v1725_v44, %s3572_s13  ;;  %v1096_v25 = vmul.f32 %v4249_v17, %v6150_v29  ;;  %v1263_v27 = vmul.f32 1.442695, %v1157_v36  ;;  %v1661_v29 = vadd.f32 %v4649_v16, %v1660_v50  ;;  %v4725_v63 = vmul.f32 1.442695, %v1168_v40 }
 0x313   : > { %v4681_v36 = vmul.f32 %v4180_v56, %v6152_v1  ;;  %v1624_v50 = vadd.f32 %v4665_v54, %v1623_v7  ;;  %6153 = vst [vmem:[#allocation71_spill] sm:$0xff] %v4689_v31  ;;  %v1731_v7 = vmul.f32 %v4180_v56, %v3710_v34  ;;  %v1165_v40 = vsub.f32 %v1094_v26, %v4267_v0 }
 0x314   : > { %v4668_v33 = vpop.permute.xlu2 %1034  ;;  %v4670_v44 = vpop.permute.xlu0 %1029  ;;  %v1167_v3 = vsub.f32 %v1096_v25, %v4267_v0  ;;  %3314 = vpow2.f32 %v1263_v27  ;;  %v1662_v48 = vadd.f32 %v4689_v31, %v1661_v29  ;;  %v1164_v25 = vsub.f32 %v1093_v39, %v4260_v46  ;;  %v6156_v27 = vld [vmem:[#allocation24_spill] sm:$0xff] }
 0x315   : > { %v4705_v22 = vpop.eup %3308  ;;  %3316 = vpow2.f32 %v1271_v14  ;;  %v4714_v29 = vmul.f32 %v4180_v56, %v6156_v27  ;;  %v4721_v14 = vmul.f32 %v4180_v56, %v3719_v38 }
 0x316   : > { %6155 = vst [vmem:[#allocation73_spill] sm:$0xff] %v4705_v22  ;;  %v4716_v39 = vpop.eup %3310  ;;  %3318 = vpow2.f32 %v1273_v10  ;;  %v4731_v10 = vmul.f32 %v4247_v45, %v4210_v61 }
 0x317   : > { %2025 = vrot.lane.b32.xlu1 %v1953_v60, %s3572_s13  ;;  %v4703_v60 = vmul.f32 %v4496_v57, %v3710_v34  ;;  %6157 = vst [vmem:[#allocation74_spill] sm:$0xff] %v4716_v39  ;;  %v1283_v34 = vmul.f32 1.442695, %v1167_v3  ;;  %v4723_v32 = vpop.eup %3312  ;;  %3320 = vpow2.f32 %v1269_v15  ;;  %v1663_v3 = vadd.f32 %v4716_v39, %v1662_v48 }
 0x318   : > { %6158 = vst [vmem:[#allocation75_spill] sm:$0xff] %v4723_v32  ;;  %3322 = vpow2.f32 %v1267_v20  ;;  %v1468_v15 = vmul.f32 %v4333_v59, %v4228_v21  ;;  %v1099_v48 = vmul.f32 %v4247_v45, %v4615_v51 }
 0x319   : > { %v4697_v1 = vpop.permute.xlu1 %1459  ;;  %v1664_v54 = vadd.f32 %v4723_v32, %v1663_v3 }
 0x31a   : > { %6154 = vst [vmem:[#allocation72_spill] sm:$0xff] %v4697_v1  ;;  %1787 = vrot.lane.b32.xlu2 %v4597_v55, %s3572_s13  ;;  %1803 = vrot.lane.b32.xlu0 %v1728_v8, %s3572_s13  ;;  %v1625_v1 = vadd.f32 %v4705_v22, %v1624_v50  ;;  %v1166_v55 = vsub.f32 %v1095_v23, %v4260_v46  ;;  %v1277_v50 = vmul.f32 1.442695, %v1164_v25  ;;  %v4736_v16 = vpop.eup %3314  ;;  %v6159_v25 = vld [vmem:[#allocation32_spill] sm:$0xff] }
 0x31b   : > { %v1163_v8 = vsub.f32 %v1092_v35, %v4267_v0  ;;  %v1467_v22 = vmul.f32 %v4347_v37, %v4228_v21  ;;  %v4748_v37 = vpop.eup %3316 }
 0x31c   : > { %v1320_v27 = vpop.permute.xlu2 %1319  ;;  %v1315_v31 = vpop.permute.xlu0 %1314  ;;  %v1626_v35 = vadd.f32 %v4683_v47, %v1625_v1  ;;  %v1281_v20 = vmul.f32 1.442695, %v1166_v55  ;;  %3324 = vpow2.f32 %v1277_v50  ;;  %v6160_v50 = vld [vmem:[#allocation47_spill] sm:$0xff] }
 0x31d   : > { %v1469_v23 = vmul.f32 %v4338_v30, %v1315_v31  ;;  %v1470_v39 = vmul.f32 %v6159_v25, %v1315_v31  ;;  %v1275_v26 = vmul.f32 1.442695, %v1163_v8  ;;  %v1471_v11 = vmul.f32 %v4372_v6, %v1320_v27  ;;  %v4751_v59 = vpop.eup %3318  ;;  %v6163_v25 = vld [vmem:[#allocation35_spill] sm:$0xff] }
 0x31e   : > { %v1627_v30 = vadd.f32 %v4736_v16, %v1626_v35  ;;  %v1472_v1 = vmul.f32 %v4356_v13, %v1320_v27  ;;  %v4757_v31 = vpop.eup %3320  ;;  %3326 = vpow2.f32 %v1283_v34  ;;  %v1101_v6 = vmul.f32 %v4247_v45, %v4613_v19  ;;  %v6162_v35 = vld [vmem:[#allocation50_spill] sm:$0xff] }
 0x31f   : > { %2031 = vrot.lane.b32.xlu1 %v1956_v9, %s3572_s13  ;;  %v1531_v21 = vadd.f32 %v1469_v23, %v1467_v22  ;;  %v1568_v3 = vadd.f32 %v1470_v39, %v1468_v15  ;;  %v4761_v9 = vmul.f32 %v4249_v17, %v4210_v61  ;;  %v1665_v13 = vadd.f32 %v4757_v31, %v1664_v54  ;;  %v4772_v55 = vpop.eup %3322 }
 0x320   : > { %v1098_v27 = vmul.f32 %v4249_v17, %v4615_v51  ;;  %v1170_v34 = vsub.f32 %v1099_v48, %v4260_v46  ;;  %v1174_v61 = vsub.f32 %v4731_v10, %v4260_v46  ;;  %3328 = vpow2.f32 %v1281_v20 }
 0x321   : > { %v4755_v32 = vpop.permute.xlu1 %1783  ;;  %v1532_v22 = vadd.f32 %v1531_v21, %v1471_v11  ;;  %v1569_v39 = vadd.f32 %v1568_v3, %v1472_v1  ;;  %v1628_v15 = vadd.f32 %v4772_v55, %v1627_v30  ;;  %v1279_v51 = vmul.f32 1.442695, %v1165_v40 }
 0x322   : > { %1793 = vrot.lane.b32.xlu2 %v4606_v4, %s3572_s13  ;;  %1809 = vrot.lane.b32.xlu0 %v1731_v7, %s3572_s13  ;;  %v1473_v4 = vmul.f32 %v4391_v2, %v6160_v50  ;;  %v6161_v7 = vld [vmem:[#allocation48_spill] sm:$0xff]  ;;  %3330 = vpow2.f32 %v1275_v26  ;;  %v1100_v23 = vmul.f32 %v4249_v17, %v4613_v19  ;;  %v4785_v1 = vpop.eup %3324  ;;  %v1666_v2 = vadd.f32 %v4751_v59, %v1665_v13  ;;  %v6164_v26 = vld [vmem:[#allocation51_spill] sm:$0xff] }
 0x323   : > { %v1474_v54 = vmul.f32 %v6161_v7, %v6160_v50  ;;  %v1172_v3 = vsub.f32 %v1101_v6, %v4260_v46  ;;  %v1169_v50 = vsub.f32 %v1098_v27, %v4267_v0  ;;  %v1289_v30 = vmul.f32 1.442695, %v1170_v34 }
 0x324   : > { %v1335_v11 = vpop.permute.xlu2 %1334  ;;  %v1330_v8 = vpop.permute.xlu0 %1329  ;;  %v1533_v20 = vadd.f32 %v1532_v22, %v1473_v4  ;;  %3332 = vpow2.f32 %v4725_v63  ;;  %v1173_v13 = vsub.f32 %v4761_v9, %v4267_v0  ;;  %v1105_v6 = vmul.f32 %v4247_v45, %v4670_v44 }
 0x325   : > { %v1475_v48 = vmul.f32 %v6162_v35, %v1330_v8  ;;  %v1476_v10 = vmul.f32 %v6163_v25, %v1330_v8  ;;  %v1570_v21 = vadd.f32 %v1569_v39, %v1474_v54  ;;  %v4792_v40 = vpop.eup %3326  ;;  %v1477_v19 = vmul.f32 %v4428_v52, %v1335_v11  ;;  %v6165_v54 = vld [vmem:[#allocation49_spill] sm:$0xff] }
 0x326   : > { %v1478_v8 = vmul.f32 %v6164_v26, %v1335_v11  ;;  %v4805_v34 = vpop.eup %3328  ;;  %3334 = vpow2.f32 %v1279_v51  ;;  %v1667_v52 = vadd.f32 %v4785_v1, %v1666_v2  ;;  %v1297_v9 = vmul.f32 1.442695, %v1174_v61 }
 0x327   : > { %2037 = vrot.lane.b32.xlu1 %v4703_v60, %s3572_s13  ;;  %v1534_v22 = vadd.f32 %v1533_v20, %v1475_v48  ;;  %v1571_v39 = vadd.f32 %v1570_v21, %v1476_v10  ;;  %v1962_v60 = vmul.f32 %v4496_v57, %v3719_v38  ;;  %v1287_v7 = vmul.f32 1.442695, %v1169_v50  ;;  %v6166_v50 = vld [vmem:[#allocation53_spill] sm:$0xff] }
 0x328   : > { %v4810_v63 = vpop.eup %3330  ;;  %3336 = vpow2.f32 %v1289_v30  ;;  %v1479_v35 = vmul.f32 %v4434_v12, %v6165_v54  ;;  %v1629_v51 = vadd.f32 %v4748_v37, %v1628_v15  ;;  %v1171_v48 = vsub.f32 %v1100_v23, %v4267_v0 }
 0x329   : > { %v4801_v27 = vpop.permute.xlu1 %1789  ;;  %v1535_v11 = vadd.f32 %v1534_v22, %v1477_v19  ;;  %v1572_v4 = vadd.f32 %v1571_v39, %v1478_v8  ;;  %v1293_v25 = vmul.f32 1.442695, %v1172_v3  ;;  %v1104_v61 = vmul.f32 %v4249_v17, %v4670_v44  ;;  %v6167_v39 = vld [vmem:[#allocation28_spill] sm:$0xff] }
 0x32a   : > { %1799 = vrot.lane.b32.xlu2 %v4640_v49, %s3572_s13  ;;  %1815 = vrot.lane.b32.xlu0 %v4721_v14, %s3572_s13  ;;  %v1480_v49 = vmul.f32 %v4422_v43, %v6165_v54  ;;  %v1176_v21 = vsub.f32 %v1105_v6, %v4260_v46  ;;  %v1630_v12 = vadd.f32 %v4810_v63, %v1629_v51  ;;  %v4827_v30 = vpop.eup %3332  ;;  %3338 = vpow2.f32 %v1287_v7 }
 0x32b   : > { %v1536_v2 = vadd.f32 %v1535_v11, %v1479_v35  ;;  %v1668_v15 = vadd.f32 %v4805_v34, %v1667_v52  ;;  %v1107_v43 = vmul.f32 %v4247_v45, %v4668_v33  ;;  %v1291_v26 = vmul.f32 1.442695, %v1171_v48  ;;  %v6168_v48 = vld [vmem:[#allocation34_spill] sm:$0xff] }
 0x32c   : > { %v1350_v10 = vpop.permute.xlu2 %1349  ;;  %v1345_v20 = vpop.permute.xlu0 %1344  ;;  %v1573_v3 = vadd.f32 %v1572_v4, %v1480_v49  ;;  %v1737_v6 = vmul.f32 %v4180_v56, %v6167_v39  ;;  %3340 = vpow2.f32 %v1293_v25  ;;  %v1175_v11 = vsub.f32 %v1104_v61, %v4267_v0 }
 0x32d   : > { %v1481_v14 = vmul.f32 %v4464_v28, %v1345_v20  ;;  %v1482_v23 = vmul.f32 %v6166_v50, %v1345_v20  ;;  %v1483_v44 = vmul.f32 %v4469_v62, %v1350_v10  ;;  %v4833_v28 = vpop.eup %3334  ;;  %v1484_v8 = vmul.f32 %v4453_v53, %v1350_v10 }
 0x32e   : > { %v4838_v52 = vpop.eup %3336  ;;  %v1301_v45 = vmul.f32 1.442695, %v1176_v21  ;;  %v1669_v7 = vadd.f32 %v4827_v30, %v1668_v15  ;;  %v1106_v53 = vmul.f32 %v4249_v17, %v4668_v33  ;;  %v1295_v35 = vmul.f32 1.442695, %v1173_v13  ;;  %v6169_v17 = vld [vmem:[#allocation55_spill] sm:$0xff] }
 0x32f   : > { %v1537_v19 = vadd.f32 %v1536_v2, %v1481_v14  ;;  %2043 = vrot.lane.b32.xlu1 %v1962_v60, %s3572_s13  ;;  %v1574_v22 = vadd.f32 %v1573_v3, %v1482_v23  ;;  %v1631_v60 = vadd.f32 %v4833_v28, %v1630_v12  ;;  %3342 = vpow2.f32 %v1297_v9  ;;  %v6170_v14 = vld [vmem:[#allocation56_spill] sm:$0xff] }
 0x330   : > { %v1178_v51 = vsub.f32 %v1107_v43, %v4260_v46  ;;  %v1485_v25 = vmul.f32 %v4498_v41, %v6168_v48  ;;  %3344 = vpow2.f32 %v1291_v26  ;;  %v1670_v10 = vadd.f32 %v4838_v52, %v1669_v7  ;;  %v4858_v13 = vpop.eup %3338  ;;  %v6173_v7 = vld [vmem:[#allocation36_spill] sm:$0xff] }
 0x331   : > { %v1538_v4 = vadd.f32 %v1537_v19, %v1483_v44  ;;  %v4841_v62 = vpop.permute.xlu1 %1795  ;;  %v1575_v54 = vadd.f32 %v1574_v22, %v1484_v8  ;;  %v1486_v33 = vmul.f32 %v6169_v17, %v6168_v48  ;;  %v1299_v9 = vmul.f32 1.442695, %v1175_v11  ;;  %v6171_v44 = vld [vmem:[#allocation57_spill] sm:$0xff] }
 0x332   : > { %1805 = vrot.lane.b32.xlu2 %v4681_v36, %s3572_s13  ;;  %1821 = vrot.lane.b32.xlu0 %v1737_v6, %s3572_s13  ;;  %v1965_v36 = vmul.f32 %v4496_v57, %v6167_v39  ;;  %3346 = vpow2.f32 %v1301_v45  ;;  %v1632_v41 = vadd.f32 %v4792_v40, %v1631_v60  ;;  %v1177_v21 = vsub.f32 %v1106_v53, %v4267_v0  ;;  %v4864_v15 = vpop.eup %3340  ;;  %v6172_v6 = vld [vmem:[#allocation31_spill] sm:$0xff]  ;;  %v6174_v53 = vld [vmem:[#allocation60_spill] sm:$0xff] }
 0x333   : > { %v1539_v61 = vadd.f32 %v1538_v4, %v1485_v25  ;;  %v1576_v12 = vadd.f32 %v1575_v54, %v1486_v33  ;;  %3348 = vpow2.f32 %v1295_v35  ;;  %v1305_v50 = vmul.f32 1.442695, %v1178_v51  ;;  %v6175_v35 = vld [vmem:[#allocation59_spill] sm:$0xff] }
 0x334   : > { %v1365_v20 = vpop.permute.xlu2 %1364  ;;  %v1360_v49 = vpop.permute.xlu0 %1359  ;;  %v1633_v43 = vadd.f32 %v4858_v13, %v1632_v41  ;;  %3350 = vpow2.f32 %v1299_v9  ;;  %v1740_v11 = vmul.f32 %v4180_v56, %v6172_v6  ;;  %v1303_v45 = vmul.f32 1.442695, %v1177_v21  ;;  %v6176_v21 = vld [vmem:[#allocation61_spill] sm:$0xff] }
 0x335   : > { %v1487_v46 = vmul.f32 %v4503_v24, %v1360_v49  ;;  %v1488_v2 = vmul.f32 %v6170_v14, %v1360_v49  ;;  %v1489_v23 = vmul.f32 %v4536_v58, %v1365_v20  ;;  %v1671_v24 = vadd.f32 %v4864_v15, %v1670_v10  ;;  %v4871_v0 = vpop.eup %3342 }
 0x336   : > { %v1490_v19 = vmul.f32 %v6171_v44, %v1365_v20  ;;  %v4877_v58 = vpop.eup %3344  ;;  %3352 = vpow2.f32 %v1305_v50  ;;  %v1491_v54 = vmul.f32 %v6174_v53, %v6173_v7  ;;  %v1492_v51 = vmul.f32 %v6175_v35, %v6173_v7  ;;  %v6178_v44 = vld [vmem:[#allocation40_spill] sm:$0xff] }
 0x337   : > { %v1540_v3 = vadd.f32 %v1539_v61, %v1487_v46  ;;  %2049 = vrot.lane.b32.xlu1 %v1965_v36, %s3572_s13  ;;  %v1577_v26 = vadd.f32 %v1576_v12, %v1488_v2  ;;  %v1634_v48 = vadd.f32 %v4877_v58, %v1633_v43  ;;  %v1672_v25 = vadd.f32 %v4871_v0, %v1671_v24 }
 0x338   : > { %v4881_v60 = vpop.eup %3346  ;;  %3354 = vpow2.f32 %v1303_v45 }
 0x339   : > { %v1541_v8 = vadd.f32 %v1540_v3, %v1489_v23  ;;  %v4873_v22 = vpop.permute.xlu1 %1801  ;;  %v1578_v4 = vadd.f32 %v1577_v26, %v1490_v19  ;;  %v4892_v49 = vpop.eup %3348  ;;  %v1673_v46 = vadd.f32 %v4881_v60, %v1672_v25 }
 0x33a   : > { %1811 = vrot.lane.b32.xlu2 %v4714_v29, %s3572_s13  ;;  %1827 = vrot.lane.b32.xlu0 %v1740_v11, %s3572_s13  ;;  %v1968_v29 = vmul.f32 %v4496_v57, %v6172_v6  ;;  %v4897_v61 = vpop.eup %3350  ;;  %v1635_v50 = vadd.f32 %v4892_v49, %v1634_v48  ;;  %v6180_v11 = vld [vmem:[#allocation65_spill] sm:$0xff]  ;;  %v6182_v48 = vld [vmem:[#allocation66_spill] sm:$0xff] }
 0x33b   : > { %v1542_v36 = vadd.f32 %v1541_v8, %v1491_v54  ;;  %v1579_v9 = vadd.f32 %v1578_v4, %v1492_v51  ;;  %v6179_v8 = vld [vmem:[#allocation52_spill] sm:$0xff]  ;;  %v6181_v4 = vld [vmem:[#allocation63_spill] sm:$0xff]  ;;  %v1971_v51 = vmul.f32 %v4496_v57, %v6178_v44 }
 0x33c   : > { %v1380_v10 = vpop.permute.xlu2 %1379  ;;  %v1375_v20 = vpop.permute.xlu0 %1374  ;;  %v1636_v19 = vadd.f32 %v4897_v61, %v1635_v50  ;;  %v1497_v45 = vmul.f32 %v6180_v11, %v6179_v8  ;;  %v1498_v7 = vmul.f32 %v6181_v4, %v6179_v8  ;;  %v6189_v4 = vld [vmem:[#allocation46_spill] sm:$0xff] }
 0x33d   : > { %v1493_v17 = vmul.f32 %v4575_v18, %v1375_v20  ;;  %v1494_v33 = vmul.f32 %v4562_v5, %v1375_v20  ;;  %v1495_v41 = vmul.f32 %v4581_v42, %v1380_v10  ;;  %v1496_v14 = vmul.f32 %v6176_v21, %v1380_v10  ;;  %v6177_v18 = vld [vmem:[#allocation26_spill] sm:$0xff]  ;;  %v4905_v23 = vpop.eup %3352  ;;  %v6183_v10 = vld [vmem:[#allocation64_spill] sm:$0xff] }
 0x33e   : > { %v1735_v5 = vmul.f32 %v4180_v56, %v6177_v18  ;;  %v1743_v42 = vmul.f32 %v4180_v56, %v6178_v44  ;;  %v1674_v26 = vadd.f32 %v4905_v23, %v1673_v46  ;;  %v4919_v53 = vpop.eup %3354 }
 0x33f   : > { %v1543_v2 = vadd.f32 %v1542_v36, %v1493_v17  ;;  %v1580_v12 = vadd.f32 %v1579_v9, %v1494_v33  ;;  %2055 = vrot.lane.b32.xlu1 %v1968_v29, %s3572_s13  ;;  %v1637_v33 = vadd.f32 %v4919_v53, %v1636_v19  ;;  %v6184_v9 = vld [vmem:[#allocation70_spill] sm:$0xff] }
 0x340   : > { %v1675_v36 = vrot.slane %v1674_v26, 4 }
 0x341   : > { %v1544_v3 = vadd.f32 %v1543_v2, %v1495_v41  ;;  %v1581_v43 = vadd.f32 %v1580_v12, %v1496_v14  ;;  %v4907_v24 = vpop.permute.xlu1 %1807  ;;  %v6185_v41 = vld [vmem:[#allocation67_spill] sm:$0xff]  ;;  %v6186_v12 = vld [vmem:[#allocation29_spill] sm:$0xff]  ;;  %v1638_v19 = vrot.slane %v1637_v33, 4 }
 0x342   : > { %1817 = vrot.lane.b32.xlu2 %v1735_v5, %s3572_s13  ;;  %1833 = vrot.lane.b32.xlu0 %v1743_v42, %s3572_s13  ;;  %v1738_v50 = vmul.f32 %v4180_v56, %v6186_v12  ;;  %v1676_v11 = vadd.f32 %v1675_v36, %v1674_v26 }
 0x343   : > { %v1545_v29 = vadd.f32 %v1544_v3, %v1497_v45  ;;  %v1582_v17 = vadd.f32 %v1581_v43, %v1498_v7  ;;  %v6187_v3 = vld [vmem:[#allocation43_spill] sm:$0xff]  ;;  %v6188_v45 = vld [vmem:[#allocation54_spill] sm:$0xff] }
 0x344   : > { %v1395_v54 = vpop.permute.xlu2 %1394  ;;  %v1390_v35 = vpop.permute.xlu0 %1389  ;;  %v1746_v43 = vmul.f32 %v4180_v56, %v6187_v3  ;;  %v1503_v7 = vmul.f32 %v6189_v4, %v6188_v45 }
 0x345   : > { %v1499_v25 = vmul.f32 %v6182_v48, %v1390_v35  ;;  %v1500_v20 = vmul.f32 %v6183_v10, %v1390_v35  ;;  %v1501_v46 = vmul.f32 %v6184_v9, %v1395_v54  ;;  %v1502_v21 = vmul.f32 %v6185_v41, %v1395_v54  ;;  %v6190_v54 = vld [vmem:[#allocation69_spill] sm:$0xff] }
 0x346   : > { %v1504_v35 = vmul.f32 %v6190_v54, %v6188_v45  ;;  %v6191_v10 = vld [vmem:[#allocation73_spill] sm:$0xff]  ;;  %v1639_v9 = vadd.f32 %v1638_v19, %v1637_v33 }
 0x347   : > { %v1546_v14 = vadd.f32 %v1545_v29, %v1499_v25  ;;  %v1583_v2 = vadd.f32 %v1582_v17, %v1500_v20  ;;  %2061 = vrot.lane.b32.xlu1 %v1971_v51, %s3572_s13  ;;  %v1974_v25 = vmul.f32 %v4496_v57, %v6187_v3  ;;  %v6192_v29 = vld [vmem:[#allocation71_spill] sm:$0xff] }
 0x348   : > { %v1640_v33 = vrot.slane %v1639_v9, 2 }
 0x349   : > { %v1547_v5 = vadd.f32 %v1546_v14, %v1501_v46  ;;  %v1584_v42 = vadd.f32 %v1583_v2, %v1502_v21  ;;  %v4931_v8 = vpop.permute.xlu1 %1813  ;;  %v1677_v46 = vrot.slane %v1676_v11, 2  ;;  %v6193_v21 = vld [vmem:[#allocation74_spill] sm:$0xff] }
 0x34a   : > { %1823 = vrot.lane.b32.xlu2 %v1738_v50, %s3572_s13  ;;  %1839 = vrot.lane.b32.xlu0 %v1746_v43, %s3572_s13  ;;  %v6194_v43 = vld [vmem:[#allocation33_spill] sm:$0xff] }
 0x34b   : > { %v1548_v26 = vadd.f32 %v1547_v5, %v1503_v7  ;;  %v1585_v36 = vadd.f32 %v1584_v42, %v1504_v35  ;;  %v1741_v45 = vmul.f32 %v4180_v56, %v6194_v43  ;;  %v1678_v42 = vadd.f32 %v1677_v46, %v1676_v11  ;;  %v6197_v7 = vld [vmem:[#allocation75_spill] sm:$0xff] }
 0x34c   : > { %v1410_v51 = vpop.permute.xlu2 %1409  ;;  %v1405_v48 = vpop.permute.xlu0 %1404 }
 0x34d   : > { %v1505_v20 = vmul.f32 %v6191_v10, %v1405_v48  ;;  %v1506_v17 = vmul.f32 %v6192_v29, %v1405_v48  ;;  %v1507_v41 = vmul.f32 %v4683_v47, %v1410_v51  ;;  %v1508_v14 = vmul.f32 %v6193_v21, %v1410_v51  ;;  %v6195_v48 = vld [vmem:[#allocation9_spill] sm:$0xff]  ;;  %v6196_v47 = vld [vmem:[#allocation58_spill] sm:$0xff] }
 0x34e   : > { %v1945_v5 = vmul.f32 %v4496_v57, %v6195_v48  ;;  %v1509_v19 = vmul.f32 %v4736_v16, %v6196_v47  ;;  %v1510_v35 = vmul.f32 %v6197_v7, %v6196_v47  ;;  %v1679_v11 = vrot.slane %v1678_v42, 1  ;;  %v6198_v16 = vld [vmem:[#allocation41_spill] sm:$0xff] }
 0x34f   : > { %v1549_v2 = vadd.f32 %v1548_v26, %v1505_v20  ;;  %v1586_v50 = vadd.f32 %v1585_v36, %v1506_v17  ;;  %2067 = vrot.lane.b32.xlu1 %v1974_v25, %s3572_s13  ;;  %v1641_v36 = vadd.f32 %v1640_v33, %v1639_v9 }
 0x351   : > { %v1550_v4 = vadd.f32 %v1549_v2, %v1507_v41  ;;  %v1587_v54 = vadd.f32 %v1586_v50, %v1508_v14  ;;  %v4950_v10 = vpop.permute.xlu1 %1819  ;;  %v1744_v2 = vmul.f32 %v4180_v56, %v6198_v16 }
 0x352   : > { %1829 = vrot.lane.b32.xlu2 %v1741_v45, %s3572_s13  ;;  %2009 = vrot.lane.b32.xlu0 %v1945_v5, %s3572_s13 }
 0x353   : > { %v1551_v17 = vadd.f32 %v1550_v4, %v1509_v19  ;;  %v1588_v26 = vadd.f32 %v1587_v54, %v1510_v35  ;;  %v1642_v4 = vrot.slane %v1641_v36, 1  ;;  %v4970_v54 = vadd.f32 %v1679_v11, %v1678_v42 }
 0x354   : > { %v1425_v51 = vpop.permute.xlu2 %1424  ;;  %v1420_v25 = vpop.permute.xlu0 %1419 }
 0x355   : > { %v1511_v20 = vmul.f32 %v4772_v55, %v1420_v25  ;;  %v1512_v29 = vmul.f32 %v4757_v31, %v1420_v25  ;;  %v1513_v46 = vmul.f32 %v4748_v37, %v1425_v51  ;;  %v1514_v41 = vmul.f32 %v4751_v59, %v1425_v51  ;;  %v6199_v55 = vld [vmem:[#allocation12_spill] sm:$0xff]  ;;  %v6200_v37 = vld [vmem:[#allocation62_spill] sm:$0xff] }
 0x356   : > { %v1948_v31 = vmul.f32 %v4496_v57, %v6199_v55  ;;  %v1515_v59 = vmul.f32 %v4810_v63, %v6200_v37  ;;  %v1516_v9 = vmul.f32 %v4785_v1, %v6200_v37  ;;  %v4980_v42 = vadd.f32 %v1642_v4, %v1641_v36  ;;  %v6203_v36 = vld [vmem:[#allocation68_spill] sm:$0xff] }
 0x357   : > { %v1552_v21 = vadd.f32 %v1551_v17, %v1511_v20  ;;  %v1589_v14 = vadd.f32 %v1588_v26, %v1512_v29  ;;  %3356 = vrcp.f32 %v4970_v54  ;;  %v6201_v17 = vld [vmem:[#allocation44_spill] sm:$0xff]  ;;  %vm2962_vm2 = vweird.f32 %v4970_v54 }
 0x358   : > { %v1747_v1 = vmul.f32 %v4180_v56, %v6201_v17  ;;  %3358 = vrcp.f32 %v4980_v42  ;;  %vm2948_vm4 = vweird.f32 %v4980_v42 }
 0x359   : > { %v1553_v50 = vadd.f32 %v1552_v21, %v1513_v46  ;;  %v1590_v45 = vadd.f32 %v1589_v14, %v1514_v41  ;;  %v4966_v5 = vpop.permute.xlu1 %1825 }
 0x35a   : > { %1835 = vrot.lane.b32.xlu2 %v1744_v2, %s3572_s13  ;;  %2015 = vrot.lane.b32.xlu0 %v1948_v31, %s3572_s13 }
 0x35b   : > { %v1554_v35 = vadd.f32 %v1553_v50, %v1515_v59  ;;  %v1591_v51 = vadd.f32 %v1590_v45, %v1516_v9  ;;  %v6204_v9 = vld [vmem:[#allocation10_spill] sm:$0xff] }
 0x35c   : > { %v1440_v33 = vpop.permute.xlu2 %1439  ;;  %v1435_v47 = vpop.permute.xlu0 %1434 }
 0x35d   : > { %v1517_v19 = vmul.f32 %v4833_v28, %v1435_v47  ;;  %v1518_v7 = vmul.f32 %v4805_v34, %v1435_v47  ;;  %v1519_v25 = vmul.f32 %v4792_v40, %v1440_v33  ;;  %v1520_v20 = vmul.f32 %v4827_v30, %v1440_v33  ;;  %v6202_v34 = vld [vmem:[#allocation15_spill] sm:$0xff]  ;;  %v4998_v56 = vpop.eup %3356 }
 0x35e   : > { %v1951_v46 = vmul.f32 %v4496_v57, %v6202_v34  ;;  %v1521_v40 = vmul.f32 %v4858_v13, %v6203_v36  ;;  %v1522_v30 = vmul.f32 %v4838_v52, %v6203_v36  ;;  %v5004_v59 = vpop.eup %3358  ;;  %v5007_v52 = vstv %s3764_s14  ;;  %s5084_s14 = scalar_lea.vmem %s5932_s4, %s3164_s8 }
 0x35f   : > { %v1555_v63 = vadd.f32 %v1554_v35, %v1517_v19  ;;  %v1592_v29 = vadd.f32 %v1591_v51, %v1518_v7  ;;  %v1946_v33 = vmul.f32 %v4496_v57, %v6204_v9  ;;  %v6205_v19 = vld [vmem:[#allocation18_spill] sm:$0xff]  ;;  %vm2963_vm1 = vweird.f32 %v4998_v56 }
 0x360   : > { %v1954_v7 = vmul.f32 %v4496_v57, %v6205_v19  ;;  %vm2949_vm3 = vweird.f32 %v5004_v59  ;;  %vm5054_vm5 = vmor %vm2962_vm2, %vm2963_vm1 }
 0x361   : > { %v1556_v26 = vadd.f32 %v1555_v63, %v1519_v25  ;;  %v1593_v11 = vadd.f32 %v1592_v29, %v1520_v20  ;;  %v4987_v28 = vpop.permute.xlu1 %1831  ;;  %v1684_v25 = vmul.f32 %v5007_v52, %v6195_v48  ;;  %v2944_v20 = vmul.f32 %v5004_v59, %v4980_v42  ;;  %vm5066_vm6 = vmor %vm2948_vm4, %vm2949_vm3 }
 0x362   : > { %1841 = vrot.lane.b32.xlu2 %v1747_v1, %s3572_s13  ;;  %2021 = vrot.lane.b32.xlu0 %v1951_v46, %s3572_s13 }
 0x363   : > { %v1557_v50 = vadd.f32 %v1556_v26, %v1521_v40  ;;  %v1594_v45 = vadd.f32 %v1593_v11, %v1522_v30  ;;  %v2945_v30 = vsub.f32 1.0, %v2944_v20 }
 0x364   : > { %v1455_v41 = vpop.permute.xlu2 %1454  ;;  %v1450_v21 = vpop.permute.xlu0 %1449 }
 0x365   : > { %v1523_v14 = vmul.f32 %v4877_v58, %v1450_v21  ;;  %v1524_v2 = vmul.f32 %v4864_v15, %v1450_v21  ;;  %v1525_v31 = vmul.f32 %v4892_v49, %v1455_v41  ;;  %v1526_v4 = vmul.f32 %v4871_v0, %v1455_v41  ;;  %v6206_v49 = vld [vmem:[#allocation72_spill] sm:$0xff]  ;;  %v6207_v41 = vld [vmem:[#allocation13_spill] sm:$0xff] }
 0x366   : > { %v2958_v58 = vmul.f32 %v4998_v56, %v4970_v54  ;;  %v1527_v0 = vmul.f32 %v4897_v61, %v6206_v49  ;;  %v1528_v35 = vmul.f32 %v4881_v60, %v6206_v49  ;;  %v1949_v21 = vmul.f32 %v4496_v57, %v6207_v41 }
 0x367   : > { %v1558_v13 = vadd.f32 %v1557_v50, %v1523_v14  ;;  %v1595_v37 = vadd.f32 %v1594_v45, %v1524_v2  ;;  %v6208_v45 = vld [vmem:[#allocation21_spill] sm:$0xff] }
 0x368   : > { %v2959_v26 = vsub.f32 1.0, %v2958_v58 }
 0x369   : > { %v1559_v47 = vadd.f32 %v1558_v13, %v1525_v31  ;;  %v1596_v15 = vadd.f32 %v1595_v37, %v1526_v4  ;;  %v5020_v51 = vpop.permute.xlu1 %1837  ;;  %v1957_v31 = vmul.f32 %v4496_v57, %v6208_v45  ;;  %v1687_v13 = vmul.f32 %v5007_v52, %v6199_v55 }
 0x36a   : > { %2011 = vrot.lane.b32.xlu2 %v1946_v33, %s3572_s13  ;;  %2027 = vrot.lane.b32.xlu0 %v1954_v7, %s3572_s13  ;;  %v2960_v50 = vmul.f32 %v4998_v56, %v2959_v26  ;;  %v6211_v26 = vld [vmem:[#allocation16_spill] sm:$0xff] }
 0x36b   : > { %v1560_v1 = vadd.f32 %v1559_v47, %v1527_v0  ;;  %v1597_v60 = vadd.f32 %v1596_v15, %v1528_v35  ;;  %v2966_v0 = vand.u32 2147483647, %v4970_v54  ;;  %v2968_v35 = vand.u32 2147483648, %v4970_v54 }
 0x36c   : > { %v1782_v63 = vpop.permute.xlu2 %1781  ;;  %v1465_v29 = vpop.permute.xlu0 %1464  ;;  %v2961_v15 = vadd.f32 %v4998_v56, %v2960_v50  ;;  %v1952_v54 = vmul.f32 %v4496_v57, %v6211_v26 }
 0x36d   : > { %v1877_v61 = vadd.f32 %v1782_v63, %v1684_v25  ;;  %v1529_v11 = vmul.f32 %v4919_v53, %v1465_v29  ;;  %v1530_v46 = vmul.f32 %v4905_v23, %v1465_v29  ;;  %v2946_v23 = vmul.f32 %v5004_v59, %v2945_v30 }
 0x36e   : > { %v2954_v29 = vand.u32 2147483648, %v4980_v42  ;;  %vm2967_vm7 = vcmp.eq.f32.partialorder %v2966_v0, 8.507059e+37  ;;  %v6218_v0 = vld [vmem:[#allocation19_spill] sm:$0xff] }
 0x36f   : > { %v1561_v36 = vadd.f32 %v1560_v1, %v1529_v11  ;;  %v1598_v40 = vadd.f32 %v1597_v60, %v1530_v46  ;;  %2139 = vperm.xlu1 %3227, %v1877_v61   ;;  %v2947_v63 = vadd.f32 %v5004_v59, %v2946_v23  ;;  %v6212_v61 = vld [vmem:[#allocation24_spill] sm:$0xff] }
 0x370   : > { %v1960_v11 = vmul.f32 %v4496_v57, %v6212_v61 }
 0x371   : > { %v1562_v14 = vrot.slane %v1561_v36, 4  ;;  %v1599_v2 = vrot.slane %v1598_v40, 4  ;;  %v5043_v7 = vpop.permute.xlu1 %1843 }
 0x372   : > { %2017 = vrot.lane.b32.xlu2 %v1949_v21, %s3572_s13  ;;  %2033 = vrot.lane.b32.xlu0 %v1957_v31, %s3572_s13  ;;  %v2969_v21 = vor.u32 1.1754944e-38, %v2968_v35  ;;  %v1955_v35 = vmul.f32 %v4496_v57, %v6218_v0 }
 0x373   : > { %v1563_v53 = vadd.f32 %v1562_v14, %v1561_v36  ;;  %v1600_v4 = vadd.f32 %v1599_v2, %v1598_v40  ;;  %v2952_v36 = vand.u32 2147483647, %v4980_v42  ;;  %v2965_v40 = vsel %vm5054_vm5, %v4998_v56, %v2961_v15 }
 0x374   : > { %v1788_v37 = vpop.permute.xlu2 %1787  ;;  %v5040_v33 = vpop.permute.xlu0 %1785  ;;  %v1690_v14 = vmul.f32 %v5007_v52, %v6202_v34  ;;  %v2978_v2 = vlaneseq  ;;  %v2951_v42 = vsel %vm5066_vm6, %v5004_v59, %v2947_v63  ;;  %v2955_v56 = vor.u32 1.1754944e-38, %v2954_v29 }
 0x375   : > { %v1564_v58 = vrot.slane %v1563_v53, 2  ;;  %v1601_v47 = vrot.slane %v1600_v4, 2  ;;  %v1880_v49 = vadd.f32 %v1788_v37, %v1687_v13  ;;  %vm2953_vm8 = vcmp.eq.f32.partialorder %v2952_v36, 8.507059e+37 }
 0x376   : > { %vm5086_vm9 = vcmp.lt.s32.totalorder %v2978_v2, 256  ;;  %v6215_v59 = vmov 0  ;;  %v1693_v63 = vmul.f32 %v5007_v52, %v6205_v19  ;;  %v1966_v36 = vmul.f32 %v4496_v57, %v6186_v12  ;;  %v6220_v2 = vld [vmem:[#allocation25_spill] sm:$0xff] }
 0x377   : > { %v1565_v25 = vadd.f32 %v1564_v58, %v1563_v53  ;;  %v1602_v20 = vadd.f32 %v1601_v47, %v1600_v4  ;;  %2154 = vperm.xlu1 %3227, %v1880_v49   ;;  %v2970_v53 = vsel %vm2967_vm7, %v2969_v21, %v2965_v40  ;;  %v2956_v58 = vsel %vm2953_vm8, %v2955_v56, %v2951_v42 }
 0x378   : > { %v6216_v59 = vsel %vm5086_vm9, 4294967295, %v6215_v59  ;;  %v1696_v40 = vmul.f32 %v5007_v52, %v6208_v45  ;;  %v1699_v56 = vmul.f32 %v5007_v52, %v6212_v61 }
 0x379   : > { %v1566_v46 = vrot.slane %v1565_v25, 1  ;;  %v1603_v60 = vrot.slane %v1602_v20, 1  ;;  %6217 = vst [vmem:[#allocation32_spill] sm:$0xff] %v6216_v59  ;;  %v5090_v49 = vpop.permute.xlu1 %2013 }
 0x37a   : > { %2023 = vrot.lane.b32.xlu2 %v1952_v54, %s3572_s13  ;;  %2039 = vrot.lane.b32.xlu0 %v1960_v11, %s3572_s13  ;;  %v6219_v11 = vld [vmem:[#allocation22_spill] sm:$0xff] }
 0x37b   : > { %v1567_v50 = vadd.f32 %v1566_v46, %v1565_v25  ;;  %v1604_v31 = vadd.f32 %v1603_v60, %v1602_v20  ;;  %v1963_v20 = vmul.f32 %v4496_v57, %v6177_v18  ;;  %v1958_v46 = vmul.f32 %v4496_v57, %v6219_v11 }
 0x37c   : > { %v1794_v4 = vpop.permute.xlu2 %1793  ;;  %v5077_v23 = vpop.permute.xlu0 %1791 }
 0x37d   : > { %v2972_v13 = vmul.f32 %v2970_v53, %v1604_v31  ;;  %v1883_v37 = vadd.f32 %v1794_v4, %v1690_v14  ;;  %v2971_v47 = vmul.f32 %v2956_v58, %v1567_v50  ;;  %v1961_v50 = vmul.f32 %v4496_v57, %v6220_v2 }
 0x37e   : > { %v1969_v31 = vmul.f32 %v4496_v57, %v6194_v43 }
 0x37f   : > { %v2975_v15 = vrot.slane %v2972_v13, 7  ;;  %2169 = vperm.xlu1 %3227, %v1883_v37   ;;  %v6221_v37 = vld [vmem:[#allocation27_spill] sm:$0xff] }
 0x380   : > { %v1964_v58 = vmul.f32 %v4496_v57, %v6221_v37 }
 0x381   : > { %v2976_v25 = vsel %vm273_vm0, %v2971_v47, %v2975_v15  ;;  %v5108_v60 = vpop.permute.xlu1 %2019  ;;  %v1972_v47 = vmul.f32 %v4496_v57, %v6198_v16  ;;  %v1702_v15 = vmul.f32 %v5007_v52, %v6177_v18 }
 0x382   : > { %2982 = vst.msk [vmem:[%s5084_s14] ss:$2 sm:$0x3] %vm5086_vm9, %v2976_v25  ;;  %2029 = vrot.lane.b32.xlu2 %v1955_v35, %s3572_s13  ;;  %2045 = vrot.lane.b32.xlu0 %v1963_v20, %s3572_s13 }
 0x384   : > { %v1800_v29 = vpop.permute.xlu2 %1799  ;;  %v5104_v1 = vpop.permute.xlu0 %1797 }
 0x385   : > { %v1886_v54 = vadd.f32 %v1800_v29, %v1693_v63  ;;  %v6222_v29 = vld [vmem:[#allocation30_spill] sm:$0xff] }
 0x387   : > { %2184 = vperm.xlu1 %3227, %v1886_v54   ;;  %v1967_v54 = vmul.f32 %v4496_v57, %v6222_v29 }
 0x389   : > { %v5123_v42 = vpop.permute.xlu1 %2025 }
 0x38a   : > { %2035 = vrot.lane.b32.xlu2 %v1958_v46, %s3572_s13  ;;  %2051 = vrot.lane.b32.xlu0 %v1966_v36, %s3572_s13  ;;  %v1975_v46 = vmul.f32 %v4496_v57, %v6201_v17  ;;  %v1705_v36 = vmul.f32 %v5007_v52, %v6186_v12 }
 0x38c   : > { %v1806_v30 = vpop.permute.xlu2 %1805  ;;  %v5116_v21 = vpop.permute.xlu0 %1803 }
 0x38d   : > { %v1889_v14 = vadd.f32 %v1806_v30, %v1696_v40 }
 0x38f   : > { %2199 = vperm.xlu1 %3227, %v1889_v14  }
 0x391   : > { %v5138_v25 = vpop.permute.xlu1 %2031 }
 0x392   : > { %2041 = vrot.lane.b32.xlu2 %v1961_v50, %s3572_s13  ;;  %2057 = vrot.lane.b32.xlu0 %v1969_v31, %s3572_s13  ;;  %v1685_v50 = vmul.f32 %v5007_v52, %v6204_v9 }
 0x394   : > { %v1812_v53 = vpop.permute.xlu2 %1811  ;;  %v5128_v4 = vpop.permute.xlu0 %1809 }
 0x395   : > { %v1892_v13 = vadd.f32 %v1812_v53, %v1699_v56  ;;  %v6223_v56 = vld [vmem:[#allocation38_spill] sm:$0xff] }
 0x396   : > { %v1970_v53 = vmul.f32 %v4496_v57, %v6223_v56 }
 0x397   : > { %2214 = vperm.xlu1 %3227, %v1892_v13   ;;  %v1878_v13 = vadd.f32 %v4755_v32, %v1685_v50 }
 0x399   : > { %v5154_v31 = vpop.permute.xlu1 %2037 }
 0x39a   : > { %2047 = vrot.lane.b32.xlu2 %v1964_v58, %s3572_s13  ;;  %2063 = vrot.lane.b32.xlu0 %v1972_v47, %s3572_s13  ;;  %v1708_v58 = vmul.f32 %v5007_v52, %v6194_v43  ;;  %v1700_v43 = vmul.f32 %v5007_v52, %v6220_v2 }
 0x39c   : > { %v1818_v35 = vpop.permute.xlu2 %1817  ;;  %v5140_v63 = vpop.permute.xlu0 %1815 }
 0x39d   : > { %v1895_v20 = vadd.f32 %v1818_v35, %v1702_v15 }
 0x39f   : > { %2229 = vperm.xlu1 %3227, %v1895_v20   ;;  %v1688_v20 = vmul.f32 %v5007_v52, %v6207_v41 }
 0x3a1   : > { %v5169_v32 = vpop.permute.xlu1 %2043 }
 0x3a2   : > { %2053 = vrot.lane.b32.xlu2 %v1967_v54, %s3572_s13  ;;  %2069 = vrot.lane.b32.xlu0 %v1975_v46, %s3572_s13  ;;  %v6224_v54 = vld [vmem:[#allocation42_spill] sm:$0xff] }
 0x3a3   : > { %v1973_v46 = vmul.f32 %v4496_v57, %v6224_v54 }
 0x3a4   : > { %v1824_v40 = vpop.permute.xlu2 %1823  ;;  %v5150_v14 = vpop.permute.xlu0 %1821 }
 0x3a5   : > { %v1898_v30 = vadd.f32 %v1824_v40, %v1705_v36  ;;  %v1881_v36 = vadd.f32 %v4801_v27, %v1688_v20  ;;  %v1711_v40 = vmul.f32 %v5007_v52, %v6198_v16  ;;  %v1714_v20 = vmul.f32 %v5007_v52, %v6201_v17  ;;  %v6227_v16 = vld [vmem:[#allocation14_spill] sm:$0xff] }
 0x3a7   : > { %2244 = vperm.xlu1 %3227, %v1898_v30  }
 0x3aa   : > { %2059 = vrot.lane.b32.xlu2 %v1970_v53, %s3572_s13  ;;  %2144 = vperm.xlu0 %3226, %v1878_v13   ;;  %v1691_v13 = vmul.f32 %v5007_v52, %v6211_v26 }
 0x3ac   : > { %v1830_v47 = vpop.permute.xlu2 %1829  ;;  %v5162_v35 = vpop.permute.xlu0 %1827  ;;  %v1884_v27 = vadd.f32 %v4841_v62, %v1691_v13 }
 0x3ad   : > { %v1901_v15 = vadd.f32 %v1830_v47, %v1708_v58  ;;  %v6225_v58 = vld [vmem:[#allocation45_spill] sm:$0xff] }
 0x3ae   : > { %v1976_v47 = vmul.f32 %v4496_v57, %v6225_v58  ;;  %v1694_v57 = vmul.f32 %v5007_v52, %v6218_v0 }
 0x3af   : > { %2259 = vperm.xlu1 %3227, %v1901_v15   ;;  %v5182_v15 = vpop.permute.xlu1 %2049 }
 0x3b0   : > { %v1887_v13 = vadd.f32 %v4873_v22, %v1694_v57 }
 0x3b2   : > { %2065 = vrot.lane.b32.xlu2 %v1973_v46, %s3572_s13  ;;  %2159 = vperm.xlu0 %3226, %v1881_v36  }
 0x3b4   : > { %v1836_v30 = vpop.permute.xlu2 %1835  ;;  %v5174_v53 = vpop.permute.xlu0 %1833 }
 0x3b5   : > { %v1904_v50 = vadd.f32 %v1836_v30, %v1711_v40  ;;  %v6226_v30 = vld [vmem:[#allocation11_spill] sm:$0xff] }
 0x3b7   : > { %2274 = vperm.xlu1 %3227, %v1904_v50   ;;  %v1686_v50 = vmul.f32 %v5007_v52, %v6226_v30 }
 0x3b9   : > { %v1879_v62 = vadd.f32 %v5040_v33, %v1686_v50  ;;  %v1697_v33 = vmul.f32 %v5007_v52, %v6219_v11 }
 0x3ba   : > { %2071 = vrot.lane.b32.xlu2 %v1976_v47, %s3572_s13  ;;  %2174 = vperm.xlu0 %3226, %v1884_v27   ;;  %v5194_v47 = vstv %s3159_s15 }
 0x3bb   : > { %v1912_v27 = vmul.f32 %v5194_v47, %v6204_v9  ;;  %v1890_v50 = vadd.f32 %v4907_v24, %v1697_v33  ;;  %v1915_v9 = vmul.f32 %v5194_v47, %v6207_v41  ;;  %v1918_v41 = vmul.f32 %v5194_v47, %v6211_v26 }
 0x3bc   : > { %v1842_v46 = vpop.permute.xlu2 %1841  ;;  %v5186_v40 = vpop.permute.xlu0 %1839 }
 0x3bd   : > { %v1907_v36 = vadd.f32 %v1842_v46, %v1714_v20  ;;  %v5198_v46 = vpop.permute.xlu1 %2055 }
 0x3bf   : > { %2289 = vperm.xlu1 %3227, %v1907_v36   ;;  %v1689_v36 = vmul.f32 %v5007_v52, %v6227_v16 }
 0x3c1   : > { %v1882_v22 = vadd.f32 %v5077_v23, %v1689_v36  ;;  %v1893_v23 = vadd.f32 %v4931_v8, %v1700_v43 }
 0x3c2   : > { %2149 = vperm.xlu2 %3225, %v1879_v62   ;;  %2189 = vperm.xlu0 %3226, %v1887_v13  }
 0x3c4   : > { %v2012_v20 = vpop.permute.xlu2 %2011  ;;  %v5200_v17 = vpop.permute.xlu0 %2009 }
 0x3c5   : > { %v2106_v59 = vadd.f32 %v2012_v20, %v1912_v27  ;;  %v6228_v27 = vld [vmem:[#allocation17_spill] sm:$0xff] }
 0x3c6   : > { %v1692_v20 = vmul.f32 %v5007_v52, %v6228_v27 }
 0x3c7   : > { %2574 = vperm.xlu1 %3227, %v2106_v59   ;;  %v5216_v59 = vpop.permute.xlu1 %2061 }
 0x3c8   : > { %6229 = vst [vmem:[#allocation47_spill] sm:$0xff] %v5216_v59  ;;  %v1885_v24 = vadd.f32 %v5104_v1, %v1692_v20 }
 0x3ca   : > { %2164 = vperm.xlu2 %3225, %v1882_v22   ;;  %2204 = vperm.xlu0 %3226, %v1890_v50   ;;  %v6230_v50 = vld [vmem:[#allocation20_spill] sm:$0xff] }
 0x3cc   : > { %v2018_v57 = vpop.permute.xlu2 %2017  ;;  %v5210_v13 = vpop.permute.xlu0 %2015 }
 0x3cd   : > { %v2109_v62 = vadd.f32 %v2018_v57, %v1915_v9  ;;  %v1695_v9 = vmul.f32 %v5007_v52, %v6230_v50  ;;  %v1703_v57 = vmul.f32 %v5007_v52, %v6221_v37 }
 0x3cf   : > { %2589 = vperm.xlu1 %3227, %v2109_v62   ;;  %v1888_v1 = vadd.f32 %v5116_v21, %v1695_v9  ;;  %v1896_v8 = vadd.f32 %v4950_v10, %v1703_v57  ;;  %v5230_v43 = vpop.permute.xlu1 %2067  ;;  %v6232_v62 = vld [vmem:[#allocation37_spill] sm:$0xff]  ;;  %v6234_v21 = vld [vmem:[#allocation39_spill] sm:$0xff] }
 0x3d0   : > { %6231 = vst [vmem:[#allocation48_spill] sm:$0xff] %v5230_v43  ;;  %v2298_v26 = vperm.slane %v6232_v62, 0  ;;  %v2299_v20 = vperm.slane %v6232_v62, 2  ;;  %v2369_v10 = vperm.slane %v6234_v21, 0  ;;  %v2370_v9 = vperm.slane %v6234_v21, 2 }
 0x3d2   : > { %2179 = vperm.xlu2 %3225, %v1885_v24   ;;  %2219 = vperm.xlu0 %3226, %v1893_v23   ;;  %v1921_v24 = vmul.f32 %v5194_v47, %v6218_v0  ;;  %v5242_v57 = vperm.slane %v2298_v26, 0 }
 0x3d4   : > { %v2024_v36 = vpop.permute.xlu2 %2023  ;;  %v5222_v22 = vpop.permute.xlu0 %2021 }
 0x3d5   : > { %v2112_v33 = vadd.f32 %v2024_v36, %v1918_v41  ;;  %v6233_v41 = vld [vmem:[#allocation23_spill] sm:$0xff] }
 0x3d6   : > { %v1698_v36 = vmul.f32 %v5007_v52, %v6233_v41 }
 0x3d7   : > { %2604 = vperm.xlu1 %3227, %v2112_v33  }
 0x3d8   : > { %v1891_v0 = vadd.f32 %v5128_v4, %v1698_v36 }
 0x3da   : > { %2194 = vperm.xlu2 %3225, %v1888_v1   ;;  %2234 = vperm.xlu0 %3226, %v1896_v8   ;;  %v5244_v1 = vperm.slane %v2299_v20, 0  ;;  %v1706_v8 = vmul.f32 %v5007_v52, %v6222_v29  ;;  %v1924_v20 = vmul.f32 %v5194_v47, %v6219_v11 }
 0x3dc   : > { %v2030_v23 = vpop.permute.xlu2 %2029  ;;  %v5238_v12 = vpop.permute.xlu0 %2027  ;;  %v1899_v62 = vadd.f32 %v4966_v5, %v1706_v8 }
 0x3dd   : > { %v2115_v33 = vadd.f32 %v2030_v23, %v1921_v24  ;;  %v5250_v24 = vperm.slane %v2369_v10, 0  ;;  %v5252_v23 = vperm.slane %v2370_v9, 0  ;;  %v1701_v10 = vmul.f32 %v5007_v52, %v3719_v38 }
 0x3df   : > { %2619 = vperm.xlu1 %3227, %v2115_v33   ;;  %v1894_v9 = vadd.f32 %v5140_v63, %v1701_v10 }
 0x3e1   : > { %v2140_v43 = vpop.permute.xlu1 %2139 }
 0x3e2   : > { %v5255_v59 = vmul.f32 %v5242_v57, %v2140_v43  ;;  %v5258_v26 = vmul.f32 %v5244_v1, %v2140_v43  ;;  %2209 = vperm.xlu2 %3225, %v1891_v0   ;;  %2249 = vperm.xlu0 %3226, %v1899_v62   ;;  %v1709_v43 = vmul.f32 %v5007_v52, %v6223_v56 }
 0x3e4   : > { %v2375_v4 = vsub.f32 %v5255_v59, %v5250_v24  ;;  %v2376_v5 = vsub.f32 %v5258_v26, %v5252_v23  ;;  %v2036_v36 = vpop.permute.xlu2 %2035  ;;  %v5266_v21 = vpop.permute.xlu0 %2033  ;;  %v1902_v11 = vadd.f32 %v4987_v28, %v1709_v43  ;;  %v1704_v43 = vmul.f32 %v5007_v52, %v6167_v39 }
 0x3e5   : > { %v2118_v33 = vadd.f32 %v2036_v36, %v1924_v20  ;;  %v1927_v20 = vmul.f32 %v5194_v47, %v6220_v2  ;;  %v1920_v26 = vmul.f32 %v5194_v47, %v6205_v19 }
 0x3e7   : > { %2634 = vperm.xlu1 %3227, %v2118_v33  }
 0x3e9   : > { %v2155_v8 = vpop.permute.xlu1 %2154 }
 0x3ea   : > { %v5275_v0 = vmul.f32 %v5242_v57, %v2155_v8  ;;  %v5278_v62 = vmul.f32 %v5244_v1, %v2155_v8  ;;  %2224 = vperm.xlu2 %3225, %v1894_v9   ;;  %2264 = vperm.xlu0 %3226, %v1902_v11   ;;  %v1712_v9 = vmul.f32 %v5007_v52, %v6224_v54 }
 0x3eb   : > { %v1897_v11 = vadd.f32 %v5150_v14, %v1704_v43 }
 0x3ec   : > { %v2042_v33 = vpop.permute.xlu2 %2041  ;;  %v5286_v10 = vpop.permute.xlu0 %2039  ;;  %v1905_v2 = vadd.f32 %v5020_v51, %v1712_v9  ;;  %v1707_v9 = vmul.f32 %v5007_v52, %v6172_v6 }
 0x3ed   : > { %v2121_v28 = vadd.f32 %v2042_v33, %v1927_v20  ;;  %v1930_v20 = vmul.f32 %v5194_v47, %v6221_v37 }
 0x3ef   : > { %2649 = vperm.xlu1 %3227, %v2121_v28  }
 0x3f1   : > { %v2170_v8 = vpop.permute.xlu1 %2169 }
 0x3f2   : > { %v5295_v36 = vmul.f32 %v5242_v57, %v2170_v8  ;;  %v5298_v63 = vmul.f32 %v5244_v1, %v2170_v8  ;;  %2239 = vperm.xlu2 %3225, %v1897_v11   ;;  %2279 = vperm.xlu0 %3226, %v1905_v2   ;;  %v1715_v11 = vmul.f32 %v5007_v52, %v6225_v58 }
 0x3f3   : > { %v1900_v2 = vadd.f32 %v5162_v35, %v1707_v9 }
 0x3f4   : > { %v2048_v28 = vpop.permute.xlu2 %2047  ;;  %v5306_v43 = vpop.permute.xlu0 %2045  ;;  %v1908_v37 = vadd.f32 %v5043_v7, %v1715_v11  ;;  %v1710_v11 = vmul.f32 %v5007_v52, %v6178_v44 }
 0x3f5   : > { %v2124_v51 = vadd.f32 %v2048_v28, %v1930_v20  ;;  %v1933_v20 = vmul.f32 %v5194_v47, %v6222_v29 }
 0x3f7   : > { %2664 = vperm.xlu1 %3227, %v2124_v51  }
 0x3f9   : > { %v2185_v8 = vpop.permute.xlu1 %2184 }
 0x3fa   : > { %v5315_v33 = vmul.f32 %v5242_v57, %v2185_v8  ;;  %v5318_v14 = vmul.f32 %v5244_v1, %v2185_v8  ;;  %2254 = vperm.xlu2 %3225, %v1900_v2   ;;  %2294 = vperm.xlu0 %3226, %v1908_v37   ;;  %v1913_v2 = vmul.f32 %v5194_v47, %v6226_v30 }
 0x3fb   : > { %v1903_v37 = vadd.f32 %v5174_v53, %v1710_v11  ;;  %v1713_v11 = vmul.f32 %v5007_v52, %v6187_v3  ;;  %v1939_v52 = vmul.f32 %v5194_v47, %v6224_v54 }
 0x3fc   : > { %v2054_v51 = vpop.permute.xlu2 %2053  ;;  %v5326_v9 = vpop.permute.xlu0 %2051  ;;  %v2107_v29 = vadd.f32 %v5090_v49, %v1913_v2  ;;  %v1916_v2 = vmul.f32 %v5194_v47, %v6227_v16 }
 0x3fd   : > { %v2127_v7 = vadd.f32 %v2054_v51, %v1933_v20  ;;  %v1936_v20 = vmul.f32 %v5194_v47, %v6223_v56 }
 0x3fe   : > { %v2110_v56 = vadd.f32 %v5108_v60, %v1916_v2 }
 0x3ff   : > { %2679 = vperm.xlu1 %3227, %v2127_v7  }
 0x401   : > { %v2200_v8 = vpop.permute.xlu1 %2199 }
 0x402   : > { %v5335_v28 = vmul.f32 %v5242_v57, %v2200_v8  ;;  %v5338_v35 = vmul.f32 %v5244_v1, %v2200_v8  ;;  %2269 = vperm.xlu2 %3225, %v1903_v37   ;;  %2579 = vperm.xlu0 %3226, %v2107_v29   ;;  %v1906_v37 = vadd.f32 %v5186_v40, %v1713_v11 }
 0x403   : > { %v1919_v11 = vmul.f32 %v5194_v47, %v6228_v27 }
 0x404   : > { %v2060_v51 = vpop.permute.xlu2 %2059  ;;  %v5346_v7 = vpop.permute.xlu0 %2057 }
 0x405   : > { %v2130_v49 = vadd.f32 %v2060_v51, %v1936_v20  ;;  %v2113_v54 = vadd.f32 %v5123_v42, %v1919_v11 }
 0x407   : > { %2694 = vperm.xlu1 %3227, %v2130_v49   ;;  %v1911_v49 = vmul.f32 %v5194_v47, %v6195_v48  ;;  %v1942_v48 = vmul.f32 %v5194_v47, %v6225_v58 }
 0x409   : > { %v2215_v29 = vpop.permute.xlu1 %2214  ;;  %v2105_v2 = vadd.f32 %v5200_v17, %v1911_v49  ;;  %v1922_v49 = vmul.f32 %v5194_v47, %v6230_v50 }
 0x40a   : > { %v5355_v8 = vmul.f32 %v5242_v57, %v2215_v29  ;;  %v5358_v53 = vmul.f32 %v5244_v1, %v2215_v29  ;;  %2284 = vperm.xlu2 %3225, %v1906_v37   ;;  %2594 = vperm.xlu0 %3226, %v2110_v56  }
 0x40b   : > { %v2116_v58 = vadd.f32 %v5138_v25, %v1922_v49 }
 0x40c   : > { %v2066_v20 = vpop.permute.xlu2 %2065  ;;  %v5366_v51 = vpop.permute.xlu0 %2063 }
 0x40d   : > { %v2133_v60 = vadd.f32 %v2066_v20, %v1939_v52 }
 0x40f   : > { %2709 = vperm.xlu1 %3227, %v2133_v60   ;;  %v1914_v60 = vmul.f32 %v5194_v47, %v6199_v55 }
 0x411   : > { %v2230_v37 = vpop.permute.xlu1 %2229  ;;  %v2108_v11 = vadd.f32 %v5210_v13, %v1914_v60 }
 0x412   : > { %v5375_v56 = vmul.f32 %v5242_v57, %v2230_v37  ;;  %v5378_v29 = vmul.f32 %v5244_v1, %v2230_v37  ;;  %2569 = vperm.xlu2 %3225, %v2105_v2   ;;  %2609 = vperm.xlu0 %3226, %v2113_v54  }
 0x414   : > { %v2072_v52 = vpop.permute.xlu2 %2071  ;;  %v5386_v20 = vpop.permute.xlu0 %2069 }
 0x415   : > { %v2136_v42 = vadd.f32 %v2072_v52, %v1942_v48 }
 0x417   : > { %2724 = vperm.xlu1 %3227, %v2136_v42   ;;  %v1917_v42 = vmul.f32 %v5194_v47, %v6202_v34  ;;  %v2441_v34 = vmul.f32 1.442695, %v2376_v5 }
 0x419   : > { %v2245_v2 = vpop.permute.xlu1 %2244 }
 0x41a   : > { %v5395_v54 = vmul.f32 %v5242_v57, %v2245_v2  ;;  %v5398_v37 = vmul.f32 %v5244_v1, %v2245_v2  ;;  %2584 = vperm.xlu2 %3225, %v2108_v11   ;;  %2624 = vperm.xlu0 %3226, %v2116_v58   ;;  %v1925_v11 = vmul.f32 %v5194_v47, %v6233_v41  ;;  %v2439_v58 = vmul.f32 1.442695, %v2375_v4 }
 0x41c   : > { %v2150_v48 = vpop.permute.xlu2 %2149  ;;  %v2145_v52 = vpop.permute.xlu0 %2144  ;;  %v2119_v41 = vadd.f32 %v5154_v31, %v1925_v11  ;;  %3360 = vpow2.f32 %v2439_v58  ;;  %v6237_v58 = vsub.f32 %v5295_v36, %v5250_v24 }
 0x41d   : > { %v2308_v13 = vmul.f32 %v5242_v57, %v2150_v48  ;;  %v2309_v25 = vmul.f32 %v5244_v1, %v2150_v48  ;;  %v2306_v60 = vmul.f32 %v5242_v57, %v2145_v52  ;;  %v2307_v49 = vmul.f32 %v5244_v1, %v2145_v52 }
 0x41e   : > { %v2111_v48 = vadd.f32 %v5222_v22, %v1917_v42  ;;  %v1928_v22 = vmul.f32 %v5194_v47, %v3719_v38  ;;  %3362 = vpow2.f32 %v2441_v34  ;;  %v6235_v42 = vsub.f32 %v5275_v0, %v5250_v24 }
 0x41f   : > { %v2379_v2 = vsub.f32 %v2308_v13, %v5250_v24  ;;  %v2380_v50 = vsub.f32 %v2309_v25, %v5252_v23  ;;  %v2377_v55 = vsub.f32 %v2306_v60, %v5250_v24  ;;  %v2378_v52 = vsub.f32 %v2307_v49, %v5252_v23 }
 0x420   : > { %v2451_v60 = vmul.f32 1.442695, %v6235_v42  ;;  %v2122_v36 = vadd.f32 %v5169_v32, %v1928_v22  ;;  %v6238_v32 = vsub.f32 %v5298_v63, %v5252_v23 }
 0x421   : > { %v2260_v17 = vpop.permute.xlu1 %2259  ;;  %v2443_v27 = vmul.f32 1.442695, %v2377_v55  ;;  %v2445_v59 = vmul.f32 1.442695, %v2378_v52  ;;  %v2447_v5 = vmul.f32 1.442695, %v2379_v2  ;;  %v2114_v52 = vadd.f32 %v5238_v12, %v1920_v26 }
 0x422   : > { %v5425_v4 = vmul.f32 %v5242_v57, %v2260_v17  ;;  %v5428_v13 = vmul.f32 %v5244_v1, %v2260_v17  ;;  %2599 = vperm.xlu2 %3225, %v2111_v48   ;;  %2639 = vperm.xlu0 %3226, %v2119_v41   ;;  %v2449_v31 = vmul.f32 1.442695, %v2380_v50  ;;  %v6236_v50 = vsub.f32 %v5278_v62, %v5252_v23  ;;  %v5455_v41 = vpop.eup %3360 }
 0x423   : > { %3364 = vpow2.f32 %v2443_v27  ;;  %v2463_v2 = vmul.f32 1.442695, %v6237_v58  ;;  %v2465_v22 = vmul.f32 1.442695, %v6238_v32 }
 0x424   : > { %v2165_v17 = vpop.permute.xlu2 %2164  ;;  %v2160_v49 = vpop.permute.xlu0 %2159  ;;  %v2453_v11 = vmul.f32 1.442695, %v6236_v50  ;;  %3366 = vpow2.f32 %v2445_v59 }
 0x425   : > { %v2314_v38 = vmul.f32 %v5242_v57, %v2165_v17  ;;  %v2315_v19 = vmul.f32 %v5244_v1, %v2165_v17  ;;  %v2312_v48 = vmul.f32 %v5242_v57, %v2160_v49  ;;  %3368 = vpow2.f32 %v2447_v5  ;;  %v5459_v42 = vpop.eup %3362 }
 0x426   : > { %v2313_v34 = vmul.f32 %v5244_v1, %v2160_v49  ;;  %3370 = vpow2.f32 %v2449_v31 }
 0x427   : > { %v2385_v0 = vsub.f32 %v2314_v38, %v5250_v24  ;;  %v2386_v27 = vsub.f32 %v2315_v19, %v5252_v23  ;;  %v2383_v62 = vsub.f32 %v2312_v48, %v5250_v24  ;;  %3372 = vpow2.f32 %v2451_v60 }
 0x428   : > { %v2384_v17 = vsub.f32 %v2313_v34, %v5252_v23  ;;  %3374 = vpow2.f32 %v2453_v11 }
 0x429   : > { %v2459_v59 = vmul.f32 1.442695, %v2385_v0  ;;  %v2275_v5 = vpop.permute.xlu1 %2274  ;;  %v2455_v38 = vmul.f32 1.442695, %v2383_v62  ;;  %v5467_v26 = vpop.eup %3364  ;;  %3376 = vpow2.f32 %v2463_v2  ;;  %v2461_v31 = vmul.f32 1.442695, %v2386_v27 }
 0x42a   : > { %v5462_v19 = vmul.f32 %v5242_v57, %v2275_v5  ;;  %v5465_v12 = vmul.f32 %v5244_v1, %v2275_v5  ;;  %2614 = vperm.xlu2 %3225, %v2114_v52   ;;  %v2457_v60 = vmul.f32 1.442695, %v2384_v17  ;;  %2654 = vperm.xlu0 %3226, %v2122_v36   ;;  %v5472_v49 = vpop.eup %3366  ;;  %v2867_v50 = vadd.f32 %v5467_v26, %v5455_v41 }
 0x42b   : > { %3378 = vpow2.f32 %v2459_v59  ;;  %v5480_v48 = vpop.eup %3368  ;;  %v2904_v63 = vadd.f32 %v5472_v49, %v5459_v42  ;;  %v1931_v62 = vmul.f32 %v5194_v47, %v6167_v39  ;;  %v1923_v36 = vmul.f32 %v5194_v47, %v6208_v45 }
 0x42c   : > { %v2180_v2 = vpop.permute.xlu2 %2179  ;;  %3380 = vpow2.f32 %v2455_v38  ;;  %v2175_v34 = vpop.permute.xlu0 %2174  ;;  %v2868_v59 = vadd.f32 %v5480_v48, %v2867_v50 }
 0x42d   : > { %v2320_v0 = vmul.f32 %v5242_v57, %v2180_v2  ;;  %v2321_v27 = vmul.f32 %v5244_v1, %v2180_v2  ;;  %v5486_v52 = vpop.eup %3370  ;;  %3382 = vpow2.f32 %v2457_v60  ;;  %v2318_v2 = vmul.f32 %v5242_v57, %v2175_v34 }
 0x42e   : > { %v5493_v17 = vpop.eup %3372  ;;  %v2905_v5 = vadd.f32 %v5486_v52, %v2904_v63  ;;  %v2117_v39 = vadd.f32 %v5266_v21, %v1923_v36  ;;  %3384 = vpow2.f32 %v2461_v31  ;;  %v2319_v50 = vmul.f32 %v5244_v1, %v2175_v34 }
 0x42f   : > { %v2391_v38 = vsub.f32 %v2320_v0, %v5250_v24  ;;  %v2392_v32 = vsub.f32 %v2321_v27, %v5252_v23  ;;  %v5499_v58 = vpop.eup %3374  ;;  %v2869_v45 = vadd.f32 %v5493_v17, %v2868_v59  ;;  %v2125_v11 = vadd.f32 %v5182_v15, %v1931_v62 }
 0x430   : > { %v5504_v60 = vpop.eup %3376  ;;  %3386 = vpow2.f32 %v2465_v22  ;;  %v2906_v63 = vadd.f32 %v5499_v58, %v2905_v5  ;;  %v2389_v55 = vsub.f32 %v2318_v2, %v5250_v24  ;;  %v2390_v21 = vsub.f32 %v2319_v50, %v5252_v23 }
 0x431   : > { %v2471_v0 = vmul.f32 1.442695, %v2391_v38  ;;  %v2290_v27 = vpop.permute.xlu1 %2289  ;;  %v5508_v25 = vpop.eup %3378  ;;  %v1934_v15 = vmul.f32 %v5194_v47, %v6172_v6  ;;  %v1926_v22 = vmul.f32 %v5194_v47, %v6212_v61  ;;  %v6239_v62 = vsub.f32 %v5315_v33, %v5250_v24 }
 0x432   : > { %v5513_v31 = vmul.f32 %v5242_v57, %v2290_v27  ;;  %v5516_v34 = vmul.f32 %v5244_v1, %v2290_v27  ;;  %2629 = vperm.xlu2 %3225, %v2117_v39   ;;  %v5518_v36 = vpop.eup %3380  ;;  %v2473_v5 = vmul.f32 1.442695, %v2392_v32  ;;  %2669 = vperm.xlu0 %3226, %v2125_v11   ;;  %v2467_v39 = vmul.f32 1.442695, %v2389_v55 }
 0x433   : > { %v2475_v59 = vmul.f32 1.442695, %v6239_v62  ;;  %v5527_v38 = vpop.eup %3382  ;;  %v2870_v2 = vadd.f32 %v5518_v36, %v2869_v45  ;;  %3388 = vpow2.f32 %v2471_v0  ;;  %v2469_v50 = vmul.f32 1.442695, %v2390_v21 }
 0x434   : > { %v2195_v27 = vpop.permute.xlu2 %2194  ;;  %v2907_v40 = vadd.f32 %v5527_v38, %v2906_v63  ;;  %v2190_v32 = vpop.permute.xlu0 %2189  ;;  %3390 = vpow2.f32 %v2467_v39  ;;  %v2120_v63 = vadd.f32 %v5286_v10, %v1926_v22  ;;  %v6240_v21 = vsub.f32 %v5318_v14, %v5252_v23 }
 0x435   : > { %v2326_v33 = vmul.f32 %v5242_v57, %v2195_v27  ;;  %v5536_v11 = vpop.eup %3384  ;;  %v2871_v62 = vadd.f32 %v5508_v25, %v2870_v2  ;;  %v2327_v55 = vmul.f32 %v5244_v1, %v2195_v27  ;;  %v2324_v45 = vmul.f32 %v5242_v57, %v2190_v32 }
 0x436   : > { %v5541_v0 = vpop.eup %3386  ;;  %v2477_v61 = vmul.f32 1.442695, %v6240_v21  ;;  %v2908_v6 = vadd.f32 %v5536_v11, %v2907_v40  ;;  %3392 = vpow2.f32 %v2469_v50  ;;  %v2325_v27 = vmul.f32 %v5244_v1, %v2190_v32 }
 0x437   : > { %v2872_v16 = vadd.f32 %v5504_v60, %v2871_v62  ;;  %v2397_v2 = vsub.f32 %v2326_v33, %v5250_v24  ;;  %v2398_v39 = vsub.f32 %v2327_v55, %v5252_v23  ;;  %v2128_v30 = vadd.f32 %v5198_v46, %v1934_v15 }
 0x438   : > { %3394 = vpow2.f32 %v2473_v5  ;;  %v2909_v10 = vadd.f32 %v5541_v0, %v2908_v6  ;;  %v2395_v22 = vsub.f32 %v2324_v45, %v5250_v24  ;;  %v1929_v40 = vmul.f32 %v5194_v47, %v6177_v18 }
 0x439   : > { %v5555_v14 = vpop.eup %3388  ;;  %3396 = vpow2.f32 %v2475_v59  ;;  %v2396_v50 = vsub.f32 %v2325_v27, %v5252_v23  ;;  %v1937_v33 = vmul.f32 %v5194_v47, %v6178_v44  ;;  %v6241_v46 = vsub.f32 %v5335_v28, %v5250_v24 }
 0x43a   : > { %2644 = vperm.xlu2 %3225, %v2120_v63   ;;  %3398 = vpow2.f32 %v2477_v61  ;;  %v2479_v5 = vmul.f32 1.442695, %v2395_v22  ;;  %2684 = vperm.xlu0 %3226, %v2128_v30   ;;  %v5565_v6 = vpop.eup %3390  ;;  %v2123_v32 = vadd.f32 %v5306_v43, %v1929_v40  ;;  %v6242_v18 = vsub.f32 %v5338_v35, %v5252_v23 }
 0x43b   : > { %v2487_v15 = vmul.f32 1.442695, %v6241_v46  ;;  %v2483_v62 = vmul.f32 1.442695, %v2397_v2  ;;  %v2481_v55 = vmul.f32 1.442695, %v2396_v50  ;;  %v2873_v44 = vadd.f32 %v5565_v6, %v2872_v16 }
 0x43c   : > { %v2489_v59 = vmul.f32 1.442695, %v6242_v18  ;;  %v2210_v45 = vpop.permute.xlu2 %2209  ;;  %v5571_v63 = vpop.eup %3392  ;;  %v2485_v61 = vmul.f32 1.442695, %v2398_v39  ;;  %3400 = vpow2.f32 %v2479_v5  ;;  %v6243_v18 = vld [vmem:[#allocation47_spill] sm:$0xff] }
 0x43d   : > { %v2332_v28 = vmul.f32 %v5242_v57, %v2210_v45  ;;  %v2333_v30 = vmul.f32 %v5244_v1, %v2210_v45  ;;  %v2205_v21 = vpop.permute.xlu0 %2204  ;;  %v2910_v27 = vadd.f32 %v5571_v63, %v2909_v10  ;;  %v2874_v22 = vadd.f32 %v5555_v14, %v2873_v44 }
 0x43e   : > { %v2330_v43 = vmul.f32 %v5242_v57, %v2205_v21  ;;  %v2331_v35 = vmul.f32 %v5244_v1, %v2205_v21  ;;  %v5579_v2 = vpop.eup %3394  ;;  %3402 = vpow2.f32 %v2481_v55  ;;  %v2131_v45 = vadd.f32 %v6243_v18, %v1937_v33  ;;  %v6244_v21 = vld [vmem:[#allocation29_spill] sm:$0xff] }
 0x43f   : > { %v2403_v16 = vsub.f32 %v2332_v28, %v5250_v24  ;;  %v2404_v39 = vsub.f32 %v2333_v30, %v5252_v23  ;;  %v5584_v40 = vpop.eup %3396  ;;  %v2911_v50 = vadd.f32 %v5579_v2, %v2910_v27  ;;  %3404 = vpow2.f32 %v2483_v62 }
 0x440   : > { %v2401_v10 = vsub.f32 %v2330_v43, %v5250_v24  ;;  %v2402_v46 = vsub.f32 %v2331_v35, %v5252_v23  ;;  %v5589_v5 = vpop.eup %3398  ;;  %v1932_v55 = vmul.f32 %v5194_v47, %v6244_v21  ;;  %3406 = vpow2.f32 %v2485_v61 }
 0x441   : > { %v2875_v44 = vadd.f32 %v5584_v40, %v2874_v22  ;;  %3408 = vpow2.f32 %v2487_v15  ;;  %v2912_v28 = vadd.f32 %v5589_v5, %v2911_v50  ;;  %v1940_v62 = vmul.f32 %v5194_v47, %v6187_v3 }
 0x442   : > { %v2491_v30 = vmul.f32 1.442695, %v2401_v10  ;;  %v2493_v27 = vmul.f32 1.442695, %v2402_v46  ;;  %2659 = vperm.xlu2 %3225, %v2123_v32   ;;  %3410 = vpow2.f32 %v2489_v59  ;;  %v2495_v43 = vmul.f32 1.442695, %v2403_v16  ;;  %2699 = vperm.xlu0 %3226, %v2131_v45   ;;  %v5598_v35 = vpop.eup %3400 }
 0x443   : > { %v2126_v33 = vadd.f32 %v5326_v9, %v1932_v55  ;;  %v6245_v61 = vsub.f32 %v5355_v8, %v5250_v24  ;;  %v6246_v15 = vsub.f32 %v5358_v53, %v5252_v23  ;;  %v2497_v10 = vmul.f32 1.442695, %v2404_v39 }
 0x444   : > { %v2225_v32 = vpop.permute.xlu2 %2224  ;;  %v5607_v46 = vpop.eup %3402  ;;  %v2876_v3 = vadd.f32 %v5598_v35, %v2875_v44  ;;  %3412 = vpow2.f32 %v2491_v30 }
 0x445   : > { %v2499_v22 = vmul.f32 1.442695, %v6245_v61  ;;  %v2501_v50 = vmul.f32 1.442695, %v6246_v15  ;;  %6247 = vst [vmem:[#allocation50_spill] sm:$0xff] %v5607_v46  ;;  %v2338_v59 = vmul.f32 %v5242_v57, %v2225_v32  ;;  %v2339_v16 = vmul.f32 %v5244_v1, %v2225_v32  ;;  %v2220_v9 = vpop.permute.xlu0 %2219  ;;  %v5612_v18 = vpop.eup %3404  ;;  %v6249_v32 = vld [vmem:[#allocation48_spill] sm:$0xff] }
 0x446   : > { %v2913_v8 = vadd.f32 %v5607_v46, %v2912_v28  ;;  %3414 = vpow2.f32 %v2493_v27  ;;  %v2336_v53 = vmul.f32 %v5242_v57, %v2220_v9  ;;  %v2337_v39 = vmul.f32 %v5244_v1, %v2220_v9  ;;  %v5617_v45 = vpop.eup %3406  ;;  %v6250_v46 = vld [vmem:[#allocation33_spill] sm:$0xff] }
 0x447   : > { %6248 = vst [vmem:[#allocation35_spill] sm:$0xff] %v5617_v45  ;;  %v2877_v21 = vadd.f32 %v5612_v18, %v2876_v3  ;;  %3416 = vpow2.f32 %v2495_v43  ;;  %v2409_v55 = vsub.f32 %v2338_v59, %v5250_v24  ;;  %v2410_v44 = vsub.f32 %v2339_v16, %v5252_v23  ;;  %v5622_v30 = vpop.eup %3408 }
 0x448   : > { %v2914_v61 = vadd.f32 %v5617_v45, %v2913_v8  ;;  %3418 = vpow2.f32 %v2497_v10  ;;  %v2407_v28 = vsub.f32 %v2336_v53, %v5250_v24  ;;  %v2408_v27 = vsub.f32 %v2337_v39, %v5252_v23  ;;  %v5627_v15 = vpop.eup %3410 }
 0x449   : > { %v2134_v9 = vadd.f32 %v6249_v32, %v1940_v62  ;;  %v1935_v43 = vmul.f32 %v5194_v47, %v6250_v46  ;;  %3420 = vpow2.f32 %v2499_v22  ;;  %v2878_v3 = vadd.f32 %v5622_v30, %v2877_v21 }
 0x44a   : > { %3422 = vpow2.f32 %v2501_v50  ;;  %v2915_v59 = vadd.f32 %v5627_v15, %v2914_v61  ;;  %v2503_v16 = vmul.f32 1.442695, %v2407_v28  ;;  %v2505_v8 = vmul.f32 1.442695, %v2408_v27  ;;  %2674 = vperm.xlu2 %3225, %v2126_v33   ;;  %v5634_v10 = vpop.eup %3412 }
 0x44b   : > { %v2129_v53 = vadd.f32 %v5346_v7, %v1935_v43  ;;  %v2507_v39 = vmul.f32 1.442695, %v2409_v55  ;;  %2714 = vperm.xlu0 %3226, %v2134_v9   ;;  %v6251_v62 = vsub.f32 %v5375_v56, %v5250_v24  ;;  %v6252_v50 = vsub.f32 %v5378_v29, %v5252_v23 }
 0x44c   : > { %v5637_v45 = vpop.eup %3414  ;;  %v2879_v21 = vadd.f32 %v5634_v10, %v2878_v3  ;;  %v2509_v61 = vmul.f32 1.442695, %v2410_v44  ;;  %v2240_v33 = vpop.permute.xlu2 %2239  ;;  %3424 = vpow2.f32 %v2503_v16 }
 0x44d   : > { %v2511_v22 = vmul.f32 1.442695, %v6251_v62  ;;  %v2513_v46 = vmul.f32 1.442695, %v6252_v50  ;;  %v5646_v28 = vpop.eup %3416  ;;  %v2916_v7 = vadd.f32 %v5637_v45, %v2915_v59  ;;  %v2344_v55 = vmul.f32 %v5242_v57, %v2240_v33  ;;  %v2235_v32 = vpop.permute.xlu0 %2234 }
 0x44e   : > { %v2345_v27 = vmul.f32 %v5244_v1, %v2240_v33  ;;  %v5651_v56 = vpop.eup %3418  ;;  %v2880_v9 = vadd.f32 %v5646_v28, %v2879_v21  ;;  %3426 = vpow2.f32 %v2505_v8  ;;  %v2342_v29 = vmul.f32 %v5242_v57, %v2235_v32  ;;  %v6254_v33 = vld [vmem:[#allocation41_spill] sm:$0xff] }
 0x44f   : > { %6253 = vst [vmem:[#allocation51_spill] sm:$0xff] %v5651_v56  ;;  %v2343_v44 = vmul.f32 %v5244_v1, %v2235_v32  ;;  %v5656_v43 = vpop.eup %3420  ;;  %v2917_v3 = vadd.f32 %v5651_v56, %v2916_v7  ;;  %3428 = vpow2.f32 %v2507_v39  ;;  %v2415_v59 = vsub.f32 %v2344_v55, %v5250_v24 }
 0x450   : > { %v2416_v16 = vsub.f32 %v2345_v27, %v5252_v23  ;;  %v5661_v62 = vpop.eup %3422  ;;  %3430 = vpow2.f32 %v2509_v61  ;;  %v2881_v50 = vadd.f32 %v5656_v43, %v2880_v9  ;;  %v2413_v8 = vsub.f32 %v2342_v29, %v5250_v24 }
 0x451   : > { %v2414_v21 = vsub.f32 %v2343_v44, %v5252_v23  ;;  %v1938_v32 = vmul.f32 %v5194_v47, %v6254_v33  ;;  %3432 = vpow2.f32 %v2511_v22  ;;  %v2918_v7 = vadd.f32 %v5661_v62, %v2917_v3 }
 0x452   : > { %3434 = vpow2.f32 %v2513_v46  ;;  %v2515_v39 = vmul.f32 1.442695, %v2413_v8  ;;  %2689 = vperm.xlu2 %3225, %v2129_v53   ;;  %v5669_v27 = vpop.eup %3424  ;;  %v2519_v56 = vmul.f32 1.442695, %v2415_v59  ;;  %v6256_v29 = vsub.f32 %v5395_v54, %v5250_v24 }
 0x453   : > { %v2517_v55 = vmul.f32 1.442695, %v2414_v21  ;;  %v2132_v61 = vadd.f32 %v5366_v51, %v1938_v32  ;;  %v6257_v22 = vsub.f32 %v5398_v37, %v5252_v23  ;;  %v2882_v46 = vadd.f32 %v5669_v27, %v2881_v50 }
 0x454   : > { %v5672_v9 = vpop.eup %3426  ;;  %v2523_v44 = vmul.f32 1.442695, %v6256_v29  ;;  %v2521_v3 = vmul.f32 1.442695, %v2416_v16  ;;  %v2255_v8 = vpop.permute.xlu2 %2254  ;;  %3436 = vpow2.f32 %v2515_v39 }
 0x455   : > { %6255 = vst [vmem:[#allocation49_spill] sm:$0xff] %v5672_v9  ;;  %v2525_v33 = vmul.f32 1.442695, %v6257_v22  ;;  %v5681_v53 = vpop.eup %3428  ;;  %v2919_v21 = vadd.f32 %v5672_v9, %v2918_v7  ;;  %v2350_v51 = vmul.f32 %v5242_v57, %v2255_v8  ;;  %v2351_v59 = vmul.f32 %v5244_v1, %v2255_v8  ;;  %v2250_v32 = vpop.permute.xlu0 %2249 }
 0x456   : > { %6258 = vst [vmem:[#allocation53_spill] sm:$0xff] %v5681_v53  ;;  %v5686_v54 = vpop.eup %3430  ;;  %v2883_v29 = vadd.f32 %v5681_v53, %v2882_v46  ;;  %3438 = vpow2.f32 %v2517_v55  ;;  %v2348_v37 = vmul.f32 %v5242_v57, %v2250_v32  ;;  %v2349_v16 = vmul.f32 %v5244_v1, %v2250_v32  ;;  %v6260_v53 = vld [vmem:[#allocation44_spill] sm:$0xff] }
 0x457   : > { %6259 = vst [vmem:[#allocation28_spill] sm:$0xff] %v5686_v54  ;;  %v5691_v50 = vpop.eup %3432  ;;  %v2920_v22 = vadd.f32 %v5686_v54, %v2919_v21  ;;  %3440 = vpow2.f32 %v2519_v56  ;;  %v2421_v7 = vsub.f32 %v2350_v51, %v5250_v24  ;;  %v2422_v39 = vsub.f32 %v2351_v59, %v5252_v23  ;;  %v5704_v56 = vpop.permute.xlu1 %2574 }
 0x458   : > { %v5696_v8 = vpop.eup %3434  ;;  %3442 = vpow2.f32 %v2521_v3  ;;  %v2884_v9 = vadd.f32 %v5691_v50, %v2883_v29  ;;  %v2419_v55 = vsub.f32 %v2348_v37, %v5250_v24  ;;  %v2420_v46 = vsub.f32 %v2349_v16, %v5252_v23 }
 0x459   : > { %v1941_v32 = vmul.f32 %v5194_v47, %v6260_v53  ;;  %3444 = vpow2.f32 %v2523_v44  ;;  %v2921_v21 = vadd.f32 %v5696_v8, %v2920_v22  ;;  %v2531_v29 = vmul.f32 1.442695, %v2421_v7 }
 0x45a   : > { %3446 = vpow2.f32 %v2525_v33  ;;  %v2527_v51 = vmul.f32 1.442695, %v2419_v55  ;;  %v2529_v59 = vmul.f32 1.442695, %v2420_v46  ;;  %2704 = vperm.xlu2 %3225, %v2132_v61   ;;  %v5706_v54 = vpop.eup %3436  ;;  %v6262_v16 = vsub.f32 %v5425_v4, %v5250_v24 }
 0x45b   : > { %v2135_v3 = vadd.f32 %v5386_v20, %v1941_v32  ;;  %v6263_v44 = vsub.f32 %v5428_v13, %v5252_v23  ;;  %v2885_v53 = vadd.f32 %v5706_v54, %v2884_v9  ;;  %v2533_v22 = vmul.f32 1.442695, %v2422_v39 }
 0x45c   : > { %v5709_v37 = vpop.eup %3438  ;;  %v2535_v47 = vmul.f32 1.442695, %v6262_v16  ;;  %v2270_v55 = vpop.permute.xlu2 %2269  ;;  %3448 = vpow2.f32 %v2527_v51 }
 0x45d   : > { %6261 = vst [vmem:[#allocation34_spill] sm:$0xff] %v5709_v37  ;;  %v2537_v33 = vmul.f32 1.442695, %v6263_v44  ;;  %v5718_v61 = vpop.eup %3440  ;;  %v2922_v46 = vadd.f32 %v5709_v37, %v2921_v21  ;;  %v2356_v20 = vmul.f32 %v5242_v57, %v2270_v55  ;;  %v2357_v7 = vmul.f32 %v5244_v1, %v2270_v55  ;;  %v2265_v32 = vpop.permute.xlu0 %2264 }
 0x45e   : > { %6264 = vst [vmem:[#allocation55_spill] sm:$0xff] %v5718_v61  ;;  %v5723_v4 = vpop.eup %3442  ;;  %v2886_v16 = vadd.f32 %v5718_v61, %v2885_v53  ;;  %3450 = vpow2.f32 %v2529_v59  ;;  %v2354_v13 = vmul.f32 %v5242_v57, %v2265_v32  ;;  %v2355_v9 = vmul.f32 %v5244_v1, %v2265_v32 }
 0x45f   : > { %v5728_v39 = vpop.eup %3444  ;;  %v2923_v44 = vadd.f32 %v5723_v4, %v2922_v46  ;;  %3452 = vpow2.f32 %v2531_v29  ;;  %v2427_v21 = vsub.f32 %v2356_v20, %v5250_v24  ;;  %v2428_v51 = vsub.f32 %v2357_v7, %v5252_v23 }
 0x460   : > { %v5733_v55 = vpop.eup %3446  ;;  %3454 = vpow2.f32 %v2533_v22  ;;  %v2887_v37 = vadd.f32 %v5728_v39, %v2886_v16  ;;  %v2425_v59 = vsub.f32 %v2354_v13, %v5250_v24  ;;  %v2426_v53 = vsub.f32 %v2355_v9, %v5252_v23 }
 0x461   : > { %6265 = vst [vmem:[#allocation56_spill] sm:$0xff] %v5733_v55  ;;  %3456 = vpow2.f32 %v2535_v47  ;;  %v2924_v32 = vadd.f32 %v5733_v55, %v2923_v44  ;;  %v2543_v20 = vmul.f32 1.442695, %v2427_v21  ;;  %v6268_v22 = vsub.f32 %v5462_v19, %v5250_v24  ;;  %v5749_v47 = vpop.permute.xlu1 %2589 }
 0x462   : > { %3458 = vpow2.f32 %v2537_v33  ;;  %v2539_v61 = vmul.f32 1.442695, %v2425_v59  ;;  %v2541_v46 = vmul.f32 1.442695, %v2426_v53  ;;  %2719 = vperm.xlu2 %3225, %v2135_v3   ;;  %v5739_v29 = vpop.eup %3448  ;;  %v6269_v13 = vsub.f32 %v5465_v12, %v5252_v23 }
 0x463   : > { %6266 = vst [vmem:[#allocation57_spill] sm:$0xff] %v5739_v29  ;;  %v2547_v16 = vmul.f32 1.442695, %v6268_v22  ;;  %v2888_v33 = vadd.f32 %v5739_v29, %v2887_v37  ;;  %v2545_v44 = vmul.f32 1.442695, %v2428_v51 }
 0x464   : > { %v5741_v7 = vpop.eup %3450  ;;  %v2549_v9 = vmul.f32 1.442695, %v6269_v13  ;;  %v2285_v59 = vpop.permute.xlu2 %2284  ;;  %3460 = vpow2.f32 %v2539_v61 }
 0x465   : > { %6267 = vst [vmem:[#allocation31_spill] sm:$0xff] %v5741_v7  ;;  %v5752_v3 = vpop.eup %3452  ;;  %v2925_v21 = vadd.f32 %v5741_v7, %v2924_v32  ;;  %v2362_v53 = vmul.f32 %v5242_v57, %v2285_v59  ;;  %v2363_v19 = vmul.f32 %v5244_v1, %v2285_v59  ;;  %v2280_v22 = vpop.permute.xlu0 %2279  ;;  %3462 = vpow2.f32 %v2541_v46 }
 0x466   : > { %6270 = vst [vmem:[#allocation36_spill] sm:$0xff] %v5752_v3  ;;  %v5757_v55 = vpop.eup %3454  ;;  %v2889_v12 = vadd.f32 %v5752_v3, %v2888_v33  ;;  %v2360_v13 = vmul.f32 %v5242_v57, %v2280_v22  ;;  %v2361_v37 = vmul.f32 %v5244_v1, %v2280_v22  ;;  %3464 = vpow2.f32 %v2543_v20 }
 0x467   : > { %v5762_v51 = vpop.eup %3456  ;;  %v2926_v29 = vadd.f32 %v5757_v55, %v2925_v21  ;;  %v2433_v61 = vsub.f32 %v2362_v53, %v5250_v24  ;;  %v2434_v32 = vsub.f32 %v2363_v19, %v5252_v23  ;;  %3466 = vpow2.f32 %v2545_v44 }
 0x468   : > { %6271 = vst [vmem:[#allocation60_spill] sm:$0xff] %v5762_v51  ;;  %v5767_v59 = vpop.eup %3458  ;;  %v2890_v7 = vadd.f32 %v5762_v51, %v2889_v12  ;;  %v2431_v46 = vsub.f32 %v2360_v13, %v5250_v24  ;;  %v2432_v33 = vsub.f32 %v2361_v37, %v5252_v23  ;;  %3468 = vpow2.f32 %v2547_v16 }
 0x469   : > { %6272 = vst [vmem:[#allocation59_spill] sm:$0xff] %v5767_v59  ;;  %v2927_v22 = vadd.f32 %v5767_v59, %v2926_v29  ;;  %3470 = vpow2.f32 %v2549_v9  ;;  %v6273_v53 = vsub.f32 %v5513_v31, %v5250_v24  ;;  %v6274_v44 = vsub.f32 %v5516_v34, %v5252_v23 }
 0x46a   : > { %v2551_v3 = vmul.f32 1.442695, %v2431_v46  ;;  %v2553_v21 = vmul.f32 1.442695, %v2432_v33  ;;  %v5773_v20 = vpop.eup %3460  ;;  %v2555_v51 = vmul.f32 1.442695, %v2433_v61  ;;  %v2729_v16 = vmul.f32 %v5467_v26, %v5704_v56  ;;  %v2605_v26 = vpop.permute.xlu1 %2604 }
 0x46b   : > { %v2559_v19 = vmul.f32 1.442695, %v6273_v53  ;;  %v2561_v12 = vmul.f32 1.442695, %v6274_v44  ;;  %v5781_v13 = vpop.eup %3462  ;;  %v2730_v29 = vmul.f32 %v5472_v49, %v5704_v56  ;;  %v2891_v9 = vadd.f32 %v5773_v20, %v2890_v7 }
 0x46c   : > { %v2557_v37 = vmul.f32 1.442695, %v2434_v32  ;;  %v2570_v46 = vpop.permute.xlu2 %2569  ;;  %v5788_v33 = vpop.eup %3464  ;;  %v2928_v31 = vadd.f32 %v5781_v13, %v2927_v22  ;;  %3472 = vpow2.f32 %v2551_v3 }
 0x46d   : > { %v2727_v34 = vmul.f32 %v5455_v41, %v2570_v46  ;;  %v2728_v61 = vmul.f32 %v5459_v42, %v2570_v46  ;;  %v2295_v53 = vpop.permute.xlu0 %2294  ;;  %v5793_v44 = vpop.eup %3466  ;;  %v2892_v59 = vadd.f32 %v5788_v33, %v2891_v9  ;;  %3474 = vpow2.f32 %v2553_v21 }
 0x46e   : > { %v2366_v49 = vmul.f32 %v5242_v57, %v2295_v53  ;;  %v2367_v56 = vmul.f32 %v5244_v1, %v2295_v53  ;;  %v5798_v7 = vpop.eup %3468  ;;  %v2929_v32 = vadd.f32 %v5793_v44, %v2928_v31  ;;  %3476 = vpow2.f32 %v2555_v51 }
 0x46f   : > { %v2791_v3 = vadd.f32 %v2729_v16, %v2727_v34  ;;  %v2828_v41 = vadd.f32 %v2730_v29, %v2728_v61  ;;  %v5801_v22 = vpop.eup %3470  ;;  %3478 = vpow2.f32 %v2557_v37  ;;  %v2893_v42 = vadd.f32 %v5798_v7, %v2892_v59 }
 0x470   : > { %v2437_v46 = vsub.f32 %v2366_v49, %v5250_v24  ;;  %v2438_v21 = vsub.f32 %v2367_v56, %v5252_v23  ;;  %3480 = vpow2.f32 %v2559_v19  ;;  %v2930_v57 = vadd.f32 %v5801_v22, %v2929_v32 }
 0x471   : > { %3482 = vpow2.f32 %v2561_v12 }
 0x472   : > { %v2563_v1 = vmul.f32 1.442695, %v2437_v46  ;;  %v2565_v9 = vmul.f32 1.442695, %v2438_v21  ;;  %v5807_v53 = vpop.eup %3472  ;;  %v2620_v32 = vpop.permute.xlu1 %2619 }
 0x473   : > { %v5809_v51 = vpop.eup %3474  ;;  %v2894_v16 = vadd.f32 %v5807_v53, %v2893_v42 }
 0x474   : > { %3484 = vpow2.f32 %v2563_v1  ;;  %v2585_v29 = vpop.permute.xlu2 %2584  ;;  %v5812_v37 = vpop.eup %3476  ;;  %v2931_v24 = vadd.f32 %v5809_v51, %v2930_v57 }
 0x475   : > { %3486 = vpow2.f32 %v2565_v9  ;;  %v2580_v23 = vpop.permute.xlu0 %2579  ;;  %v5815_v59 = vpop.eup %3478  ;;  %v2895_v19 = vadd.f32 %v5812_v37, %v2894_v16  ;;  %v2733_v49 = vmul.f32 %v5493_v17, %v2585_v29  ;;  %v2734_v46 = vmul.f32 %v5499_v58, %v2585_v29 }
 0x476   : > { %v2731_v12 = vmul.f32 %v5480_v48, %v2580_v23  ;;  %v2732_v31 = vmul.f32 %v5486_v52, %v2580_v23  ;;  %v5820_v34 = vpop.eup %3480  ;;  %v2932_v61 = vadd.f32 %v5815_v59, %v2931_v24  ;;  %v2735_v52 = vmul.f32 %v5518_v36, %v5749_v47 }
 0x477   : > { %v5824_v56 = vpop.eup %3482  ;;  %v2896_v42 = vadd.f32 %v5820_v34, %v2895_v19  ;;  %v2736_v9 = vmul.f32 %v5527_v38, %v5749_v47 }
 0x478   : > { %v2792_v21 = vadd.f32 %v2791_v3, %v2731_v12  ;;  %v2829_v57 = vadd.f32 %v2828_v41, %v2732_v31  ;;  %v2933_v1 = vadd.f32 %v5824_v56, %v2932_v61 }
 0x47a   : > { %v5829_v48 = vpop.eup %3484  ;;  %v2793_v17 = vadd.f32 %v2792_v21, %v2733_v49  ;;  %v2830_v16 = vadd.f32 %v2829_v57, %v2734_v46  ;;  %v2741_v49 = vmul.f32 %v5565_v6, %v2605_v26  ;;  %v2635_v46 = vpop.permute.xlu1 %2634  ;;  %v2747_v6 = vmul.f32 %v5598_v35, %v2620_v32 }
 0x47b   : > { %v5835_v24 = vpop.eup %3486  ;;  %v5838_v23 = vadd.f32 %v5829_v48, %v2896_v42  ;;  %v2742_v42 = vmul.f32 %v5571_v63, %v2605_v26  ;;  %v6275_v63 = vld [vmem:[#allocation50_spill] sm:$0xff]  ;;  %v2753_v35 = vmul.f32 %v5634_v10, %v2635_v46 }
 0x47c   : > { %v5841_v58 = vadd.f32 %v5835_v24, %v2933_v1  ;;  %v2600_v3 = vpop.permute.xlu2 %2599  ;;  %v2794_v41 = vadd.f32 %v2793_v17, %v2735_v52  ;;  %v2831_v29 = vadd.f32 %v2830_v16, %v2736_v9  ;;  %v2748_v26 = vmul.f32 %v6275_v63, %v2620_v32 }
 0x47d   : > { %v2595_v19 = vpop.permute.xlu0 %2594  ;;  %v2739_v38 = vmul.f32 %v5504_v60, %v2600_v3  ;;  %v2740_v47 = vmul.f32 %v5541_v0, %v2600_v3  ;;  %v2754_v32 = vmul.f32 %v5637_v45, %v2635_v46  ;;  %v6278_v45 = vld [vmem:[#allocation49_spill] sm:$0xff] }
 0x47e   : > { %v2737_v12 = vmul.f32 %v5508_v25, %v2595_v19  ;;  %v2738_v36 = vmul.f32 %v5536_v11, %v2595_v19 }
 0x480   : > { %v2795_v31 = vadd.f32 %v2794_v41, %v2737_v12  ;;  %v2832_v61 = vadd.f32 %v2831_v29, %v2738_v36 }
 0x482   : > { %v2796_v21 = vadd.f32 %v2795_v31, %v2739_v38  ;;  %v2833_v57 = vadd.f32 %v2832_v61, %v2740_v47  ;;  %v2650_v19 = vpop.permute.xlu1 %2649 }
 0x483   : > { %v2759_v10 = vmul.f32 %v5669_v27, %v2650_v19  ;;  %v2760_v46 = vmul.f32 %v6278_v45, %v2650_v19 }
 0x484   : > { %v2615_v1 = vpop.permute.xlu2 %2614  ;;  %v2797_v52 = vadd.f32 %v2796_v21, %v2741_v49  ;;  %v2834_v9 = vadd.f32 %v2833_v57, %v2742_v42 }
 0x485   : > { %v2610_v17 = vpop.permute.xlu0 %2609  ;;  %v2745_v60 = vmul.f32 %v5584_v40, %v2615_v1  ;;  %v2746_v0 = vmul.f32 %v5589_v5, %v2615_v1 }
 0x486   : > { %v2743_v25 = vmul.f32 %v5555_v14, %v2610_v17  ;;  %v2744_v11 = vmul.f32 %v5579_v2, %v2610_v17  ;;  %v6276_v2 = vld [vmem:[#allocation35_spill] sm:$0xff] }
 0x488   : > { %v2798_v16 = vadd.f32 %v2797_v52, %v2743_v25  ;;  %v2835_v3 = vadd.f32 %v2834_v9, %v2744_v11  ;;  %v6277_v25 = vld [vmem:[#allocation51_spill] sm:$0xff] }
 0x48a   : > { %v2799_v41 = vadd.f32 %v2798_v16, %v2745_v60  ;;  %v2836_v29 = vadd.f32 %v2835_v3, %v2746_v0  ;;  %v2665_v17 = vpop.permute.xlu1 %2664 }
 0x48c   : > { %v2630_v12 = vpop.permute.xlu2 %2629  ;;  %v2800_v36 = vadd.f32 %v2799_v41, %v2747_v6  ;;  %v2837_v38 = vadd.f32 %v2836_v29, %v2748_v26  ;;  %v2898_v6 = vrot.slane %v5838_v23, 4 }
 0x48d   : > { %v2625_v47 = vpop.permute.xlu0 %2624  ;;  %v2751_v40 = vmul.f32 %v5622_v30, %v2630_v12  ;;  %v2752_v5 = vmul.f32 %v5627_v15, %v2630_v12  ;;  %v6279_v12 = vld [vmem:[#allocation53_spill] sm:$0xff] }
 0x48e   : > { %v2749_v14 = vmul.f32 %v5612_v18, %v2625_v47  ;;  %v2750_v31 = vmul.f32 %v6276_v2, %v2625_v47 }
 0x490   : > { %v2801_v61 = vadd.f32 %v2800_v36, %v2749_v14  ;;  %v2838_v49 = vadd.f32 %v2837_v38, %v2750_v31  ;;  %v6280_v36 = vld [vmem:[#allocation28_spill] sm:$0xff]  ;;  %v2899_v38 = vadd.f32 %v2898_v6, %v5838_v23 }
 0x492   : > { %v2802_v42 = vadd.f32 %v2801_v61, %v2751_v40  ;;  %v2839_v21 = vadd.f32 %v2838_v49, %v2752_v5  ;;  %v2680_v47 = vpop.permute.xlu1 %2679  ;;  %v2765_v40 = vmul.f32 %v5706_v54, %v2665_v17  ;;  %v6281_v5 = vld [vmem:[#allocation34_spill] sm:$0xff] }
 0x493   : > { %v2766_v61 = vmul.f32 %v6281_v5, %v2665_v17 }
 0x494   : > { %v2645_v57 = vpop.permute.xlu2 %2644  ;;  %v2803_v1 = vadd.f32 %v2802_v42, %v2753_v35  ;;  %v2840_v52 = vadd.f32 %v2839_v21, %v2754_v32  ;;  %v2900_v32 = vrot.slane %v2899_v38, 2 }
 0x495   : > { %v2640_v9 = vpop.permute.xlu0 %2639  ;;  %v2757_v30 = vmul.f32 %v5656_v43, %v2645_v57  ;;  %v2758_v15 = vmul.f32 %v5661_v62, %v2645_v57 }
 0x496   : > { %v2755_v18 = vmul.f32 %v5646_v28, %v2640_v9  ;;  %v2756_v11 = vmul.f32 %v6277_v25, %v2640_v9  ;;  %v2935_v28 = vrot.slane %v5841_v58, 4  ;;  %v2901_v9 = vadd.f32 %v2900_v32, %v2899_v38 }
 0x498   : > { %v2804_v60 = vadd.f32 %v2803_v1, %v2755_v18  ;;  %v2841_v0 = vadd.f32 %v2840_v52, %v2756_v11  ;;  %v2936_v31 = vadd.f32 %v2935_v28, %v5841_v58  ;;  %v6282_v52 = vld [vmem:[#allocation55_spill] sm:$0xff]  ;;  %v6283_v58 = vld [vmem:[#allocation56_spill] sm:$0xff] }
 0x49a   : > { %v2805_v16 = vadd.f32 %v2804_v60, %v2757_v30  ;;  %v2842_v3 = vadd.f32 %v2841_v0, %v2758_v15  ;;  %v2937_v23 = vrot.slane %v2936_v31, 2  ;;  %v6284_v30 = vld [vmem:[#allocation57_spill] sm:$0xff]  ;;  %v6285_v60 = vld [vmem:[#allocation31_spill] sm:$0xff] }
 0x49b   : > { %v2771_v15 = vmul.f32 %v6284_v30, %v2680_v47  ;;  %v2772_v0 = vmul.f32 %v6285_v60, %v2680_v47 }
 0x49c   : > { %v2660_v63 = vpop.permute.xlu2 %2659  ;;  %v2806_v26 = vadd.f32 %v2805_v16, %v2759_v10  ;;  %v2843_v41 = vadd.f32 %v2842_v3, %v2760_v46  ;;  %v2938_v17 = vadd.f32 %v2937_v23, %v2936_v31  ;;  %v2695_v10 = vpop.permute.xlu1 %2694  ;;  %v2902_v16 = vrot.slane %v2901_v9, 1 }
 0x49d   : > { %v2655_v29 = vpop.permute.xlu0 %2654  ;;  %v2763_v27 = vmul.f32 %v5691_v50, %v2660_v63  ;;  %v2764_v19 = vmul.f32 %v5696_v8, %v2660_v63 }
 0x49e   : > { %v2761_v43 = vmul.f32 %v6279_v12, %v2655_v29  ;;  %v2762_v62 = vmul.f32 %v6280_v36, %v2655_v29  ;;  %v5885_v29 = vadd.f32 %v2902_v16, %v2901_v9  ;;  %v6287_v12 = vld [vmem:[#allocation60_spill] sm:$0xff]  ;;  %v6288_v36 = vld [vmem:[#allocation59_spill] sm:$0xff] }
 0x4a0   : > { %v2807_v14 = vadd.f32 %v2806_v26, %v2761_v43  ;;  %v2844_v2 = vadd.f32 %v2843_v41, %v2762_v62  ;;  %v6286_v41 = vld [vmem:[#allocation36_spill] sm:$0xff]  ;;  %3488 = vrcp.f32 %v5885_v29  ;;  %vm2988_vm12 = vweird.f32 %v5885_v29 }
 0x4a2   : > { %v2808_v49 = vadd.f32 %v2807_v14, %v2763_v27  ;;  %v2845_v35 = vadd.f32 %v2844_v2, %v2764_v19  ;;  %v2777_v19 = vmul.f32 %v5773_v20, %v2695_v10  ;;  %v2778_v14 = vmul.f32 %v5781_v13, %v2695_v10 }
 0x4a4   : > { %v2675_v42 = vpop.permute.xlu2 %2674  ;;  %v2809_v21 = vadd.f32 %v2808_v49, %v2765_v40  ;;  %v2846_v57 = vadd.f32 %v2845_v35, %v2766_v61  ;;  %v2710_v40 = vpop.permute.xlu1 %2709 }
 0x4a5   : > { %v2670_v1 = vpop.permute.xlu0 %2669  ;;  %v2769_v18 = vmul.f32 %v5728_v39, %v2675_v42  ;;  %v2770_v25 = vmul.f32 %v6283_v58, %v2675_v42  ;;  %v2783_v23 = vmul.f32 %v5807_v53, %v2710_v40 }
 0x4a6   : > { %v2767_v50 = vmul.f32 %v6282_v52, %v2670_v1  ;;  %v2768_v8 = vmul.f32 %v5723_v4, %v2670_v1  ;;  %v2939_v4 = vrot.slane %v2938_v17, 1  ;;  %v2784_v1 = vmul.f32 %v5809_v51, %v2710_v40 }
 0x4a8   : > { %v2810_v54 = vadd.f32 %v2809_v21, %v2767_v50  ;;  %v2847_v11 = vadd.f32 %v2846_v57, %v2768_v8  ;;  %v5889_v27 = vadd.f32 %v2939_v4, %v2938_v17  ;;  %v3489_v57 = vpop.eup %3488 }
 0x4a9   : > { %vm2989_vm10 = vweird.f32 %v3489_v57 }
 0x4aa   : > { %v2811_v45 = vadd.f32 %v2810_v54, %v2769_v18  ;;  %v2848_v46 = vadd.f32 %v2847_v11, %v2770_v25  ;;  %3490 = vrcp.f32 %v5889_v27  ;;  %vm2990_vm13 = vmor %vm2988_vm12, %vm2989_vm10  ;;  %vm3002_vm14 = vweird.f32 %v5889_v27 }
 0x4ac   : > { %v2690_v3 = vpop.permute.xlu2 %2689  ;;  %v2812_v6 = vadd.f32 %v2811_v45, %v2771_v15  ;;  %v2849_v63 = vadd.f32 %v2848_v46, %v2772_v0  ;;  %v2725_v25 = vpop.permute.xlu1 %2724 }
 0x4ad   : > { %v2685_v26 = vpop.permute.xlu0 %2684  ;;  %v2775_v43 = vmul.f32 %v6287_v12, %v2690_v3  ;;  %v2776_v62 = vmul.f32 %v6288_v36, %v2690_v3  ;;  %v2789_v30 = vmul.f32 %v5829_v48, %v2725_v25  ;;  %v2790_v15 = vmul.f32 %v5835_v24, %v2725_v25 }
 0x4ae   : > { %v2773_v39 = vmul.f32 %v6286_v41, %v2685_v26  ;;  %v2774_v28 = vmul.f32 %v5757_v55, %v2685_v26  ;;  %v2992_v24 = vand.u32 2147483647, %v5885_v29  ;;  %v2994_v41 = vand.u32 2147483648, %v5885_v29 }
 0x4b0   : > { %v2813_v38 = vadd.f32 %v2812_v6, %v2773_v39  ;;  %v2850_v47 = vadd.f32 %v2849_v63, %v2774_v28  ;;  %v3491_v8 = vpop.eup %3490  ;;  %v3008_v39 = vand.u32 2147483648, %v5889_v27  ;;  %vm2993_vm1 = vcmp.eq.f32.partialorder %v2992_v24, 8.507059e+37 }
 0x4b1   : > { %v2998_v54 = vmul.f32 %v3491_v8, %v5889_v27  ;;  %vm3003_vm11 = vweird.f32 %v3491_v8 }
 0x4b2   : > { %v2814_v2 = vadd.f32 %v2813_v38, %v2775_v43  ;;  %v2851_v31 = vadd.f32 %v2850_v47, %v2776_v62  ;;  %v3006_v43 = vand.u32 2147483647, %v5889_v27  ;;  %vm3004_vm15 = vmor %vm3002_vm14, %vm3003_vm11 }
 0x4b4   : > { %v2705_v55 = vpop.permute.xlu2 %2704  ;;  %v2815_v5 = vadd.f32 %v2814_v2, %v2777_v19  ;;  %v2852_v61 = vadd.f32 %v2851_v31, %v2778_v14  ;;  %v2995_v19 = vor.u32 1.1754944e-38, %v2994_v41  ;;  %v3009_v14 = vor.u32 1.1754944e-38, %v3008_v39 }
 0x4b5   : > { %v2700_v49 = vpop.permute.xlu0 %2699  ;;  %v2781_v42 = vmul.f32 %v5798_v7, %v2705_v55  ;;  %v2782_v20 = vmul.f32 %v5801_v22, %v2705_v55  ;;  %v2984_v22 = vmul.f32 %v3489_v57, %v5885_v29  ;;  %vm3007_vm2 = vcmp.eq.f32.partialorder %v3006_v43, 8.507059e+37 }
 0x4b6   : > { %v2779_v35 = vmul.f32 %v5788_v33, %v2700_v49  ;;  %v2780_v32 = vmul.f32 %v5793_v44, %v2700_v49 }
 0x4b7   : > { %v2985_v10 = vsub.f32 1.0, %v2984_v22 }
 0x4b8   : > { %v2816_v13 = vadd.f32 %v2815_v5, %v2779_v35  ;;  %v2853_v21 = vadd.f32 %v2852_v61, %v2780_v32 }
 0x4b9   : > { %v2986_v3 = vmul.f32 %v3489_v57, %v2985_v10 }
 0x4ba   : > { %v2817_v52 = vadd.f32 %v2816_v13, %v2781_v42  ;;  %v2854_v50 = vadd.f32 %v2853_v21, %v2782_v20 }
 0x4bb   : > { %v2987_v26 = vadd.f32 %v3489_v57, %v2986_v3 }
 0x4bc   : > { %v2818_v9 = vadd.f32 %v2817_v52, %v2783_v23  ;;  %v2855_v18 = vadd.f32 %v2854_v50, %v2784_v1  ;;  %v2720_v58 = vpop.permute.xlu2 %2719 }
 0x4bd   : > { %v2715_v33 = vpop.permute.xlu0 %2714  ;;  %v2787_v53 = vmul.f32 %v5820_v34, %v2720_v58  ;;  %v2788_v51 = vmul.f32 %v5824_v56, %v2720_v58  ;;  %v2991_v38 = vsel %vm2990_vm13, %v3489_v57, %v2987_v26 }
 0x4be   : > { %v2785_v44 = vmul.f32 %v5812_v37, %v2715_v33  ;;  %v2786_v7 = vmul.f32 %v5815_v59, %v2715_v33  ;;  %v2999_v37 = vsub.f32 1.0, %v2998_v54  ;;  %v2996_v29 = vsel %vm2993_vm1, %v2995_v19, %v2991_v38 }
 0x4c0   : > { %v2819_v11 = vadd.f32 %v2818_v9, %v2785_v44  ;;  %v2856_v17 = vadd.f32 %v2855_v18, %v2786_v7  ;;  %v3000_v6 = vmul.f32 %v3491_v8, %v2999_v37 }
 0x4c2   : > { %v2820_v60 = vadd.f32 %v2819_v11, %v2787_v53  ;;  %v2857_v0 = vadd.f32 %v2856_v17, %v2788_v51  ;;  %v3001_v48 = vadd.f32 %v3491_v8, %v3000_v6 }
 0x4c4   : > { %v2821_v45 = vadd.f32 %v2820_v60, %v2789_v30  ;;  %v2858_v59 = vadd.f32 %v2857_v0, %v2790_v15  ;;  %v3005_v47 = vsel %vm3004_vm15, %v3491_v8, %v3001_v48 }
 0x4c5   : > { %v3010_v40 = vsel %vm3007_vm2, %v3009_v14, %v3005_v47 }
 0x4c6   : > { %v2822_v46 = vrot.slane %v2821_v45, 4  ;;  %v2859_v16 = vrot.slane %v2858_v59, 4 }
 0x4c8   : > { %v2823_v63 = vadd.f32 %v2822_v46, %v2821_v45  ;;  %v2860_v34 = vadd.f32 %v2859_v16, %v2858_v59 }
 0x4ca   : > { %v2824_v56 = vrot.slane %v2823_v63, 2  ;;  %v2861_v4 = vrot.slane %v2860_v34, 2 }
 0x4cc   : > { %v2825_v28 = vadd.f32 %v2824_v56, %v2823_v63  ;;  %v2862_v12 = vadd.f32 %v2861_v4, %v2860_v34 }
 0x4ce   : > { %v2826_v36 = vrot.slane %v2825_v28, 1  ;;  %v2863_v62 = vrot.slane %v2862_v12, 1 }
 0x4d0   : > { %v2827_v2 = vadd.f32 %v2826_v36, %v2825_v28  ;;  %v2864_v31 = vadd.f32 %v2863_v62, %v2862_v12 }
 0x4d2   : > { %v3011_v55 = vmul.f32 %v2996_v29, %v2827_v2  ;;  %v3012_v5 = vmul.f32 %v3010_v40, %v2864_v31 }
 0x4d4   : > { %v3015_v61 = vrot.slane %v3012_v5, 7 }
 0x4d6   : > { %v3016_v49 = vsel %vm273_vm0, %v3011_v55, %v3015_v61 }
 0x4d7   : > { %3161 = vst.msk [vmem:[%s5084_s14 + $0x1] ss:$2 sm:$0x3] %vm5086_vm9, %v3016_v49 }
 0x4d8 PF: > { %s16_s17 = sadd.s32 1, %s3567_s17   ;;  %s6290_s15 = smov %s3563_s16 }
 0x4d9   : > { %p13_p8 = scmp.ge.s32.totalorder %s16_s17, 4   ;;  %s6291_s16 = smov %s6293_s24 }
 0x4db   :  { %15 = sbr.rel (!%p13_p8) target bundleno = 3 (0x3), region = 82 }
 0x4e0   :  { %3050 = vsyncpa [#allocation3], 1 }
 0x4e1   :  { %3052 = vsyncpa [#allocation3 + $0x1], 1 }
 0x4e2   :  { %3053 = vsyncpa [#allocation5], 1 }

</bundles_post_ra>
